<compile_context>
chip_gen: v7x
topology: tpu7x:2x2x1
jax: 0.10.0
libtpu: 0.0.40
codegen_flags: <defaults>
</compile_context>

<pallas_src>
import numpy as np
import jax
import jax.numpy as jnp
from jax.experimental import pallas as pl
from jax.experimental.pallas import tpu as pltpu


def _make_rnn_cat_kernel(full_steps, tail_steps, n_chunks):
    """Builds the per-chunk kernel.  Chunk lengths are static Python ints."""

    def kernel(xc_ref, y0_ref,
               wy0_ref, wy1_ref, wy2_ref, wy3_ref, wy4_ref,
               we_h_ref, be_h_ref, we_out_ref, be_out_ref,
               w_ih_ref, w_hh_ref, b_rnn_ref,
               wo_in_ref, bo_in_ref, wo_h_ref, bo_h_ref, wo_out_ref, bo_out_ref,
               ys_ref, h_scr, y_scr):
        B, H = h_scr.shape
        O = y_scr.shape[1]
        bf16 = jnp.bfloat16
        f32 = jnp.float32

        # First chunk: h_0 = zeros, previous output y = y_0.
        @pl.when(pl.program_id(0) == 0)
        def _():
            h_scr[...] = jnp.zeros_like(h_scr)
            y_scr[...] = y0_ref[...]

        # ---- Hoisted loop-invariant loads (weights already bf16 from wrapper) ----
        wy0, wy1, wy2 = wy0_ref[...], wy1_ref[...], wy2_ref[...]
        wy3, wy4 = wy3_ref[...], wy4_ref[...]
        we_h, we_out = we_h_ref[...], we_out_ref[...]
        w_ih, w_hh = w_ih_ref[...], w_hh_ref[...]
        wo_in, wo_h, wo_out = wo_in_ref[...], wo_h_ref[...], wo_out_ref[...]
        # Bias reads + broadcasts to (B, .) hoisted once per chunk.
        be_h = jnp.broadcast_to(be_h_ref[...], (B, H))
        be_out = jnp.broadcast_to(be_out_ref[...], (B, H))
        b_rnn = jnp.broadcast_to(b_rnn_ref[...], (B, H))
        bo_in = jnp.broadcast_to(bo_in_ref[...], (B, H))
        bo_h = jnp.broadcast_to(bo_h_ref[...], (B, H))
        bo_out = jnp.broadcast_to(bo_out_ref[...], (B, O))

        def step(t, carry):
            h, y = carry                                    # (B,H), (B,O) f32

            # Extract-MLP input layer.  The x-power contribution (incl. be_in)
            # was precomputed for all t in the wrapper; the y-power half is five
            # independent small dots (no lane concatenate on the critical path).
            y2 = y * y
            y3 = y2 * y
            y4 = y2 * y2
            y5 = y4 * y
            z = (xc_ref[t]
                 + jnp.dot(y.astype(bf16),  wy0, preferred_element_type=f32)
                 + jnp.dot(y2.astype(bf16), wy1, preferred_element_type=f32)
                 + jnp.dot(y3.astype(bf16), wy2, preferred_element_type=f32)
                 + jnp.dot(y4.astype(bf16), wy3, preferred_element_type=f32)
                 + jnp.dot(y5.astype(bf16), wy4, preferred_element_type=f32))
            z = jnp.maximum(z, 0.0)                                         # input + ReLU
            z = jnp.maximum(jnp.dot(z.astype(bf16), we_h,
                                    preferred_element_type=f32) + be_h, 0.0)   # hidden + ReLU
            e = jnp.maximum(jnp.dot(z.astype(bf16), we_out,
                                    preferred_element_type=f32) + be_out, 0.0)  # out + F.relu

            # Vanilla RNN cell (tanh); b_ih + b_hh prefolded into b_rnn.
            h_new = jnp.tanh(
                jnp.dot(e.astype(bf16), w_ih, preferred_element_type=f32)
                + jnp.dot(h.astype(bf16), w_hh, preferred_element_type=f32)
                + b_rnn)
            r = jnp.maximum(h_new, 0.0)                                     # relu after RNN

            # Output-MLP.
            o = jnp.maximum(jnp.dot(r.astype(bf16), wo_in,
                                    preferred_element_type=f32) + bo_in, 0.0)
            o = jnp.maximum(jnp.dot(o.astype(bf16), wo_h,
                                    preferred_element_type=f32) + bo_h, 0.0)
            y_new = jnp.dot(o.astype(bf16), wo_out,
                            preferred_element_type=f32) + bo_out            # (B, O)

            ys_ref[t] = y_new.astype(ys_ref.dtype)   # pack/pad mask applied in wrapper
            return (h_new, y_new)

        def run_chunk(nsteps):
            h, y = h_scr[...], y_scr[...]
            h, y = jax.lax.fori_loop(0, nsteps, step, (h, y),
                                     unroll=min(4, nsteps))
            h_scr[...] = h
            y_scr[...] = y

        if tail_steps == full_steps:
            # Every chunk (including the last) runs the same static step count.
            run_chunk(full_steps)
        else:
            last = pl.program_id(0) == (n_chunks - 1)

            @pl.when(jnp.logical_not(last))
            def _():
                run_chunk(full_steps)

            @pl.when(last)
            def _():
                run_chunk(tail_steps)

    return kernel


def my_rnn_cat_forward(x_btf, x_len, y0, params, time_chunk=None):
    """x_btf: (B, T, F) float32, x_len: (B,) int, y0: (B, 1, O) float32."""
    B, T, F = x_btf.shape
    H = params["w_hh"].shape[0]
    O = params["wo_out"].shape[1]
    FO = F + O

    # Number of recurrent steps actually executed (PyTorch also uses the host
    # value int(max(x_len))).  Falls back to T if x_len is traced.
    try:
        max_len = int(np.max(np.asarray(x_len)))
    except Exception:
        max_len = T
    max_len = max(1, min(max_len, T))

    # Time-chunk: cdiv grid with an in-kernel static tail (no divisor search).
    if time_chunk is None:
        time_chunk = 512
    time_chunk = max(1, min(int(time_chunk), max_len))
    n_chunks = int(pl.cdiv(max_len, time_chunk))
    tail = max_len - (n_chunks - 1) * time_chunk          # in [1, time_chunk]

    # Split the extract input-layer weight (5*(F+O), H) into x / y power blocks.
    we_in = params["we_in"]
    we_in_x = jnp.concatenate([we_in[k * FO:k * FO + F, :] for k in range(5)], 0)  # (5F,H)
    # Five separate (O,H) y-power blocks, pre-cast to bf16 for single-pass MXU dots.
    wy = [we_in[k * FO + F:(k + 1) * FO, :].astype(jnp.bfloat16) for k in range(5)]

    # Hoisted precompute: x-power contribution for t < max_len, directly in
    # (T, B, H) layout, with be_in folded in (XLA, outside the recurrent kernel).
    xf = x_btf[:, :max_len, :].astype(jnp.float32)
    xfeat = jnp.concatenate([xf, xf ** 2, xf ** 3, xf ** 4, xf ** 5], axis=-1)  # (B,L,5F)
    xc_tbh = jnp.einsum('btf,fh->tbh', xfeat, we_in_x) + params["be_in"]        # (L,B,H)

    b_rnn = params["b_ih"] + params["b_hh"]             # fold the two RNN biases
    y0_2d = y0.reshape(B, O).astype(jnp.float32)        # matches PyTorch y.squeeze()

    bf16 = jnp.bfloat16
    weights = [wy[0], wy[1], wy[2], wy[3], wy[4],
               params["we_h"].astype(bf16), params["be_h"],
               params["we_out"].astype(bf16), params["be_out"],
               params["w_ih"].astype(bf16), params["w_hh"].astype(bf16), b_rnn,
               params["wo_in"].astype(bf16), params["bo_in"],
               params["wo_h"].astype(bf16), params["bo_h"],
               params["wo_out"].astype(bf16), params["bo_out"]]

    def resident_spec(a):
        n = a.ndim
        return pl.BlockSpec(a.shape, lambda c, _n=n: (0,) * _n)

    in_specs = ([pl.BlockSpec((time_chunk, B, H), lambda c: (c, 0, 0)),   # x_contrib chunk
                 resident_spec(y0_2d)]
                + [resident_spec(w) for w in weights])

    kernel = _make_rnn_cat_kernel(time_chunk, tail, n_chunks)

    ys_tbo = pl.pallas_call(
        kernel,
        out_shape=jax.ShapeDtypeStruct((T, B, O), jnp.float32),
        grid=(n_chunks,),
        in_specs=in_specs,
        out_specs=pl.BlockSpec((time_chunk, B, O), lambda c: (c, 0, 0)),
        scratch_shapes=[pltpu.VMEM((B, H), jnp.float32),   # RNN hidden state (persists)
                        pltpu.VMEM((B, O), jnp.float32)],  # previous output y (persists)
        compiler_params=pltpu.CompilerParams(dimension_semantics=("arbitrary",)),
    )(xc_tbh, y0_2d, *weights)

    # pack_padded_sequence -> pad_packed_sequence(total_length=T) roundtrip ==
    # zeroing positions t >= x_len[b]; this also zeroes the never-computed
    # t >= max_len positions of the output buffer.
    ys_bto = jnp.transpose(ys_tbo, (1, 0, 2))          # (B, T, O), batch_first
    mask = jnp.arange(T)[None, :, None] < x_len.astype(jnp.int32)[:, None, None]
    return jnp.where(mask, ys_bto, 0.0)


def init_params(key, F, O, H):
    """Deterministic synthetic parameters (PyTorch-style uniform(-1/sqrt(fan_in)))."""
    in_unit = 5 * (F + O)   # MyRNN_cat's input_size after the polynomial expansion

    def u(k, shape, fan_in):
        lim = 1.0 / np.sqrt(fan_in)
        return jax.random.uniform(k, shape, jnp.float32, -lim, lim)

    ks = jax.random.split(key, 16)
    return {
        # extract NeuralNet(in_unit, H, H, 1)
        "we_in": u(ks[0], (in_unit, H), in_unit), "be_in": u(ks[1], (1, H), in_unit),
        "we_h": u(ks[2], (H, H), H),              "be_h": u(ks[3], (1, H), H),
        "we_out": u(ks[4], (H, H), H),            "be_out": u(ks[5], (1, H), H),
        # nn.RNN(H, H, 1) — stored pre-transposed as (in, out)
        "w_ih": u(ks[6], (H, H), H),              "b_ih": u(ks[7], (1, H), H),
        "w_hh": u(ks[8], (H, H), H),              "b_hh": u(ks[9], (1, H), H),
        # out NeuralNet(H, H, O, 1)
        "wo_in": u(ks[10], (H, H), H),            "bo_in": u(ks[11], (1, H), H),
        "wo_h": u(ks[12], (H, H), H),             "bo_h": u(ks[13], (1, H), H),
        "wo_out": u(ks[14], (H, O), H),           "bo_out": u(ks[15], (1, O), H),
    }


def reference_forward(x_btf, x_len, y0, params):
    """Pure-JAX mirror of the PyTorch forward (eval mode, dropout=0)."""
    B, T, F = x_btf.shape
    H = params["w_hh"].shape[0]
    O = params["wo_out"].shape[1]
    h = jnp.zeros((B, H), jnp.float32)
    y = y0.reshape(B, O)
    max_len = int(np.max(np.asarray(x_len)))
    cols = []
    for t in range(max_len):
        xt = x_btf[:, t, :]
        zc = jnp.concatenate([xt, y], axis=1)
        feats = jnp.concatenate([zc, zc**2, zc**3, zc**4, zc**5], axis=-1)
        a = jnp.maximum(feats @ params["we_in"] + params["be_in"], 0.0)
        a = jnp.maximum(a @ params["we_h"] + params["be_h"], 0.0)
        e = jnp.maximum(a @ params["we_out"] + params["be_out"], 0.0)
        h = jnp.tanh(e @ params["w_ih"] + params["b_ih"]
                     + h @ params["w_hh"] + params["b_hh"])
        r = jnp.maximum(h, 0.0)
        o = jnp.maximum(r @ params["wo_in"] + params["bo_in"], 0.0)
        o = jnp.maximum(o @ params["wo_h"] + params["bo_h"], 0.0)
        y = o @ params["wo_out"] + params["bo_out"]
        cols.append(y)
    ys = jnp.stack(cols, axis=1)
    if max_len < T:
        ys = jnp.pad(ys, ((0, 0), (0, T - max_len), (0, 0)))
    mask = jnp.arange(T)[None, :, None] < x_len.astype(jnp.int32)[:, None, None]
    return jnp.where(mask, ys, 0.0)


# TODO(synk): training-only teacher-forcing path (in_label + Bernoulli(p) sampling)
# and dropout layers are identity in eval mode / p=0 and are not implemented.

if __name__ == "__main__":
    B, T, F, O, H = 2, 8, 4, 4, 32       # input_size passed to MyRNN_cat = 5*(F+O) = 40
    key = jax.random.PRNGKey(0)
    kx, ky0, kp = jax.random.split(key, 3)

    x = jax.random.normal(kx, (B, T, F), jnp.float32)
    y0 = jax.random.normal(ky0, (B, 1, O), jnp.float32)
    x_len = jnp.array([6, 4], jnp.int32)  # sorted descending (pack_padded_sequence default)
    params = init_params(kp, F, O, H)

    # time_chunk=4, max_len=6 -> grid=(2,) with a static tail chunk of 2 steps:
    # exercises both the full-chunk and tail-chunk paths.
    out = my_rnn_cat_forward(x, x_len, y0, params, time_chunk=4)
    out = jax.block_until_ready(out)

    ref = reference_forward(x, x_len, y0, params)
    # Tolerance is slightly looser than before because the kernel intentionally
    # uses bf16 MXU operands (f32 accumulation) per the perf review, while the
    # reference runs at XLA's default f32 matmul precision.
    if not np.allclose(np.asarray(out), np.asarray(ref), rtol=4e-2, atol=4e-2):
        raise AssertionError("Pallas kernel output does not match JAX reference")

    print("KERNEL_OK")
</pallas_src>

<mosaic_0001>
module attributes {stable_mosaic.version = 11 : i64} {
  func.func @kernel(%arg0: i32, %arg1: memref<4x2x32xf32, #tpu.memory_space<vmem>>, %arg2: memref<2x4xf32, #tpu.memory_space<vmem>>, %arg3: memref<4x32xbf16, #tpu.memory_space<vmem>>, %arg4: memref<4x32xbf16, #tpu.memory_space<vmem>>, %arg5: memref<4x32xbf16, #tpu.memory_space<vmem>>, %arg6: memref<4x32xbf16, #tpu.memory_space<vmem>>, %arg7: memref<4x32xbf16, #tpu.memory_space<vmem>>, %arg8: memref<32x32xbf16, #tpu.memory_space<vmem>>, %arg9: memref<1x32xf32, #tpu.memory_space<vmem>>, %arg10: memref<32x32xbf16, #tpu.memory_space<vmem>>, %arg11: memref<1x32xf32, #tpu.memory_space<vmem>>, %arg12: memref<32x32xbf16, #tpu.memory_space<vmem>>, %arg13: memref<32x32xbf16, #tpu.memory_space<vmem>>, %arg14: memref<1x32xf32, #tpu.memory_space<vmem>>, %arg15: memref<32x32xbf16, #tpu.memory_space<vmem>>, %arg16: memref<1x32xf32, #tpu.memory_space<vmem>>, %arg17: memref<32x32xbf16, #tpu.memory_space<vmem>>, %arg18: memref<1x32xf32, #tpu.memory_space<vmem>>, %arg19: memref<32x4xbf16, #tpu.memory_space<vmem>>, %arg20: memref<1x4xf32, #tpu.memory_space<vmem>>, %arg21: memref<4x2x4xf32, #tpu.memory_space<vmem>>, %arg22: memref<2x32xf32, #tpu.memory_space<vmem>>, %arg23: memref<2x4xf32, #tpu.memory_space<vmem>>) attributes {dimension_semantics = [#tpu.dimension_semantics<arbitrary>], iteration_bounds = array<i64: 2>, scalar_prefetch = 0 : i64, scratch_operands = 2 : i64, tpu.core_type = #tpu.core_type<tc>, window_params = [{transform_indices = @transform_0, window_bounds = array<i64: 4, 2, 32>}, {pipeline_mode = #tpu.pipeline_mode<synchronous>, transform_indices = @transform_1, window_bounds = array<i64: 2, 4>}, {pipeline_mode = #tpu.pipeline_mode<synchronous>, transform_indices = @transform_2, window_bounds = array<i64: 4, 32>}, {pipeline_mode = #tpu.pipeline_mode<synchronous>, transform_indices = @transform_3, window_bounds = array<i64: 4, 32>}, {pipeline_mode = #tpu.pipeline_mode<synchronous>, transform_indices = @transform_4, window_bounds = array<i64: 4, 32>}, {pipeline_mode = #tpu.pipeline_mode<synchronous>, transform_indices = @transform_5, window_bounds = array<i64: 4, 32>}, {pipeline_mode = #tpu.pipeline_mode<synchronous>, transform_indices = @transform_6, window_bounds = array<i64: 4, 32>}, {pipeline_mode = #tpu.pipeline_mode<synchronous>, transform_indices = @transform_7, window_bounds = array<i64: 32, 32>}, {pipeline_mode = #tpu.pipeline_mode<synchronous>, transform_indices = @transform_8, window_bounds = array<i64: 1, 32>}, {pipeline_mode = #tpu.pipeline_mode<synchronous>, transform_indices = @transform_9, window_bounds = array<i64: 32, 32>}, {pipeline_mode = #tpu.pipeline_mode<synchronous>, transform_indices = @transform_10, window_bounds = array<i64: 1, 32>}, {pipeline_mode = #tpu.pipeline_mode<synchronous>, transform_indices = @transform_11, window_bounds = array<i64: 32, 32>}, {pipeline_mode = #tpu.pipeline_mode<synchronous>, transform_indices = @transform_12, window_bounds = array<i64: 32, 32>}, {pipeline_mode = #tpu.pipeline_mode<synchronous>, transform_indices = @transform_13, window_bounds = array<i64: 1, 32>}, {pipeline_mode = #tpu.pipeline_mode<synchronous>, transform_indices = @transform_14, window_bounds = array<i64: 32, 32>}, {pipeline_mode = #tpu.pipeline_mode<synchronous>, transform_indices = @transform_15, window_bounds = array<i64: 1, 32>}, {pipeline_mode = #tpu.pipeline_mode<synchronous>, transform_indices = @transform_16, window_bounds = array<i64: 32, 32>}, {pipeline_mode = #tpu.pipeline_mode<synchronous>, transform_indices = @transform_17, window_bounds = array<i64: 1, 32>}, {pipeline_mode = #tpu.pipeline_mode<synchronous>, transform_indices = @transform_18, window_bounds = array<i64: 32, 4>}, {pipeline_mode = #tpu.pipeline_mode<synchronous>, transform_indices = @transform_19, window_bounds = array<i64: 1, 4>}, {transform_indices = @transform_20, window_bounds = array<i64: 4, 2, 4>}]} {
    %c0_i32 = arith.constant 0 : i32
    %0 = arith.cmpi eq, %arg0, %c0_i32 : i32
    %1 = arith.extui %0 : i1 to i32
    %c0_i32_0 = arith.constant 0 : i32
    %2 = arith.cmpi ne, %1, %c0_i32_0 : i32
    scf.if %2 {
      %cst = arith.constant 0.000000e+00 : f32
      %39 = vector.broadcast %cst : f32 to vector<2x32xf32>
      %c0_38 = arith.constant 0 : index
      %c0_39 = arith.constant 0 : index
      %40 = vector.load %arg22[%c0_38, %c0_39] : memref<2x32xf32, #tpu.memory_space<vmem>>, vector<2x32xf32>
      tpu.vector_store %arg22[%c0_38, %c0_39], %39 {strides = array<i32>} : memref<2x32xf32, #tpu.memory_space<vmem>>, vector<2x32xf32>,
      %c0_40 = arith.constant 0 : index
      %c0_41 = arith.constant 0 : index
      %41 = vector.load %arg2[%c0_40, %c0_41] : memref<2x4xf32, #tpu.memory_space<vmem>>, vector<2x4xf32>
      %c0_42 = arith.constant 0 : index
      %c0_43 = arith.constant 0 : index
      %42 = vector.load %arg23[%c0_42, %c0_43] : memref<2x4xf32, #tpu.memory_space<vmem>>, vector<2x4xf32>
      tpu.vector_store %arg23[%c0_42, %c0_43], %41 {strides = array<i32>} : memref<2x4xf32, #tpu.memory_space<vmem>>, vector<2x4xf32>,
    } else {
    }
    %c0 = arith.constant 0 : index
    %c0_1 = arith.constant 0 : index
    %3 = vector.load %arg3[%c0, %c0_1] : memref<4x32xbf16, #tpu.memory_space<vmem>>, vector<4x32xbf16>
    %c0_2 = arith.constant 0 : index
    %c0_3 = arith.constant 0 : index
    %4 = vector.load %arg4[%c0_2, %c0_3] : memref<4x32xbf16, #tpu.memory_space<vmem>>, vector<4x32xbf16>
    %c0_4 = arith.constant 0 : index
    %c0_5 = arith.constant 0 : index
    %5 = vector.load %arg5[%c0_4, %c0_5] : memref<4x32xbf16, #tpu.memory_space<vmem>>, vector<4x32xbf16>
    %c0_6 = arith.constant 0 : index
    %c0_7 = arith.constant 0 : index
    %6 = vector.load %arg6[%c0_6, %c0_7] : memref<4x32xbf16, #tpu.memory_space<vmem>>, vector<4x32xbf16>
    %c0_8 = arith.constant 0 : index
    %c0_9 = arith.constant 0 : index
    %7 = vector.load %arg7[%c0_8, %c0_9] : memref<4x32xbf16, #tpu.memory_space<vmem>>, vector<4x32xbf16>
    %c0_10 = arith.constant 0 : index
    %c0_11 = arith.constant 0 : index
    %8 = vector.load %arg8[%c0_10, %c0_11] : memref<32x32xbf16, #tpu.memory_space<vmem>>, vector<32x32xbf16>
    %c0_12 = arith.constant 0 : index
    %c0_13 = arith.constant 0 : index
    %9 = vector.load %arg10[%c0_12, %c0_13] : memref<32x32xbf16, #tpu.memory_space<vmem>>, vector<32x32xbf16>
    %c0_14 = arith.constant 0 : index
    %c0_15 = arith.constant 0 : index
    %10 = vector.load %arg12[%c0_14, %c0_15] : memref<32x32xbf16, #tpu.memory_space<vmem>>, vector<32x32xbf16>
    %c0_16 = arith.constant 0 : index
    %c0_17 = arith.constant 0 : index
    %11 = vector.load %arg13[%c0_16, %c0_17] : memref<32x32xbf16, #tpu.memory_space<vmem>>, vector<32x32xbf16>
    %c0_18 = arith.constant 0 : index
    %c0_19 = arith.constant 0 : index
    %12 = vector.load %arg15[%c0_18, %c0_19] : memref<32x32xbf16, #tpu.memory_space<vmem>>, vector<32x32xbf16>
    %c0_20 = arith.constant 0 : index
    %c0_21 = arith.constant 0 : index
    %13 = vector.load %arg17[%c0_20, %c0_21] : memref<32x32xbf16, #tpu.memory_space<vmem>>, vector<32x32xbf16>
    %c0_22 = arith.constant 0 : index
    %c0_23 = arith.constant 0 : index
    %14 = vector.load %arg19[%c0_22, %c0_23] : memref<32x4xbf16, #tpu.memory_space<vmem>>, vector<32x4xbf16>
    %c0_24 = arith.constant 0 : index
    %c0_25 = arith.constant 0 : index
    %15 = vector.load %arg9[%c0_24, %c0_25] : memref<1x32xf32, #tpu.memory_space<vmem>>, vector<1x32xf32>
    %16 = vector.shape_cast %15 : vector<1x32xf32> to vector<1x32xf32>
    %17 = vector.broadcast %16 : vector<1x32xf32> to vector<2x32xf32>
    %c0_26 = arith.constant 0 : index
    %c0_27 = arith.constant 0 : index
    %18 = vector.load %arg11[%c0_26, %c0_27] : memref<1x32xf32, #tpu.memory_space<vmem>>, vector<1x32xf32>
    %19 = vector.shape_cast %18 : vector<1x32xf32> to vector<1x32xf32>
    %20 = vector.broadcast %19 : vector<1x32xf32> to vector<2x32xf32>
    %c0_28 = arith.constant 0 : index
    %c0_29 = arith.constant 0 : index
    %21 = vector.load %arg14[%c0_28, %c0_29] : memref<1x32xf32, #tpu.memory_space<vmem>>, vector<1x32xf32>
    %22 = vector.shape_cast %21 : vector<1x32xf32> to vector<1x32xf32>
    %23 = vector.broadcast %22 : vector<1x32xf32> to vector<2x32xf32>
    %c0_30 = arith.constant 0 : index
    %c0_31 = arith.constant 0 : index
    %24 = vector.load %arg16[%c0_30, %c0_31] : memref<1x32xf32, #tpu.memory_space<vmem>>, vector<1x32xf32>
    %25 = vector.shape_cast %24 : vector<1x32xf32> to vector<1x32xf32>
    %26 = vector.broadcast %25 : vector<1x32xf32> to vector<2x32xf32>
    %c0_32 = arith.constant 0 : index
    %c0_33 = arith.constant 0 : index
    %27 = vector.load %arg18[%c0_32, %c0_33] : memref<1x32xf32, #tpu.memory_space<vmem>>, vector<1x32xf32>
    %28 = vector.shape_cast %27 : vector<1x32xf32> to vector<1x32xf32>
    %29 = vector.broadcast %28 : vector<1x32xf32> to vector<2x32xf32>
    %c0_34 = arith.constant 0 : index
    %c0_35 = arith.constant 0 : index
    %30 = vector.load %arg20[%c0_34, %c0_35] : memref<1x4xf32, #tpu.memory_space<vmem>>, vector<1x4xf32>
    %31 = vector.shape_cast %30 : vector<1x4xf32> to vector<1x4xf32>
    %32 = vector.broadcast %31 : vector<1x4xf32> to vector<2x4xf32>
    %c1_i32 = arith.constant 1 : i32
    %33 = arith.cmpi eq, %arg0, %c1_i32 : i32
    %true = arith.constant true
    %34 = arith.xori %33, %true : i1
    %35 = arith.extui %34 : i1 to i32
    %c0_i32_36 = arith.constant 0 : i32
    %36 = arith.cmpi ne, %35, %c0_i32_36 : i32
    scf.if %36 {
      %c0_38 = arith.constant 0 : index
      %c0_39 = arith.constant 0 : index
      %39 = vector.load %arg22[%c0_38, %c0_39] : memref<2x32xf32, #tpu.memory_space<vmem>>, vector<2x32xf32>
      %c0_40 = arith.constant 0 : index
      %c0_41 = arith.constant 0 : index
      %40 = vector.load %arg23[%c0_40, %c0_41] : memref<2x4xf32, #tpu.memory_space<vmem>>, vector<2x4xf32>
      %c0_i32_42 = arith.constant 0 : i32
      %41 = arith.mulf %40, %40 : vector<2x4xf32>
      %42 = arith.mulf %41, %40 : vector<2x4xf32>
      %43 = arith.mulf %41, %41 : vector<2x4xf32>
      %44 = arith.mulf %43, %40 : vector<2x4xf32>
      %45 = arith.index_cast %c0_i32_42 : i32 to index
      %c0_43 = arith.constant 0 : index
      %c0_44 = arith.constant 0 : index
      %46 = vector.load %arg1[%45, %c0_43, %c0_44] : memref<4x2x32xf32, #tpu.memory_space<vmem>>, vector<1x2x32xf32>
      %47 = vector.shape_cast %46 : vector<1x2x32xf32> to vector<2x32xf32>
      %48 = arith.truncf %40 : vector<2x4xf32> to vector<2x4xbf16>
      %cst = arith.constant dense<0.000000e+00> : vector<2x32xf32>
      %49 = tpu.matmul %48, %3, %cst {dimension_numbers = #tpu.dot_dimension_numbers<[1], [0], [0], [1], [0, 0, 1, 1], [], []>} : vector<2x4xbf16>, vector<4x32xbf16>, vector<2x32xf32> -> vector<2x32xf32>
      %50 = arith.addf %47, %49 : vector<2x32xf32>
      %51 = arith.truncf %41 : vector<2x4xf32> to vector<2x4xbf16>
      %cst_45 = arith.constant dense<0.000000e+00> : vector<2x32xf32>
      %52 = tpu.matmul %51, %4, %cst_45 {dimension_numbers = #tpu.dot_dimension_numbers<[1], [0], [0], [1], [0, 0, 1, 1], [], []>} : vector<2x4xbf16>, vector<4x32xbf16>, vector<2x32xf32> -> vector<2x32xf32>
      %53 = arith.addf %50, %52 : vector<2x32xf32>
      %54 = arith.truncf %42 : vector<2x4xf32> to vector<2x4xbf16>
      %cst_46 = arith.constant dense<0.000000e+00> : vector<2x32xf32>
      %55 = tpu.matmul %54, %5, %cst_46 {dimension_numbers = #tpu.dot_dimension_numbers<[1], [0], [0], [1], [0, 0, 1, 1], [], []>} : vector<2x4xbf16>, vector<4x32xbf16>, vector<2x32xf32> -> vector<2x32xf32>
      %56 = arith.addf %53, %55 : vector<2x32xf32>
      %57 = arith.truncf %43 : vector<2x4xf32> to vector<2x4xbf16>
      %cst_47 = arith.constant dense<0.000000e+00> : vector<2x32xf32>
      %58 = tpu.matmul %57, %6, %cst_47 {dimension_numbers = #tpu.dot_dimension_numbers<[1], [0], [0], [1], [0, 0, 1, 1], [], []>} : vector<2x4xbf16>, vector<4x32xbf16>, vector<2x32xf32> -> vector<2x32xf32>
      %59 = arith.addf %56, %58 : vector<2x32xf32>
      %60 = arith.truncf %44 : vector<2x4xf32> to vector<2x4xbf16>
      %cst_48 = arith.constant dense<0.000000e+00> : vector<2x32xf32>
      %61 = tpu.matmul %60, %7, %cst_48 {dimension_numbers = #tpu.dot_dimension_numbers<[1], [0], [0], [1], [0, 0, 1, 1], [], []>} : vector<2x4xbf16>, vector<4x32xbf16>, vector<2x32xf32> -> vector<2x32xf32>
      %62 = arith.addf %59, %61 : vector<2x32xf32>
      %cst_49 = arith.constant 0.000000e+00 : f32
      %63 = vector.broadcast %cst_49 : f32 to vector<2x32xf32>
      %64 = arith.maximumf %62, %63 : vector<2x32xf32>
      %65 = arith.truncf %64 : vector<2x32xf32> to vector<2x32xbf16>
      %cst_50 = arith.constant dense<0.000000e+00> : vector<2x32xf32>
      %66 = tpu.matmul %65, %8, %cst_50 {dimension_numbers = #tpu.dot_dimension_numbers<[1], [0], [0], [1], [0, 0, 1, 1], [], []>} : vector<2x32xbf16>, vector<32x32xbf16>, vector<2x32xf32> -> vector<2x32xf32>
      %67 = arith.addf %66, %17 : vector<2x32xf32>
      %cst_51 = arith.constant 0.000000e+00 : f32
      %68 = vector.broadcast %cst_51 : f32 to vector<2x32xf32>
      %69 = arith.maximumf %67, %68 : vector<2x32xf32>
      %70 = arith.truncf %69 : vector<2x32xf32> to vector<2x32xbf16>
      %cst_52 = arith.constant dense<0.000000e+00> : vector<2x32xf32>
      %71 = tpu.matmul %70, %9, %cst_52 {dimension_numbers = #tpu.dot_dimension_numbers<[1], [0], [0], [1], [0, 0, 1, 1], [], []>} : vector<2x32xbf16>, vector<32x32xbf16>, vector<2x32xf32> -> vector<2x32xf32>
      %72 = arith.addf %71, %20 : vector<2x32xf32>
      %cst_53 = arith.constant 0.000000e+00 : f32
      %73 = vector.broadcast %cst_53 : f32 to vector<2x32xf32>
      %74 = arith.maximumf %72, %73 : vector<2x32xf32>
      %75 = arith.truncf %74 : vector<2x32xf32> to vector<2x32xbf16>
      %cst_54 = arith.constant dense<0.000000e+00> : vector<2x32xf32>
      %76 = tpu.matmul %75, %10, %cst_54 {dimension_numbers = #tpu.dot_dimension_numbers<[1], [0], [0], [1], [0, 0, 1, 1], [], []>} : vector<2x32xbf16>, vector<32x32xbf16>, vector<2x32xf32> -> vector<2x32xf32>
      %77 = arith.truncf %39 : vector<2x32xf32> to vector<2x32xbf16>
      %cst_55 = arith.constant dense<0.000000e+00> : vector<2x32xf32>
      %78 = tpu.matmul %77, %11, %cst_55 {dimension_numbers = #tpu.dot_dimension_numbers<[1], [0], [0], [1], [0, 0, 1, 1], [], []>} : vector<2x32xbf16>, vector<32x32xbf16>, vector<2x32xf32> -> vector<2x32xf32>
      %79 = arith.addf %76, %78 : vector<2x32xf32>
      %80 = arith.addf %79, %23 : vector<2x32xf32>
      %81 = math.tanh %80 : vector<2x32xf32>
      %cst_56 = arith.constant 0.000000e+00 : f32
      %82 = vector.broadcast %cst_56 : f32 to vector<2x32xf32>
      %83 = arith.maximumf %81, %82 : vector<2x32xf32>
      %84 = arith.truncf %83 : vector<2x32xf32> to vector<2x32xbf16>
      %cst_57 = arith.constant dense<0.000000e+00> : vector<2x32xf32>
      %85 = tpu.matmul %84, %12, %cst_57 {dimension_numbers = #tpu.dot_dimension_numbers<[1], [0], [0], [1], [0, 0, 1, 1], [], []>} : vector<2x32xbf16>, vector<32x32xbf16>, vector<2x32xf32> -> vector<2x32xf32>
      %86 = arith.addf %85, %26 : vector<2x32xf32>
      %cst_58 = arith.constant 0.000000e+00 : f32
      %87 = vector.broadcast %cst_58 : f32 to vector<2x32xf32>
      %88 = arith.maximumf %86, %87 : vector<2x32xf32>
      %89 = arith.truncf %88 : vector<2x32xf32> to vector<2x32xbf16>
      %cst_59 = arith.constant dense<0.000000e+00> : vector<2x32xf32>
      %90 = tpu.matmul %89, %13, %cst_59 {dimension_numbers = #tpu.dot_dimension_numbers<[1], [0], [0], [1], [0, 0, 1, 1], [], []>} : vector<2x32xbf16>, vector<32x32xbf16>, vector<2x32xf32> -> vector<2x32xf32>
      %91 = arith.addf %90, %29 : vector<2x32xf32>
      %cst_60 = arith.constant 0.000000e+00 : f32
      %92 = vector.broadcast %cst_60 : f32 to vector<2x32xf32>
      %93 = arith.maximumf %91, %92 : vector<2x32xf32>
      %94 = arith.truncf %93 : vector<2x32xf32> to vector<2x32xbf16>
      %cst_61 = arith.constant dense<0.000000e+00> : vector<2x4xf32>
      %95 = tpu.matmul %94, %14, %cst_61 {dimension_numbers = #tpu.dot_dimension_numbers<[1], [0], [0], [1], [0, 0, 1, 1], [], []>} : vector<2x32xbf16>, vector<32x4xbf16>, vector<2x4xf32> -> vector<2x4xf32>
      %96 = arith.addf %95, %32 : vector<2x4xf32>
      %97 = arith.index_cast %c0_i32_42 : i32 to index
      %c0_62 = arith.constant 0 : index
      %c0_63 = arith.constant 0 : index
      %98 = vector.load %arg21[%97, %c0_62, %c0_63] : memref<4x2x4xf32, #tpu.memory_space<vmem>>, vector<1x2x4xf32>
      %99 = vector.shape_cast %98 : vector<1x2x4xf32> to vector<2x4xf32>
      %100 = vector.shape_cast %96 : vector<2x4xf32> to vector<1x2x4xf32>
      tpu.vector_store %arg21[%97, %c0_62, %c0_63], %100 {strides = array<i32>} : memref<4x2x4xf32, #tpu.memory_space<vmem>>, vector<1x2x4xf32>,
      %c1_i32_64 = arith.constant 1 : i32
      %101 = arith.mulf %96, %96 : vector<2x4xf32>
      %102 = arith.mulf %101, %96 : vector<2x4xf32>
      %103 = arith.mulf %101, %101 : vector<2x4xf32>
      %104 = arith.mulf %103, %96 : vector<2x4xf32>
      %105 = arith.index_cast %c1_i32_64 : i32 to index
      %c0_65 = arith.constant 0 : index
      %c0_66 = arith.constant 0 : index
      %106 = vector.load %arg1[%105, %c0_65, %c0_66] : memref<4x2x32xf32, #tpu.memory_space<vmem>>, vector<1x2x32xf32>
      %107 = vector.shape_cast %106 : vector<1x2x32xf32> to vector<2x32xf32>
      %108 = arith.truncf %96 : vector<2x4xf32> to vector<2x4xbf16>
      %cst_67 = arith.constant dense<0.000000e+00> : vector<2x32xf32>
      %109 = tpu.matmul %108, %3, %cst_67 {dimension_numbers = #tpu.dot_dimension_numbers<[1], [0], [0], [1], [0, 0, 1, 1], [], []>} : vector<2x4xbf16>, vector<4x32xbf16>, vector<2x32xf32> -> vector<2x32xf32>
      %110 = arith.addf %107, %109 : vector<2x32xf32>
      %111 = arith.truncf %101 : vector<2x4xf32> to vector<2x4xbf16>
      %cst_68 = arith.constant dense<0.000000e+00> : vector<2x32xf32>
      %112 = tpu.matmul %111, %4, %cst_68 {dimension_numbers = #tpu.dot_dimension_numbers<[1], [0], [0], [1], [0, 0, 1, 1], [], []>} : vector<2x4xbf16>, vector<4x32xbf16>, vector<2x32xf32> -> vector<2x32xf32>
      %113 = arith.addf %110, %112 : vector<2x32xf32>
      %114 = arith.truncf %102 : vector<2x4xf32> to vector<2x4xbf16>
      %cst_69 = arith.constant dense<0.000000e+00> : vector<2x32xf32>
      %115 = tpu.matmul %114, %5, %cst_69 {dimension_numbers = #tpu.dot_dimension_numbers<[1], [0], [0], [1], [0, 0, 1, 1], [], []>} : vector<2x4xbf16>, vector<4x32xbf16>, vector<2x32xf32> -> vector<2x32xf32>
      %116 = arith.addf %113, %115 : vector<2x32xf32>
      %117 = arith.truncf %103 : vector<2x4xf32> to vector<2x4xbf16>
      %cst_70 = arith.constant dense<0.000000e+00> : vector<2x32xf32>
      %118 = tpu.matmul %117, %6, %cst_70 {dimension_numbers = #tpu.dot_dimension_numbers<[1], [0], [0], [1], [0, 0, 1, 1], [], []>} : vector<2x4xbf16>, vector<4x32xbf16>, vector<2x32xf32> -> vector<2x32xf32>
      %119 = arith.addf %116, %118 : vector<2x32xf32>
      %120 = arith.truncf %104 : vector<2x4xf32> to vector<2x4xbf16>
      %cst_71 = arith.constant dense<0.000000e+00> : vector<2x32xf32>
      %121 = tpu.matmul %120, %7, %cst_71 {dimension_numbers = #tpu.dot_dimension_numbers<[1], [0], [0], [1], [0, 0, 1, 1], [], []>} : vector<2x4xbf16>, vector<4x32xbf16>, vector<2x32xf32> -> vector<2x32xf32>
      %122 = arith.addf %119, %121 : vector<2x32xf32>
      %cst_72 = arith.constant 0.000000e+00 : f32
      %123 = vector.broadcast %cst_72 : f32 to vector<2x32xf32>
      %124 = arith.maximumf %122, %123 : vector<2x32xf32>
      %125 = arith.truncf %124 : vector<2x32xf32> to vector<2x32xbf16>
      %cst_73 = arith.constant dense<0.000000e+00> : vector<2x32xf32>
      %126 = tpu.matmul %125, %8, %cst_73 {dimension_numbers = #tpu.dot_dimension_numbers<[1], [0], [0], [1], [0, 0, 1, 1], [], []>} : vector<2x32xbf16>, vector<32x32xbf16>, vector<2x32xf32> -> vector<2x32xf32>
      %127 = arith.addf %126, %17 : vector<2x32xf32>
      %cst_74 = arith.constant 0.000000e+00 : f32
      %128 = vector.broadcast %cst_74 : f32 to vector<2x32xf32>
      %129 = arith.maximumf %127, %128 : vector<2x32xf32>
      %130 = arith.truncf %129 : vector<2x32xf32> to vector<2x32xbf16>
      %cst_75 = arith.constant dense<0.000000e+00> : vector<2x32xf32>
      %131 = tpu.matmul %130, %9, %cst_75 {dimension_numbers = #tpu.dot_dimension_numbers<[1], [0], [0], [1], [0, 0, 1, 1], [], []>} : vector<2x32xbf16>, vector<32x32xbf16>, vector<2x32xf32> -> vector<2x32xf32>
      %132 = arith.addf %131, %20 : vector<2x32xf32>
      %cst_76 = arith.constant 0.000000e+00 : f32
      %133 = vector.broadcast %cst_76 : f32 to vector<2x32xf32>
      %134 = arith.maximumf %132, %133 : vector<2x32xf32>
      %135 = arith.truncf %134 : vector<2x32xf32> to vector<2x32xbf16>
      %cst_77 = arith.constant dense<0.000000e+00> : vector<2x32xf32>
      %136 = tpu.matmul %135, %10, %cst_77 {dimension_numbers = #tpu.dot_dimension_numbers<[1], [0], [0], [1], [0, 0, 1, 1], [], []>} : vector<2x32xbf16>, vector<32x32xbf16>, vector<2x32xf32> -> vector<2x32xf32>
      %137 = arith.truncf %81 : vector<2x32xf32> to vector<2x32xbf16>
      %cst_78 = arith.constant dense<0.000000e+00> : vector<2x32xf32>
      %138 = tpu.matmul %137, %11, %cst_78 {dimension_numbers = #tpu.dot_dimension_numbers<[1], [0], [0], [1], [0, 0, 1, 1], [], []>} : vector<2x32xbf16>, vector<32x32xbf16>, vector<2x32xf32> -> vector<2x32xf32>
      %139 = arith.addf %136, %138 : vector<2x32xf32>
      %140 = arith.addf %139, %23 : vector<2x32xf32>
      %141 = math.tanh %140 : vector<2x32xf32>
      %cst_79 = arith.constant 0.000000e+00 : f32
      %142 = vector.broadcast %cst_79 : f32 to vector<2x32xf32>
      %143 = arith.maximumf %141, %142 : vector<2x32xf32>
      %144 = arith.truncf %143 : vector<2x32xf32> to vector<2x32xbf16>
      %cst_80 = arith.constant dense<0.000000e+00> : vector<2x32xf32>
      %145 = tpu.matmul %144, %12, %cst_80 {dimension_numbers = #tpu.dot_dimension_numbers<[1], [0], [0], [1], [0, 0, 1, 1], [], []>} : vector<2x32xbf16>, vector<32x32xbf16>, vector<2x32xf32> -> vector<2x32xf32>
      %146 = arith.addf %145, %26 : vector<2x32xf32>
      %cst_81 = arith.constant 0.000000e+00 : f32
      %147 = vector.broadcast %cst_81 : f32 to vector<2x32xf32>
      %148 = arith.maximumf %146, %147 : vector<2x32xf32>
      %149 = arith.truncf %148 : vector<2x32xf32> to vector<2x32xbf16>
      %cst_82 = arith.constant dense<0.000000e+00> : vector<2x32xf32>
      %150 = tpu.matmul %149, %13, %cst_82 {dimension_numbers = #tpu.dot_dimension_numbers<[1], [0], [0], [1], [0, 0, 1, 1], [], []>} : vector<2x32xbf16>, vector<32x32xbf16>, vector<2x32xf32> -> vector<2x32xf32>
      %151 = arith.addf %150, %29 : vector<2x32xf32>
      %cst_83 = arith.constant 0.000000e+00 : f32
      %152 = vector.broadcast %cst_83 : f32 to vector<2x32xf32>
      %153 = arith.maximumf %151, %152 : vector<2x32xf32>
      %154 = arith.truncf %153 : vector<2x32xf32> to vector<2x32xbf16>
      %cst_84 = arith.constant dense<0.000000e+00> : vector<2x4xf32>
      %155 = tpu.matmul %154, %14, %cst_84 {dimension_numbers = #tpu.dot_dimension_numbers<[1], [0], [0], [1], [0, 0, 1, 1], [], []>} : vector<2x32xbf16>, vector<32x4xbf16>, vector<2x4xf32> -> vector<2x4xf32>
      %156 = arith.addf %155, %32 : vector<2x4xf32>
      %157 = arith.index_cast %c1_i32_64 : i32 to index
      %c0_85 = arith.constant 0 : index
      %c0_86 = arith.constant 0 : index
      %158 = vector.load %arg21[%157, %c0_85, %c0_86] : memref<4x2x4xf32, #tpu.memory_space<vmem>>, vector<1x2x4xf32>
      %159 = vector.shape_cast %158 : vector<1x2x4xf32> to vector<2x4xf32>
      %160 = vector.shape_cast %156 : vector<2x4xf32> to vector<1x2x4xf32>
      tpu.vector_store %arg21[%157, %c0_85, %c0_86], %160 {strides = array<i32>} : memref<4x2x4xf32, #tpu.memory_space<vmem>>, vector<1x2x4xf32>,
      %c2_i32 = arith.constant 2 : i32
      %161 = arith.mulf %156, %156 : vector<2x4xf32>
      %162 = arith.mulf %161, %156 : vector<2x4xf32>
      %163 = arith.mulf %161, %161 : vector<2x4xf32>
      %164 = arith.mulf %163, %156 : vector<2x4xf32>
      %165 = arith.index_cast %c2_i32 : i32 to index
      %c0_87 = arith.constant 0 : index
      %c0_88 = arith.constant 0 : index
      %166 = vector.load %arg1[%165, %c0_87, %c0_88] : memref<4x2x32xf32, #tpu.memory_space<vmem>>, vector<1x2x32xf32>
      %167 = vector.shape_cast %166 : vector<1x2x32xf32> to vector<2x32xf32>
      %168 = arith.truncf %156 : vector<2x4xf32> to vector<2x4xbf16>
      %cst_89 = arith.constant dense<0.000000e+00> : vector<2x32xf32>
      %169 = tpu.matmul %168, %3, %cst_89 {dimension_numbers = #tpu.dot_dimension_numbers<[1], [0], [0], [1], [0, 0, 1, 1], [], []>} : vector<2x4xbf16>, vector<4x32xbf16>, vector<2x32xf32> -> vector<2x32xf32>
      %170 = arith.addf %167, %169 : vector<2x32xf32>
      %171 = arith.truncf %161 : vector<2x4xf32> to vector<2x4xbf16>
      %cst_90 = arith.constant dense<0.000000e+00> : vector<2x32xf32>
      %172 = tpu.matmul %171, %4, %cst_90 {dimension_numbers = #tpu.dot_dimension_numbers<[1], [0], [0], [1], [0, 0, 1, 1], [], []>} : vector<2x4xbf16>, vector<4x32xbf16>, vector<2x32xf32> -> vector<2x32xf32>
      %173 = arith.addf %170, %172 : vector<2x32xf32>
      %174 = arith.truncf %162 : vector<2x4xf32> to vector<2x4xbf16>
      %cst_91 = arith.constant dense<0.000000e+00> : vector<2x32xf32>
      %175 = tpu.matmul %174, %5, %cst_91 {dimension_numbers = #tpu.dot_dimension_numbers<[1], [0], [0], [1], [0, 0, 1, 1], [], []>} : vector<2x4xbf16>, vector<4x32xbf16>, vector<2x32xf32> -> vector<2x32xf32>
      %176 = arith.addf %173, %175 : vector<2x32xf32>
      %177 = arith.truncf %163 : vector<2x4xf32> to vector<2x4xbf16>
      %cst_92 = arith.constant dense<0.000000e+00> : vector<2x32xf32>
      %178 = tpu.matmul %177, %6, %cst_92 {dimension_numbers = #tpu.dot_dimension_numbers<[1], [0], [0], [1], [0, 0, 1, 1], [], []>} : vector<2x4xbf16>, vector<4x32xbf16>, vector<2x32xf32> -> vector<2x32xf32>
      %179 = arith.addf %176, %178 : vector<2x32xf32>
      %180 = arith.truncf %164 : vector<2x4xf32> to vector<2x4xbf16>
      %cst_93 = arith.constant dense<0.000000e+00> : vector<2x32xf32>
      %181 = tpu.matmul %180, %7, %cst_93 {dimension_numbers = #tpu.dot_dimension_numbers<[1], [0], [0], [1], [0, 0, 1, 1], [], []>} : vector<2x4xbf16>, vector<4x32xbf16>, vector<2x32xf32> -> vector<2x32xf32>
      %182 = arith.addf %179, %181 : vector<2x32xf32>
      %cst_94 = arith.constant 0.000000e+00 : f32
      %183 = vector.broadcast %cst_94 : f32 to vector<2x32xf32>
      %184 = arith.maximumf %182, %183 : vector<2x32xf32>
      %185 = arith.truncf %184 : vector<2x32xf32> to vector<2x32xbf16>
      %cst_95 = arith.constant dense<0.000000e+00> : vector<2x32xf32>
      %186 = tpu.matmul %185, %8, %cst_95 {dimension_numbers = #tpu.dot_dimension_numbers<[1], [0], [0], [1], [0, 0, 1, 1], [], []>} : vector<2x32xbf16>, vector<32x32xbf16>, vector<2x32xf32> -> vector<2x32xf32>
      %187 = arith.addf %186, %17 : vector<2x32xf32>
      %cst_96 = arith.constant 0.000000e+00 : f32
      %188 = vector.broadcast %cst_96 : f32 to vector<2x32xf32>
      %189 = arith.maximumf %187, %188 : vector<2x32xf32>
      %190 = arith.truncf %189 : vector<2x32xf32> to vector<2x32xbf16>
      %cst_97 = arith.constant dense<0.000000e+00> : vector<2x32xf32>
      %191 = tpu.matmul %190, %9, %cst_97 {dimension_numbers = #tpu.dot_dimension_numbers<[1], [0], [0], [1], [0, 0, 1, 1], [], []>} : vector<2x32xbf16>, vector<32x32xbf16>, vector<2x32xf32> -> vector<2x32xf32>
      %192 = arith.addf %191, %20 : vector<2x32xf32>
      %cst_98 = arith.constant 0.000000e+00 : f32
      %193 = vector.broadcast %cst_98 : f32 to vector<2x32xf32>
      %194 = arith.maximumf %192, %193 : vector<2x32xf32>
      %195 = arith.truncf %194 : vector<2x32xf32> to vector<2x32xbf16>
      %cst_99 = arith.constant dense<0.000000e+00> : vector<2x32xf32>
      %196 = tpu.matmul %195, %10, %cst_99 {dimension_numbers = #tpu.dot_dimension_numbers<[1], [0], [0], [1], [0, 0, 1, 1], [], []>} : vector<2x32xbf16>, vector<32x32xbf16>, vector<2x32xf32> -> vector<2x32xf32>
      %197 = arith.truncf %141 : vector<2x32xf32> to vector<2x32xbf16>
      %cst_100 = arith.constant dense<0.000000e+00> : vector<2x32xf32>
      %198 = tpu.matmul %197, %11, %cst_100 {dimension_numbers = #tpu.dot_dimension_numbers<[1], [0], [0], [1], [0, 0, 1, 1], [], []>} : vector<2x32xbf16>, vector<32x32xbf16>, vector<2x32xf32> -> vector<2x32xf32>
      %199 = arith.addf %196, %198 : vector<2x32xf32>
      %200 = arith.addf %199, %23 : vector<2x32xf32>
      %201 = math.tanh %200 : vector<2x32xf32>
      %cst_101 = arith.constant 0.000000e+00 : f32
      %202 = vector.broadcast %cst_101 : f32 to vector<2x32xf32>
      %203 = arith.maximumf %201, %202 : vector<2x32xf32>
      %204 = arith.truncf %203 : vector<2x32xf32> to vector<2x32xbf16>
      %cst_102 = arith.constant dense<0.000000e+00> : vector<2x32xf32>
      %205 = tpu.matmul %204, %12, %cst_102 {dimension_numbers = #tpu.dot_dimension_numbers<[1], [0], [0], [1], [0, 0, 1, 1], [], []>} : vector<2x32xbf16>, vector<32x32xbf16>, vector<2x32xf32> -> vector<2x32xf32>
      %206 = arith.addf %205, %26 : vector<2x32xf32>
      %cst_103 = arith.constant 0.000000e+00 : f32
      %207 = vector.broadcast %cst_103 : f32 to vector<2x32xf32>
      %208 = arith.maximumf %206, %207 : vector<2x32xf32>
      %209 = arith.truncf %208 : vector<2x32xf32> to vector<2x32xbf16>
      %cst_104 = arith.constant dense<0.000000e+00> : vector<2x32xf32>
      %210 = tpu.matmul %209, %13, %cst_104 {dimension_numbers = #tpu.dot_dimension_numbers<[1], [0], [0], [1], [0, 0, 1, 1], [], []>} : vector<2x32xbf16>, vector<32x32xbf16>, vector<2x32xf32> -> vector<2x32xf32>
      %211 = arith.addf %210, %29 : vector<2x32xf32>
      %cst_105 = arith.constant 0.000000e+00 : f32
      %212 = vector.broadcast %cst_105 : f32 to vector<2x32xf32>
      %213 = arith.maximumf %211, %212 : vector<2x32xf32>
      %214 = arith.truncf %213 : vector<2x32xf32> to vector<2x32xbf16>
      %cst_106 = arith.constant dense<0.000000e+00> : vector<2x4xf32>
      %215 = tpu.matmul %214, %14, %cst_106 {dimension_numbers = #tpu.dot_dimension_numbers<[1], [0], [0], [1], [0, 0, 1, 1], [], []>} : vector<2x32xbf16>, vector<32x4xbf16>, vector<2x4xf32> -> vector<2x4xf32>
      %216 = arith.addf %215, %32 : vector<2x4xf32>
      %217 = arith.index_cast %c2_i32 : i32 to index
      %c0_107 = arith.constant 0 : index
      %c0_108 = arith.constant 0 : index
      %218 = vector.load %arg21[%217, %c0_107, %c0_108] : memref<4x2x4xf32, #tpu.memory_space<vmem>>, vector<1x2x4xf32>
      %219 = vector.shape_cast %218 : vector<1x2x4xf32> to vector<2x4xf32>
      %220 = vector.shape_cast %216 : vector<2x4xf32> to vector<1x2x4xf32>
      tpu.vector_store %arg21[%217, %c0_107, %c0_108], %220 {strides = array<i32>} : memref<4x2x4xf32, #tpu.memory_space<vmem>>, vector<1x2x4xf32>,
      %c3_i32 = arith.constant 3 : i32
      %221 = arith.mulf %216, %216 : vector<2x4xf32>
      %222 = arith.mulf %221, %216 : vector<2x4xf32>
      %223 = arith.mulf %221, %221 : vector<2x4xf32>
      %224 = arith.mulf %223, %216 : vector<2x4xf32>
      %225 = arith.index_cast %c3_i32 : i32 to index
      %c0_109 = arith.constant 0 : index
      %c0_110 = arith.constant 0 : index
      %226 = vector.load %arg1[%225, %c0_109, %c0_110] : memref<4x2x32xf32, #tpu.memory_space<vmem>>, vector<1x2x32xf32>
      %227 = vector.shape_cast %226 : vector<1x2x32xf32> to vector<2x32xf32>
      %228 = arith.truncf %216 : vector<2x4xf32> to vector<2x4xbf16>
      %cst_111 = arith.constant dense<0.000000e+00> : vector<2x32xf32>
      %229 = tpu.matmul %228, %3, %cst_111 {dimension_numbers = #tpu.dot_dimension_numbers<[1], [0], [0], [1], [0, 0, 1, 1], [], []>} : vector<2x4xbf16>, vector<4x32xbf16>, vector<2x32xf32> -> vector<2x32xf32>
      %230 = arith.addf %227, %229 : vector<2x32xf32>
      %231 = arith.truncf %221 : vector<2x4xf32> to vector<2x4xbf16>
      %cst_112 = arith.constant dense<0.000000e+00> : vector<2x32xf32>
      %232 = tpu.matmul %231, %4, %cst_112 {dimension_numbers = #tpu.dot_dimension_numbers<[1], [0], [0], [1], [0, 0, 1, 1], [], []>} : vector<2x4xbf16>, vector<4x32xbf16>, vector<2x32xf32> -> vector<2x32xf32>
      %233 = arith.addf %230, %232 : vector<2x32xf32>
      %234 = arith.truncf %222 : vector<2x4xf32> to vector<2x4xbf16>
      %cst_113 = arith.constant dense<0.000000e+00> : vector<2x32xf32>
      %235 = tpu.matmul %234, %5, %cst_113 {dimension_numbers = #tpu.dot_dimension_numbers<[1], [0], [0], [1], [0, 0, 1, 1], [], []>} : vector<2x4xbf16>, vector<4x32xbf16>, vector<2x32xf32> -> vector<2x32xf32>
      %236 = arith.addf %233, %235 : vector<2x32xf32>
      %237 = arith.truncf %223 : vector<2x4xf32> to vector<2x4xbf16>
      %cst_114 = arith.constant dense<0.000000e+00> : vector<2x32xf32>
      %238 = tpu.matmul %237, %6, %cst_114 {dimension_numbers = #tpu.dot_dimension_numbers<[1], [0], [0], [1], [0, 0, 1, 1], [], []>} : vector<2x4xbf16>, vector<4x32xbf16>, vector<2x32xf32> -> vector<2x32xf32>
      %239 = arith.addf %236, %238 : vector<2x32xf32>
      %240 = arith.truncf %224 : vector<2x4xf32> to vector<2x4xbf16>
      %cst_115 = arith.constant dense<0.000000e+00> : vector<2x32xf32>
      %241 = tpu.matmul %240, %7, %cst_115 {dimension_numbers = #tpu.dot_dimension_numbers<[1], [0], [0], [1], [0, 0, 1, 1], [], []>} : vector<2x4xbf16>, vector<4x32xbf16>, vector<2x32xf32> -> vector<2x32xf32>
      %242 = arith.addf %239, %241 : vector<2x32xf32>
      %cst_116 = arith.constant 0.000000e+00 : f32
      %243 = vector.broadcast %cst_116 : f32 to vector<2x32xf32>
      %244 = arith.maximumf %242, %243 : vector<2x32xf32>
      %245 = arith.truncf %244 : vector<2x32xf32> to vector<2x32xbf16>
      %cst_117 = arith.constant dense<0.000000e+00> : vector<2x32xf32>
      %246 = tpu.matmul %245, %8, %cst_117 {dimension_numbers = #tpu.dot_dimension_numbers<[1], [0], [0], [1], [0, 0, 1, 1], [], []>} : vector<2x32xbf16>, vector<32x32xbf16>, vector<2x32xf32> -> vector<2x32xf32>
      %247 = arith.addf %246, %17 : vector<2x32xf32>
      %cst_118 = arith.constant 0.000000e+00 : f32
      %248 = vector.broadcast %cst_118 : f32 to vector<2x32xf32>
      %249 = arith.maximumf %247, %248 : vector<2x32xf32>
      %250 = arith.truncf %249 : vector<2x32xf32> to vector<2x32xbf16>
      %cst_119 = arith.constant dense<0.000000e+00> : vector<2x32xf32>
      %251 = tpu.matmul %250, %9, %cst_119 {dimension_numbers = #tpu.dot_dimension_numbers<[1], [0], [0], [1], [0, 0, 1, 1], [], []>} : vector<2x32xbf16>, vector<32x32xbf16>, vector<2x32xf32> -> vector<2x32xf32>
      %252 = arith.addf %251, %20 : vector<2x32xf32>
      %cst_120 = arith.constant 0.000000e+00 : f32
      %253 = vector.broadcast %cst_120 : f32 to vector<2x32xf32>
      %254 = arith.maximumf %252, %253 : vector<2x32xf32>
      %255 = arith.truncf %254 : vector<2x32xf32> to vector<2x32xbf16>
      %cst_121 = arith.constant dense<0.000000e+00> : vector<2x32xf32>
      %256 = tpu.matmul %255, %10, %cst_121 {dimension_numbers = #tpu.dot_dimension_numbers<[1], [0], [0], [1], [0, 0, 1, 1], [], []>} : vector<2x32xbf16>, vector<32x32xbf16>, vector<2x32xf32> -> vector<2x32xf32>
      %257 = arith.truncf %201 : vector<2x32xf32> to vector<2x32xbf16>
      %cst_122 = arith.constant dense<0.000000e+00> : vector<2x32xf32>
      %258 = tpu.matmul %257, %11, %cst_122 {dimension_numbers = #tpu.dot_dimension_numbers<[1], [0], [0], [1], [0, 0, 1, 1], [], []>} : vector<2x32xbf16>, vector<32x32xbf16>, vector<2x32xf32> -> vector<2x32xf32>
      %259 = arith.addf %256, %258 : vector<2x32xf32>
      %260 = arith.addf %259, %23 : vector<2x32xf32>
      %261 = math.tanh %260 : vector<2x32xf32>
      %cst_123 = arith.constant 0.000000e+00 : f32
      %262 = vector.broadcast %cst_123 : f32 to vector<2x32xf32>
      %263 = arith.maximumf %261, %262 : vector<2x32xf32>
      %264 = arith.truncf %263 : vector<2x32xf32> to vector<2x32xbf16>
      %cst_124 = arith.constant dense<0.000000e+00> : vector<2x32xf32>
      %265 = tpu.matmul %264, %12, %cst_124 {dimension_numbers = #tpu.dot_dimension_numbers<[1], [0], [0], [1], [0, 0, 1, 1], [], []>} : vector<2x32xbf16>, vector<32x32xbf16>, vector<2x32xf32> -> vector<2x32xf32>
      %266 = arith.addf %265, %26 : vector<2x32xf32>
      %cst_125 = arith.constant 0.000000e+00 : f32
      %267 = vector.broadcast %cst_125 : f32 to vector<2x32xf32>
      %268 = arith.maximumf %266, %267 : vector<2x32xf32>
      %269 = arith.truncf %268 : vector<2x32xf32> to vector<2x32xbf16>
      %cst_126 = arith.constant dense<0.000000e+00> : vector<2x32xf32>
      %270 = tpu.matmul %269, %13, %cst_126 {dimension_numbers = #tpu.dot_dimension_numbers<[1], [0], [0], [1], [0, 0, 1, 1], [], []>} : vector<2x32xbf16>, vector<32x32xbf16>, vector<2x32xf32> -> vector<2x32xf32>
      %271 = arith.addf %270, %29 : vector<2x32xf32>
      %cst_127 = arith.constant 0.000000e+00 : f32
      %272 = vector.broadcast %cst_127 : f32 to vector<2x32xf32>
      %273 = arith.maximumf %271, %272 : vector<2x32xf32>
      %274 = arith.truncf %273 : vector<2x32xf32> to vector<2x32xbf16>
      %cst_128 = arith.constant dense<0.000000e+00> : vector<2x4xf32>
      %275 = tpu.matmul %274, %14, %cst_128 {dimension_numbers = #tpu.dot_dimension_numbers<[1], [0], [0], [1], [0, 0, 1, 1], [], []>} : vector<2x32xbf16>, vector<32x4xbf16>, vector<2x4xf32> -> vector<2x4xf32>
      %276 = arith.addf %275, %32 : vector<2x4xf32>
      %277 = arith.index_cast %c3_i32 : i32 to index
      %c0_129 = arith.constant 0 : index
      %c0_130 = arith.constant 0 : index
      %278 = vector.load %arg21[%277, %c0_129, %c0_130] : memref<4x2x4xf32, #tpu.memory_space<vmem>>, vector<1x2x4xf32>
      %279 = vector.shape_cast %278 : vector<1x2x4xf32> to vector<2x4xf32>
      %280 = vector.shape_cast %276 : vector<2x4xf32> to vector<1x2x4xf32>
      tpu.vector_store %arg21[%277, %c0_129, %c0_130], %280 {strides = array<i32>} : memref<4x2x4xf32, #tpu.memory_space<vmem>>, vector<1x2x4xf32>,
      %c4_i32 = arith.constant 4 : i32
      %c0_131 = arith.constant 0 : index
      %c0_132 = arith.constant 0 : index
      %281 = vector.load %arg22[%c0_131, %c0_132] : memref<2x32xf32, #tpu.memory_space<vmem>>, vector<2x32xf32>
      tpu.vector_store %arg22[%c0_131, %c0_132], %261 {strides = array<i32>} : memref<2x32xf32, #tpu.memory_space<vmem>>, vector<2x32xf32>,
      %c0_133 = arith.constant 0 : index
      %c0_134 = arith.constant 0 : index
      %282 = vector.load %arg23[%c0_133, %c0_134] : memref<2x4xf32, #tpu.memory_space<vmem>>, vector<2x4xf32>
      tpu.vector_store %arg23[%c0_133, %c0_134], %276 {strides = array<i32>} : memref<2x4xf32, #tpu.memory_space<vmem>>, vector<2x4xf32>,
    } else {
    }
    %37 = arith.extui %33 : i1 to i32
    %c0_i32_37 = arith.constant 0 : i32
    %38 = arith.cmpi ne, %37, %c0_i32_37 : i32
    scf.if %38 {
      %c0_38 = arith.constant 0 : index
      %c0_39 = arith.constant 0 : index
      %39 = vector.load %arg22[%c0_38, %c0_39] : memref<2x32xf32, #tpu.memory_space<vmem>>, vector<2x32xf32>
      %c0_40 = arith.constant 0 : index
      %c0_41 = arith.constant 0 : index
      %40 = vector.load %arg23[%c0_40, %c0_41] : memref<2x4xf32, #tpu.memory_space<vmem>>, vector<2x4xf32>
      %c0_i32_42 = arith.constant 0 : i32
      %41 = arith.mulf %40, %40 : vector<2x4xf32>
      %42 = arith.mulf %41, %40 : vector<2x4xf32>
      %43 = arith.mulf %41, %41 : vector<2x4xf32>
      %44 = arith.mulf %43, %40 : vector<2x4xf32>
      %45 = arith.index_cast %c0_i32_42 : i32 to index
      %c0_43 = arith.constant 0 : index
      %c0_44 = arith.constant 0 : index
      %46 = vector.load %arg1[%45, %c0_43, %c0_44] : memref<4x2x32xf32, #tpu.memory_space<vmem>>, vector<1x2x32xf32>
      %47 = vector.shape_cast %46 : vector<1x2x32xf32> to vector<2x32xf32>
      %48 = arith.truncf %40 : vector<2x4xf32> to vector<2x4xbf16>
      %cst = arith.constant dense<0.000000e+00> : vector<2x32xf32>
      %49 = tpu.matmul %48, %3, %cst {dimension_numbers = #tpu.dot_dimension_numbers<[1], [0], [0], [1], [0, 0, 1, 1], [], []>} : vector<2x4xbf16>, vector<4x32xbf16>, vector<2x32xf32> -> vector<2x32xf32>
      %50 = arith.addf %47, %49 : vector<2x32xf32>
      %51 = arith.truncf %41 : vector<2x4xf32> to vector<2x4xbf16>
      %cst_45 = arith.constant dense<0.000000e+00> : vector<2x32xf32>
      %52 = tpu.matmul %51, %4, %cst_45 {dimension_numbers = #tpu.dot_dimension_numbers<[1], [0], [0], [1], [0, 0, 1, 1], [], []>} : vector<2x4xbf16>, vector<4x32xbf16>, vector<2x32xf32> -> vector<2x32xf32>
      %53 = arith.addf %50, %52 : vector<2x32xf32>
      %54 = arith.truncf %42 : vector<2x4xf32> to vector<2x4xbf16>
      %cst_46 = arith.constant dense<0.000000e+00> : vector<2x32xf32>
      %55 = tpu.matmul %54, %5, %cst_46 {dimension_numbers = #tpu.dot_dimension_numbers<[1], [0], [0], [1], [0, 0, 1, 1], [], []>} : vector<2x4xbf16>, vector<4x32xbf16>, vector<2x32xf32> -> vector<2x32xf32>
      %56 = arith.addf %53, %55 : vector<2x32xf32>
      %57 = arith.truncf %43 : vector<2x4xf32> to vector<2x4xbf16>
      %cst_47 = arith.constant dense<0.000000e+00> : vector<2x32xf32>
      %58 = tpu.matmul %57, %6, %cst_47 {dimension_numbers = #tpu.dot_dimension_numbers<[1], [0], [0], [1], [0, 0, 1, 1], [], []>} : vector<2x4xbf16>, vector<4x32xbf16>, vector<2x32xf32> -> vector<2x32xf32>
      %59 = arith.addf %56, %58 : vector<2x32xf32>
      %60 = arith.truncf %44 : vector<2x4xf32> to vector<2x4xbf16>
      %cst_48 = arith.constant dense<0.000000e+00> : vector<2x32xf32>
      %61 = tpu.matmul %60, %7, %cst_48 {dimension_numbers = #tpu.dot_dimension_numbers<[1], [0], [0], [1], [0, 0, 1, 1], [], []>} : vector<2x4xbf16>, vector<4x32xbf16>, vector<2x32xf32> -> vector<2x32xf32>
      %62 = arith.addf %59, %61 : vector<2x32xf32>
      %cst_49 = arith.constant 0.000000e+00 : f32
      %63 = vector.broadcast %cst_49 : f32 to vector<2x32xf32>
      %64 = arith.maximumf %62, %63 : vector<2x32xf32>
      %65 = arith.truncf %64 : vector<2x32xf32> to vector<2x32xbf16>
      %cst_50 = arith.constant dense<0.000000e+00> : vector<2x32xf32>
      %66 = tpu.matmul %65, %8, %cst_50 {dimension_numbers = #tpu.dot_dimension_numbers<[1], [0], [0], [1], [0, 0, 1, 1], [], []>} : vector<2x32xbf16>, vector<32x32xbf16>, vector<2x32xf32> -> vector<2x32xf32>
      %67 = arith.addf %66, %17 : vector<2x32xf32>
      %cst_51 = arith.constant 0.000000e+00 : f32
      %68 = vector.broadcast %cst_51 : f32 to vector<2x32xf32>
      %69 = arith.maximumf %67, %68 : vector<2x32xf32>
      %70 = arith.truncf %69 : vector<2x32xf32> to vector<2x32xbf16>
      %cst_52 = arith.constant dense<0.000000e+00> : vector<2x32xf32>
      %71 = tpu.matmul %70, %9, %cst_52 {dimension_numbers = #tpu.dot_dimension_numbers<[1], [0], [0], [1], [0, 0, 1, 1], [], []>} : vector<2x32xbf16>, vector<32x32xbf16>, vector<2x32xf32> -> vector<2x32xf32>
      %72 = arith.addf %71, %20 : vector<2x32xf32>
      %cst_53 = arith.constant 0.000000e+00 : f32
      %73 = vector.broadcast %cst_53 : f32 to vector<2x32xf32>
      %74 = arith.maximumf %72, %73 : vector<2x32xf32>
      %75 = arith.truncf %74 : vector<2x32xf32> to vector<2x32xbf16>
      %cst_54 = arith.constant dense<0.000000e+00> : vector<2x32xf32>
      %76 = tpu.matmul %75, %10, %cst_54 {dimension_numbers = #tpu.dot_dimension_numbers<[1], [0], [0], [1], [0, 0, 1, 1], [], []>} : vector<2x32xbf16>, vector<32x32xbf16>, vector<2x32xf32> -> vector<2x32xf32>
      %77 = arith.truncf %39 : vector<2x32xf32> to vector<2x32xbf16>
      %cst_55 = arith.constant dense<0.000000e+00> : vector<2x32xf32>
      %78 = tpu.matmul %77, %11, %cst_55 {dimension_numbers = #tpu.dot_dimension_numbers<[1], [0], [0], [1], [0, 0, 1, 1], [], []>} : vector<2x32xbf16>, vector<32x32xbf16>, vector<2x32xf32> -> vector<2x32xf32>
      %79 = arith.addf %76, %78 : vector<2x32xf32>
      %80 = arith.addf %79, %23 : vector<2x32xf32>
      %81 = math.tanh %80 : vector<2x32xf32>
      %cst_56 = arith.constant 0.000000e+00 : f32
      %82 = vector.broadcast %cst_56 : f32 to vector<2x32xf32>
      %83 = arith.maximumf %81, %82 : vector<2x32xf32>
      %84 = arith.truncf %83 : vector<2x32xf32> to vector<2x32xbf16>
      %cst_57 = arith.constant dense<0.000000e+00> : vector<2x32xf32>
      %85 = tpu.matmul %84, %12, %cst_57 {dimension_numbers = #tpu.dot_dimension_numbers<[1], [0], [0], [1], [0, 0, 1, 1], [], []>} : vector<2x32xbf16>, vector<32x32xbf16>, vector<2x32xf32> -> vector<2x32xf32>
      %86 = arith.addf %85, %26 : vector<2x32xf32>
      %cst_58 = arith.constant 0.000000e+00 : f32
      %87 = vector.broadcast %cst_58 : f32 to vector<2x32xf32>
      %88 = arith.maximumf %86, %87 : vector<2x32xf32>
      %89 = arith.truncf %88 : vector<2x32xf32> to vector<2x32xbf16>
      %cst_59 = arith.constant dense<0.000000e+00> : vector<2x32xf32>
      %90 = tpu.matmul %89, %13, %cst_59 {dimension_numbers = #tpu.dot_dimension_numbers<[1], [0], [0], [1], [0, 0, 1, 1], [], []>} : vector<2x32xbf16>, vector<32x32xbf16>, vector<2x32xf32> -> vector<2x32xf32>
      %91 = arith.addf %90, %29 : vector<2x32xf32>
      %cst_60 = arith.constant 0.000000e+00 : f32
      %92 = vector.broadcast %cst_60 : f32 to vector<2x32xf32>
      %93 = arith.maximumf %91, %92 : vector<2x32xf32>
      %94 = arith.truncf %93 : vector<2x32xf32> to vector<2x32xbf16>
      %cst_61 = arith.constant dense<0.000000e+00> : vector<2x4xf32>
      %95 = tpu.matmul %94, %14, %cst_61 {dimension_numbers = #tpu.dot_dimension_numbers<[1], [0], [0], [1], [0, 0, 1, 1], [], []>} : vector<2x32xbf16>, vector<32x4xbf16>, vector<2x4xf32> -> vector<2x4xf32>
      %96 = arith.addf %95, %32 : vector<2x4xf32>
      %97 = arith.index_cast %c0_i32_42 : i32 to index
      %c0_62 = arith.constant 0 : index
      %c0_63 = arith.constant 0 : index
      %98 = vector.load %arg21[%97, %c0_62, %c0_63] : memref<4x2x4xf32, #tpu.memory_space<vmem>>, vector<1x2x4xf32>
      %99 = vector.shape_cast %98 : vector<1x2x4xf32> to vector<2x4xf32>
      %100 = vector.shape_cast %96 : vector<2x4xf32> to vector<1x2x4xf32>
      tpu.vector_store %arg21[%97, %c0_62, %c0_63], %100 {strides = array<i32>} : memref<4x2x4xf32, #tpu.memory_space<vmem>>, vector<1x2x4xf32>,
      %c1_i32_64 = arith.constant 1 : i32
      %101 = arith.mulf %96, %96 : vector<2x4xf32>
      %102 = arith.mulf %101, %96 : vector<2x4xf32>
      %103 = arith.mulf %101, %101 : vector<2x4xf32>
      %104 = arith.mulf %103, %96 : vector<2x4xf32>
      %105 = arith.index_cast %c1_i32_64 : i32 to index
      %c0_65 = arith.constant 0 : index
      %c0_66 = arith.constant 0 : index
      %106 = vector.load %arg1[%105, %c0_65, %c0_66] : memref<4x2x32xf32, #tpu.memory_space<vmem>>, vector<1x2x32xf32>
      %107 = vector.shape_cast %106 : vector<1x2x32xf32> to vector<2x32xf32>
      %108 = arith.truncf %96 : vector<2x4xf32> to vector<2x4xbf16>
      %cst_67 = arith.constant dense<0.000000e+00> : vector<2x32xf32>
      %109 = tpu.matmul %108, %3, %cst_67 {dimension_numbers = #tpu.dot_dimension_numbers<[1], [0], [0], [1], [0, 0, 1, 1], [], []>} : vector<2x4xbf16>, vector<4x32xbf16>, vector<2x32xf32> -> vector<2x32xf32>
      %110 = arith.addf %107, %109 : vector<2x32xf32>
      %111 = arith.truncf %101 : vector<2x4xf32> to vector<2x4xbf16>
      %cst_68 = arith.constant dense<0.000000e+00> : vector<2x32xf32>
      %112 = tpu.matmul %111, %4, %cst_68 {dimension_numbers = #tpu.dot_dimension_numbers<[1], [0], [0], [1], [0, 0, 1, 1], [], []>} : vector<2x4xbf16>, vector<4x32xbf16>, vector<2x32xf32> -> vector<2x32xf32>
      %113 = arith.addf %110, %112 : vector<2x32xf32>
      %114 = arith.truncf %102 : vector<2x4xf32> to vector<2x4xbf16>
      %cst_69 = arith.constant dense<0.000000e+00> : vector<2x32xf32>
      %115 = tpu.matmul %114, %5, %cst_69 {dimension_numbers = #tpu.dot_dimension_numbers<[1], [0], [0], [1], [0, 0, 1, 1], [], []>} : vector<2x4xbf16>, vector<4x32xbf16>, vector<2x32xf32> -> vector<2x32xf32>
      %116 = arith.addf %113, %115 : vector<2x32xf32>
      %117 = arith.truncf %103 : vector<2x4xf32> to vector<2x4xbf16>
      %cst_70 = arith.constant dense<0.000000e+00> : vector<2x32xf32>
      %118 = tpu.matmul %117, %6, %cst_70 {dimension_numbers = #tpu.dot_dimension_numbers<[1], [0], [0], [1], [0, 0, 1, 1], [], []>} : vector<2x4xbf16>, vector<4x32xbf16>, vector<2x32xf32> -> vector<2x32xf32>
      %119 = arith.addf %116, %118 : vector<2x32xf32>
      %120 = arith.truncf %104 : vector<2x4xf32> to vector<2x4xbf16>
      %cst_71 = arith.constant dense<0.000000e+00> : vector<2x32xf32>
      %121 = tpu.matmul %120, %7, %cst_71 {dimension_numbers = #tpu.dot_dimension_numbers<[1], [0], [0], [1], [0, 0, 1, 1], [], []>} : vector<2x4xbf16>, vector<4x32xbf16>, vector<2x32xf32> -> vector<2x32xf32>
      %122 = arith.addf %119, %121 : vector<2x32xf32>
      %cst_72 = arith.constant 0.000000e+00 : f32
      %123 = vector.broadcast %cst_72 : f32 to vector<2x32xf32>
      %124 = arith.maximumf %122, %123 : vector<2x32xf32>
      %125 = arith.truncf %124 : vector<2x32xf32> to vector<2x32xbf16>
      %cst_73 = arith.constant dense<0.000000e+00> : vector<2x32xf32>
      %126 = tpu.matmul %125, %8, %cst_73 {dimension_numbers = #tpu.dot_dimension_numbers<[1], [0], [0], [1], [0, 0, 1, 1], [], []>} : vector<2x32xbf16>, vector<32x32xbf16>, vector<2x32xf32> -> vector<2x32xf32>
      %127 = arith.addf %126, %17 : vector<2x32xf32>
      %cst_74 = arith.constant 0.000000e+00 : f32
      %128 = vector.broadcast %cst_74 : f32 to vector<2x32xf32>
      %129 = arith.maximumf %127, %128 : vector<2x32xf32>
      %130 = arith.truncf %129 : vector<2x32xf32> to vector<2x32xbf16>
      %cst_75 = arith.constant dense<0.000000e+00> : vector<2x32xf32>
      %131 = tpu.matmul %130, %9, %cst_75 {dimension_numbers = #tpu.dot_dimension_numbers<[1], [0], [0], [1], [0, 0, 1, 1], [], []>} : vector<2x32xbf16>, vector<32x32xbf16>, vector<2x32xf32> -> vector<2x32xf32>
      %132 = arith.addf %131, %20 : vector<2x32xf32>
      %cst_76 = arith.constant 0.000000e+00 : f32
      %133 = vector.broadcast %cst_76 : f32 to vector<2x32xf32>
      %134 = arith.maximumf %132, %133 : vector<2x32xf32>
      %135 = arith.truncf %134 : vector<2x32xf32> to vector<2x32xbf16>
      %cst_77 = arith.constant dense<0.000000e+00> : vector<2x32xf32>
      %136 = tpu.matmul %135, %10, %cst_77 {dimension_numbers = #tpu.dot_dimension_numbers<[1], [0], [0], [1], [0, 0, 1, 1], [], []>} : vector<2x32xbf16>, vector<32x32xbf16>, vector<2x32xf32> -> vector<2x32xf32>
      %137 = arith.truncf %81 : vector<2x32xf32> to vector<2x32xbf16>
      %cst_78 = arith.constant dense<0.000000e+00> : vector<2x32xf32>
      %138 = tpu.matmul %137, %11, %cst_78 {dimension_numbers = #tpu.dot_dimension_numbers<[1], [0], [0], [1], [0, 0, 1, 1], [], []>} : vector<2x32xbf16>, vector<32x32xbf16>, vector<2x32xf32> -> vector<2x32xf32>
      %139 = arith.addf %136, %138 : vector<2x32xf32>
      %140 = arith.addf %139, %23 : vector<2x32xf32>
      %141 = math.tanh %140 : vector<2x32xf32>
      %cst_79 = arith.constant 0.000000e+00 : f32
      %142 = vector.broadcast %cst_79 : f32 to vector<2x32xf32>
      %143 = arith.maximumf %141, %142 : vector<2x32xf32>
      %144 = arith.truncf %143 : vector<2x32xf32> to vector<2x32xbf16>
      %cst_80 = arith.constant dense<0.000000e+00> : vector<2x32xf32>
      %145 = tpu.matmul %144, %12, %cst_80 {dimension_numbers = #tpu.dot_dimension_numbers<[1], [0], [0], [1], [0, 0, 1, 1], [], []>} : vector<2x32xbf16>, vector<32x32xbf16>, vector<2x32xf32> -> vector<2x32xf32>
      %146 = arith.addf %145, %26 : vector<2x32xf32>
      %cst_81 = arith.constant 0.000000e+00 : f32
      %147 = vector.broadcast %cst_81 : f32 to vector<2x32xf32>
      %148 = arith.maximumf %146, %147 : vector<2x32xf32>
      %149 = arith.truncf %148 : vector<2x32xf32> to vector<2x32xbf16>
      %cst_82 = arith.constant dense<0.000000e+00> : vector<2x32xf32>
      %150 = tpu.matmul %149, %13, %cst_82 {dimension_numbers = #tpu.dot_dimension_numbers<[1], [0], [0], [1], [0, 0, 1, 1], [], []>} : vector<2x32xbf16>, vector<32x32xbf16>, vector<2x32xf32> -> vector<2x32xf32>
      %151 = arith.addf %150, %29 : vector<2x32xf32>
      %cst_83 = arith.constant 0.000000e+00 : f32
      %152 = vector.broadcast %cst_83 : f32 to vector<2x32xf32>
      %153 = arith.maximumf %151, %152 : vector<2x32xf32>
      %154 = arith.truncf %153 : vector<2x32xf32> to vector<2x32xbf16>
      %cst_84 = arith.constant dense<0.000000e+00> : vector<2x4xf32>
      %155 = tpu.matmul %154, %14, %cst_84 {dimension_numbers = #tpu.dot_dimension_numbers<[1], [0], [0], [1], [0, 0, 1, 1], [], []>} : vector<2x32xbf16>, vector<32x4xbf16>, vector<2x4xf32> -> vector<2x4xf32>
      %156 = arith.addf %155, %32 : vector<2x4xf32>
      %157 = arith.index_cast %c1_i32_64 : i32 to index
      %c0_85 = arith.constant 0 : index
      %c0_86 = arith.constant 0 : index
      %158 = vector.load %arg21[%157, %c0_85, %c0_86] : memref<4x2x4xf32, #tpu.memory_space<vmem>>, vector<1x2x4xf32>
      %159 = vector.shape_cast %158 : vector<1x2x4xf32> to vector<2x4xf32>
      %160 = vector.shape_cast %156 : vector<2x4xf32> to vector<1x2x4xf32>
      tpu.vector_store %arg21[%157, %c0_85, %c0_86], %160 {strides = array<i32>} : memref<4x2x4xf32, #tpu.memory_space<vmem>>, vector<1x2x4xf32>,
      %c2_i32 = arith.constant 2 : i32
      %c0_87 = arith.constant 0 : index
      %c0_88 = arith.constant 0 : index
      %161 = vector.load %arg22[%c0_87, %c0_88] : memref<2x32xf32, #tpu.memory_space<vmem>>, vector<2x32xf32>
      tpu.vector_store %arg22[%c0_87, %c0_88], %141 {strides = array<i32>} : memref<2x32xf32, #tpu.memory_space<vmem>>, vector<2x32xf32>,
      %c0_89 = arith.constant 0 : index
      %c0_90 = arith.constant 0 : index
      %162 = vector.load %arg23[%c0_89, %c0_90] : memref<2x4xf32, #tpu.memory_space<vmem>>, vector<2x4xf32>
      tpu.vector_store %arg23[%c0_89, %c0_90], %156 {strides = array<i32>} : memref<2x4xf32, #tpu.memory_space<vmem>>, vector<2x4xf32>,
    } else {
    }
    return
  }
  func.func @transform_0(%arg0: i32) -> (i32, i32, i32) {
    %c0_i32 = arith.constant 0 : i32
    %c0_i32_0 = arith.constant 0 : i32
    %c0_i32_1 = arith.constant 0 : i32
    return %arg0, %c0_i32, %c0_i32_0 : i32, i32, i32
  }
  func.func @transform_1(%arg0: i32) -> (i32, i32) {
    %c0_i32 = arith.constant 0 : i32
    %c0_i32_0 = arith.constant 0 : i32
    %c0_i32_1 = arith.constant 0 : i32
    return %c0_i32, %c0_i32_0 : i32, i32
  }
  func.func @transform_2(%arg0: i32) -> (i32, i32) {
    %c0_i32 = arith.constant 0 : i32
    %c0_i32_0 = arith.constant 0 : i32
    %c0_i32_1 = arith.constant 0 : i32
    return %c0_i32, %c0_i32_0 : i32, i32
  }
  func.func @transform_3(%arg0: i32) -> (i32, i32) {
    %c0_i32 = arith.constant 0 : i32
    %c0_i32_0 = arith.constant 0 : i32
    %c0_i32_1 = arith.constant 0 : i32
    return %c0_i32, %c0_i32_0 : i32, i32
  }
  func.func @transform_4(%arg0: i32) -> (i32, i32) {
    %c0_i32 = arith.constant 0 : i32
    %c0_i32_0 = arith.constant 0 : i32
    %c0_i32_1 = arith.constant 0 : i32
    return %c0_i32, %c0_i32_0 : i32, i32
  }
  func.func @transform_5(%arg0: i32) -> (i32, i32) {
    %c0_i32 = arith.constant 0 : i32
    %c0_i32_0 = arith.constant 0 : i32
    %c0_i32_1 = arith.constant 0 : i32
    return %c0_i32, %c0_i32_0 : i32, i32
  }
  func.func @transform_6(%arg0: i32) -> (i32, i32) {
    %c0_i32 = arith.constant 0 : i32
    %c0_i32_0 = arith.constant 0 : i32
    %c0_i32_1 = arith.constant 0 : i32
    return %c0_i32, %c0_i32_0 : i32, i32
  }
  func.func @transform_7(%arg0: i32) -> (i32, i32) {
    %c0_i32 = arith.constant 0 : i32
    %c0_i32_0 = arith.constant 0 : i32
    %c0_i32_1 = arith.constant 0 : i32
    return %c0_i32, %c0_i32_0 : i32, i32
  }
  func.func @transform_8(%arg0: i32) -> (i32, i32) {
    %c0_i32 = arith.constant 0 : i32
    %c0_i32_0 = arith.constant 0 : i32
    %c0_i32_1 = arith.constant 0 : i32
    return %c0_i32, %c0_i32_0 : i32, i32
  }
  func.func @transform_9(%arg0: i32) -> (i32, i32) {
    %c0_i32 = arith.constant 0 : i32
    %c0_i32_0 = arith.constant 0 : i32
    %c0_i32_1 = arith.constant 0 : i32
    return %c0_i32, %c0_i32_0 : i32, i32
  }
  func.func @transform_10(%arg0: i32) -> (i32, i32) {
    %c0_i32 = arith.constant 0 : i32
    %c0_i32_0 = arith.constant 0 : i32
    %c0_i32_1 = arith.constant 0 : i32
    return %c0_i32, %c0_i32_0 : i32, i32
  }
  func.func @transform_11(%arg0: i32) -> (i32, i32) {
    %c0_i32 = arith.constant 0 : i32
    %c0_i32_0 = arith.constant 0 : i32
    %c0_i32_1 = arith.constant 0 : i32
    return %c0_i32, %c0_i32_0 : i32, i32
  }
  func.func @transform_12(%arg0: i32) -> (i32, i32) {
    %c0_i32 = arith.constant 0 : i32
    %c0_i32_0 = arith.constant 0 : i32
    %c0_i32_1 = arith.constant 0 : i32
    return %c0_i32, %c0_i32_0 : i32, i32
  }
  func.func @transform_13(%arg0: i32) -> (i32, i32) {
    %c0_i32 = arith.constant 0 : i32
    %c0_i32_0 = arith.constant 0 : i32
    %c0_i32_1 = arith.constant 0 : i32
    return %c0_i32, %c0_i32_0 : i32, i32
  }
  func.func @transform_14(%arg0: i32) -> (i32, i32) {
    %c0_i32 = arith.constant 0 : i32
    %c0_i32_0 = arith.constant 0 : i32
    %c0_i32_1 = arith.constant 0 : i32
    return %c0_i32, %c0_i32_0 : i32, i32
  }
  func.func @transform_15(%arg0: i32) -> (i32, i32) {
    %c0_i32 = arith.constant 0 : i32
    %c0_i32_0 = arith.constant 0 : i32
    %c0_i32_1 = arith.constant 0 : i32
    return %c0_i32, %c0_i32_0 : i32, i32
  }
  func.func @transform_16(%arg0: i32) -> (i32, i32) {
    %c0_i32 = arith.constant 0 : i32
    %c0_i32_0 = arith.constant 0 : i32
    %c0_i32_1 = arith.constant 0 : i32
    return %c0_i32, %c0_i32_0 : i32, i32
  }
  func.func @transform_17(%arg0: i32) -> (i32, i32) {
    %c0_i32 = arith.constant 0 : i32
    %c0_i32_0 = arith.constant 0 : i32
    %c0_i32_1 = arith.constant 0 : i32
    return %c0_i32, %c0_i32_0 : i32, i32
  }
  func.func @transform_18(%arg0: i32) -> (i32, i32) {
    %c0_i32 = arith.constant 0 : i32
    %c0_i32_0 = arith.constant 0 : i32
    %c0_i32_1 = arith.constant 0 : i32
    return %c0_i32, %c0_i32_0 : i32, i32
  }
  func.func @transform_19(%arg0: i32) -> (i32, i32) {
    %c0_i32 = arith.constant 0 : i32
    %c0_i32_0 = arith.constant 0 : i32
    %c0_i32_1 = arith.constant 0 : i32
    return %c0_i32, %c0_i32_0 : i32, i32
  }
  func.func @transform_20(%arg0: i32) -> (i32, i32, i32) {
    %c0_i32 = arith.constant 0 : i32
    %c0_i32_0 = arith.constant 0 : i32
    %c0_i32_1 = arith.constant 0 : i32
    return %arg0, %c0_i32, %c0_i32_0 : i32, i32, i32
  }
}

</mosaic_0001>

<bundles_post_ra>
// kernel: tpu_custom_call.1
= control target key start
LH: loop header
LB: loop body
LE: loop exit
PB: predicated region body
PF: predicated region fallthrough
CT: control target
= control target key end

     0   :  { %s7334_s0 = inlined_call_operand.hbm [shape: f32[6,2,32], index: 0, kind: input, shape index: {}]   ;;  %s7335_s1 = inlined_call_operand.hbm [shape: f32[2,4], index: 1, kind: input, shape index: {}]   ;;  %s7336_s2 = inlined_call_operand.hbm [shape: bf16[4,32], index: 2, kind: input, shape index: {}]   ;;  %s7337_s3 = inlined_call_operand.hbm [shape: bf16[4,32], index: 3, kind: input, shape index: {}]   ;;  %s7338_s4 = inlined_call_operand.hbm [shape: bf16[4,32], index: 4, kind: input, shape index: {}]   ;;  %s7339_s5 = inlined_call_operand.hbm [shape: bf16[4,32], index: 5, kind: input, shape index: {}]   ;;  %s7340_s6 = inlined_call_operand.hbm [shape: bf16[4,32], index: 6, kind: input, shape index: {}]   ;;  %s7341_s7 = inlined_call_operand.vmem [shape: bf16[32,32], index: 7, kind: input, shape index: {}]   ;;  %s7342_s8 = inlined_call_operand.hbm [shape: f32[1,32], index: 8, kind: input, shape index: {}]   ;;  %s7343_s9 = inlined_call_operand.vmem [shape: bf16[32,32], index: 9, kind: input, shape index: {}]   ;;  %s7344_s10 = inlined_call_operand.vmem [shape: f32[1,32], index: 10, kind: input, shape index: {}]   ;;  %s7345_s11 = inlined_call_operand.vmem [shape: bf16[32,32], index: 11, kind: input, shape index: {}]   ;;  %s7346_s12 = inlined_call_operand.hbm [shape: bf16[32,32], index: 12, kind: input, shape index: {}]   ;;  %s7347_s13 = inlined_call_operand.hbm [shape: f32[1,32], index: 13, kind: input, shape index: {}]   ;;  %s7348_s14 = inlined_call_operand.vmem [shape: bf16[32,32], index: 14, kind: input, shape index: {}]   ;;  %s7349_s15 = inlined_call_operand.vmem [shape: f32[1,32], index: 15, kind: input, shape index: {}]   ;;  %s7350_s16 = inlined_call_operand.hbm [shape: bf16[32,32], index: 16, kind: input, shape index: {}]   ;;  %s7351_s17 = inlined_call_operand.vmem [shape: f32[1,32], index: 17, kind: input, shape index: {}]   ;;  %s7352_s18 = inlined_call_operand.vmem [shape: bf16[32,4], index: 18, kind: input, shape index: {}]   ;;  %s7353_s19 = inlined_call_operand.vmem [shape: f32[1,4], index: 19, kind: input, shape index: {}]   ;;  %s7354_s20 = inlined_call_operand.vmem [shape: f32[8,2,4], index: 20, kind: output, shape index: {}]  }
   0x1   :  { %7378 = sst [smem:[#allocation36_spill]] %s7334_s0 }
   0x2   :  { %7379 = sst [smem:[#allocation37_spill]] %s7335_s1 }
   0x3   :  { %7380 = sst [smem:[#allocation38_spill]] %s7336_s2 }
   0x4   :  { %7381 = sst [smem:[#allocation39_spill]] %s7337_s3 }
   0x5   :  { %7382 = sst [smem:[#allocation40_spill]] %s7338_s4 }
   0x6   :  { %7383 = sst [smem:[#allocation41_spill]] %s7339_s5 }
   0x7   :  { %7384 = sst [smem:[#allocation42_spill]] %s7342_s8 }
   0x8   :  { %7385 = sst [smem:[#allocation43_spill]] %s7343_s9 }
   0x9   :  { %7386 = sst [smem:[#allocation44_spill]] %s7344_s10 }
   0xa   :  { %7387 = sst [smem:[#allocation45_spill]] %s7345_s11 }
   0xb   :  { %7388 = sst [smem:[#allocation46_spill]] %s7348_s14 }
   0xc   :  { %7389 = sst [smem:[#allocation47_spill]] %s7349_s15 }
   0xd   :  { %7390 = sst [smem:[#allocation48_spill]] %s7351_s17 }
   0xe   :  { %7391 = sst [smem:[#allocation49_spill]] %s7352_s18 }
   0xf   :  { %7392 = sst [smem:[#allocation50_spill]] %s7353_s19 }
  0x10   :  { %25 = vsyncpa [#allocation5], 0 }
  0x11   :  { %27 = vsyncpa [#allocation5 + $0x1], 0 }
  0x12   :  { %28 = vsyncpa [#allocation7], 0 }
  0x13   :  { %29 = vsyncpa [#allocation10], 0 }
  0x14   :  { %30 = vsyncpa [#allocation13], 0 }
  0x15   :  { %31 = vsyncpa [#allocation16], 0 }
  0x16   :  { %32 = vsyncpa [#allocation19], 0  ;;  %s6155_s1 = smov 0   ;;  %s6157_s22 = smov 0  }
  0x17   :  { %s6159_s23 = smov 0   ;;  %s6161_s24 = smov 0  }
  0x18 LB: > { %s6174_s2 = sadd.s32 4294967295, %s6028_s24   ;;  %s6177_s25 = sadd.s32 1, %s6028_s24   ;;  %s6028_s24 = sphi %s6161_s24, %s7444_s24   ;;  %s6024_s23 = sphi %s6159_s23, %s7448_s23   ;;  %s6020_s22 = sphi %s6157_s22, %s7447_s22   ;;  %s6016_s1 = sphi %s6155_s1, %s7446_s1  }
  0x19   : > { %7393 = sst [smem:[#allocation27_spill]] %s6177_s25  ;;  %s42_s3 = ssub.s32 %s6028_s24, %s6177_s25 }
  0x1a   : > { %s45_s26 = sadd.s32 1, %s6024_s23  ;;  %p43_p0 = scmp.eq.s32.totalorder %s42_s3, 0 }
  0x1b   : > { %p52_p1 = scmp.ne.s32.totalorder %s6024_s23, %s6020_s22  ;;  %p53_p2 = scmp.eq.s32.totalorder %s6028_s24, 0 }
  0x1c   : > { %p58_p3 = scmp.ne.s32.totalorder %s6020_s22, %s6016_s1  ;;  %p7363_p5 = scmp.eq.s32.totalorder %s6174_s2, 0 }
  0x1d   : > { %s6187_s27 = scalar_select %p43_p0, %s6024_s23, %s45_s26  }
  0x1e   : > { %p6189_p4 = por %p53_p2, %p52_p1  ;;  %p4554_p6 = scmp.ge.s32.totalorder %s6028_s24, 1 }
  0x1f   : > { %7394 = sst [smem:[#allocation28_spill]] %s6187_s27  ;;  %p494_p7 = scmp.lt.s32.totalorder %s6028_s24, 3 }
  0x20   : > { %s7395_s28 = scalar_select %p6189_p4, 1, 0 }
  0x21   : > { %p6198_p8 = por %p7363_p5, %p58_p3  ;;  %p6203_p10 = pnand %p4554_p6, %p494_p7 }
  0x22   : > { %s6030_s30 = smov [#allocation6]   ;;  %s6031_s21 = smov [#allocation9]  }
  0x23   : > { %s7396_s4 = scalar_select %p6198_p8, 1, 0 }
  0x24   : > { %s7397_s29 = scalar_select %p6203_p10, 1, 0 }
  0x25   : > { %s507_s0 = sshll.u32 %s6030_s30, 4  ;;  %p5552_p11 = pneg %p6203_p10  ;;  %s508_s0 = int_to_ptr.vmem [resolvable:$true] %s507_s0 }
  0x26   : > { %s529_s1 = sshll.u32 %s6031_s21, 4  ;;  %s6032_s26 = smov [#allocation12]   ;;  %s6215_s1 = int_to_ptr.vmem [resolvable:$true] %s529_s1 }
  0x27   : > { %p6211_p12 = pnand %p5552_p11, %p7363_p5  ;;  %s551_s27 = sshll.u32 %s6032_s26, 4  ;;  %s6217_s27 = int_to_ptr.vmem [resolvable:$true] %s551_s27 }
  0x28   : > { %s7399_s30 = sld [smem:[#allocation37_spill]] }
  0x29   : > { %p6227_p0 = pneg %p6211_p12 }
  0x2e   : > { %s5666_s17 = scalar_lea.hbm %s7399_s30, 32 }
  0x2f   : > { %p5667_p13 = scmp.ne.s32.totalorder %s7399_s30, %s5666_s17  ;;  %p5673_p3 = scmp.lt.u32.totalorder %s5666_s17, %s7399_s30 }
  0x31   : > { %p5669_p1 = pnand %p6227_p0, %p5667_p13 }
  0x33   : > { %p5670_p2 = pneg %p5669_p1 }
  0x35   : > { %p5675_p6 = pnand %p5673_p3, %p5670_p2 }
  0x37   : > { %5678 = shalt.err (!%p5675_p6)
}
  0x38   : > { %s5679_s19 = scalar_lea.vmem %s508_s0, 32  ;;  %p5687_p5 = scmp.lt.s32.totalorder %s508_s0, %s508_s0 }
  0x39   : > { %p5680_p7 = scmp.ne.s32.totalorder %s508_s0, %s5679_s19  ;;  %p5688_p8 = scmp.lt.s32.totalorder %s5679_s19, %s5679_s19 }
  0x3b   : > { %p5682_p11 = pnand %p5680_p7, %p6227_p0  ;;  %p5689_p10 = por %p5688_p8, %p5687_p5 }
  0x3d   : > { %p5683_p9 = pneg %p5682_p11 }
  0x3f   : > { %p5690_p4 = pnand %p5689_p10, %p5683_p9 }
  0x41   : > { %5693 = shalt.err (!%p5690_p4)
}
  0x42   : > { %5555 = dma.hbm_to_vmem [thread:$0]  (!%p6211_p12), %s7399_s30, 32, %s508_s0, [#allocation7]  }
  0x43   : > { %s7401_s25 = sld [smem:[#allocation39_spill]] }
  0x49   : > { %s5694_s26 = scalar_lea.hbm %s7401_s25, 32 }
  0x4a   : > { %p5695_p13 = scmp.ne.s32.totalorder %s7401_s25, %s5694_s26  ;;  %p5701_p4 = scmp.lt.u32.totalorder %s5694_s26, %s7401_s25 }
  0x4c   : > { %p5697_p1 = pnand %p5695_p13, %p6227_p0 }
  0x4e   : > { %p5698_p5 = pneg %p5697_p1 }
  0x50   : > { %p5703_p8 = pnand %p5701_p4, %p5698_p5 }
  0x52   : > { %5706 = shalt.err (!%p5703_p8)
}
  0x53   : > { %s5707_s0 = scalar_lea.vmem %s6215_s1, 32  ;;  %p5715_p3 = scmp.lt.s32.totalorder %s6215_s1, %s6215_s1 }
  0x54   : > { %p5708_p9 = scmp.ne.s32.totalorder %s6215_s1, %s5707_s0  ;;  %p5716_p6 = scmp.lt.s32.totalorder %s5707_s0, %s5707_s0 }
  0x56   : > { %p5710_p10 = pnand %p5708_p9, %p6227_p0  ;;  %p5717_p7 = por %p5716_p6, %p5715_p3 }
  0x58   : > { %p5711_p2 = pneg %p5710_p10 }
  0x5a   : > { %p5718_p11 = pnand %p5717_p7, %p5711_p2 }
  0x5c   : > { %5721 = shalt.err (!%p5718_p11)
}
  0x5d   : > { %5561 = dma.hbm_to_vmem [thread:$0]  (!%p6211_p12), %s7401_s25, 32, %s6215_s1, [#allocation10]  }
  0x5e   : > { %s7402_s5 = sld [smem:[#allocation41_spill]] }
  0x64   : > { %s5722_s15 = scalar_lea.hbm %s7402_s5, 32 }
  0x65   : > { %p5723_p13 = scmp.ne.s32.totalorder %s7402_s5, %s5722_s15  ;;  %p5729_p4 = scmp.lt.u32.totalorder %s5722_s15, %s7402_s5 }
  0x67   : > { %p5725_p1 = pnand %p5723_p13, %p6227_p0 }
  0x69   : > { %p5726_p5 = pneg %p5725_p1 }
  0x6b   : > { %p5731_p8 = pnand %p5729_p4, %p5726_p5 }
  0x6d   : > { %5734 = shalt.err (!%p5731_p8)
}
  0x6e   : > { %s5735_s1 = scalar_lea.vmem %s6217_s27, 32  ;;  %p5743_p3 = scmp.lt.s32.totalorder %s6217_s27, %s6217_s27 }
  0x6f   : > { %p5736_p9 = scmp.ne.s32.totalorder %s6217_s27, %s5735_s1  ;;  %p5744_p6 = scmp.lt.s32.totalorder %s5735_s1, %s5735_s1 }
  0x71   : > { %p5738_p10 = pnand %p5736_p9, %p6227_p0  ;;  %p5745_p7 = por %p5744_p6, %p5743_p3 }
  0x73   : > { %p5739_p2 = pneg %p5738_p10 }
  0x75   : > { %p5746_p11 = pnand %p5745_p7, %p5739_p2 }
  0x77   : > { %5749 = shalt.err (!%p5746_p11)
}
  0x78   : > { %5567 = dma.hbm_to_vmem [thread:$0]  (!%p6211_p12), %s7402_s5, 32, %s6217_s27, [#allocation13]  }
  0x79   : > { %s6033_s11 = smov [#allocation15]   ;;  %s6034_s10 = smov [#allocation18]  }
  0x7a   : > { %s576_s14 = sshll.u32 %s6033_s11, 4  ;;  %s609_s15 = sshll.u32 %s6034_s10, 4  ;;  %s577_s14 = int_to_ptr.vmem [resolvable:$true] %s576_s14  ;;  %s610_s15 = int_to_ptr.vmem [resolvable:$true] %s609_s15 }
  0x7b   : > { %s7403_s8 = sld [smem:[#allocation42_spill]] }
  0x81   : > { %s5750_s26 = scalar_lea.hbm %s7403_s8, 16 }
  0x82   : > { %p5751_p13 = scmp.ne.s32.totalorder %s7403_s8, %s5750_s26  ;;  %p5757_p4 = scmp.lt.u32.totalorder %s5750_s26, %s7403_s8 }
  0x84   : > { %p5753_p1 = pnand %p5751_p13, %p6227_p0 }
  0x86   : > { %p5754_p5 = pneg %p5753_p1 }
  0x88   : > { %p5759_p8 = pnand %p5757_p4, %p5754_p5 }
  0x8a   : > { %5762 = shalt.err (!%p5759_p8)
}
  0x8b   : > { %s5763_s27 = scalar_lea.vmem %s577_s14, 16  ;;  %s5770_s9 = scalar_lea.vmem %s577_s14, 32 }
  0x8c   : > { %p5764_p9 = scmp.ne.s32.totalorder %s577_s14, %s5763_s27  ;;  %p5771_p3 = scmp.lt.s32.totalorder %s577_s14, %s577_s14 }
  0x8d   : > { %p5772_p6 = scmp.lt.s32.totalorder %s5770_s9, %s5763_s27 }
  0x8e   : > { %p5766_p10 = pnand %p5764_p9, %p6227_p0 }
  0x8f   : > { %p5773_p7 = por %p5772_p6, %p5771_p3 }
  0x90   : > { %p5767_p2 = pneg %p5766_p10 }
  0x92   : > { %p5774_p11 = pnand %p5773_p7, %p5767_p2 }
  0x94   : > { %5777 = shalt.err (!%p5774_p11)
}
  0x95   : > { %5573 = dma.hbm_to_vmem [thread:$0]  (!%p6211_p12), %s7403_s8, 16, %s577_s14, [#allocation16]  }
  0x96   : > { %s5778_s18 = scalar_lea.hbm %s7347_s13, 16 }
  0x97   : > { %p5779_p13 = scmp.ne.s32.totalorder %s7347_s13, %s5778_s18  ;;  %p5785_p4 = scmp.lt.u32.totalorder %s5778_s18, %s7347_s13 }
  0x99   : > { %p5781_p1 = pnand %p5779_p13, %p6227_p0 }
  0x9b   : > { %p5782_p5 = pneg %p5781_p1 }
  0x9d   : > { %p5787_p8 = pnand %p5785_p4, %p5782_p5 }
  0x9f   : > { %5790 = shalt.err (!%p5787_p8)
}
  0xa0   : > { %s5791_s27 = scalar_lea.vmem %s610_s15, 16  ;;  %s5798_s14 = scalar_lea.vmem %s610_s15, 32 }
  0xa1   : > { %p5792_p9 = scmp.ne.s32.totalorder %s610_s15, %s5791_s27  ;;  %p5799_p3 = scmp.lt.s32.totalorder %s610_s15, %s610_s15 }
  0xa2   : > { %p5800_p6 = scmp.lt.s32.totalorder %s5798_s14, %s5791_s27 }
  0xa3   : > { %p5794_p10 = pnand %p5792_p9, %p6227_p0 }
  0xa4   : > { %p5801_p7 = por %p5800_p6, %p5799_p3 }
  0xa5   : > { %p5795_p2 = pneg %p5794_p10 }
  0xa7   : > { %p5802_p11 = pnand %p5801_p7, %p5795_p2 }
  0xa9   : > { %5805 = shalt.err (!%p5802_p11)
}
  0xaa   : > { %5579 = dma.hbm_to_vmem [thread:$0]  (!%p6211_p12), %s7347_s13, 16, %s610_s15, [#allocation19]  }
  0xab   : > { %s6035_s10 = smov [#allocation8]   ;;  %s6036_s17 = smov [#allocation11]  }
  0xac   : > { %s518_s25 = sshll.u32 %s6035_s10, 4  ;;  %s540_s18 = sshll.u32 %s6036_s17, 4  ;;  %s519_s25 = int_to_ptr.vmem [resolvable:$true] %s518_s25  ;;  %s541_s18 = int_to_ptr.vmem [resolvable:$true] %s540_s18 }
  0xad   : > { %s7404_s1 = sld [smem:[#allocation38_spill]] }
  0xb3   : > { %s7405_s0 = smov %s7404_s1  ;;  %s5806_s5 = scalar_lea.hbm %s7404_s1, 32 }
  0xb4   : > { %p5807_p13 = scmp.ne.s32.totalorder %s7405_s0, %s5806_s5  ;;  %p5813_p4 = scmp.lt.u32.totalorder %s5806_s5, %s7405_s0 }
  0xb6   : > { %p5809_p1 = pnand %p5807_p13, %p6227_p0 }
  0xb8   : > { %p5810_p5 = pneg %p5809_p1 }
  0xba   : > { %p5815_p8 = pnand %p5813_p4, %p5810_p5 }
  0xbc   : > { %5818 = shalt.err (!%p5815_p8)
}
  0xbd   : > { %s5819_s15 = scalar_lea.vmem %s519_s25, 32  ;;  %p5827_p3 = scmp.lt.s32.totalorder %s519_s25, %s519_s25 }
  0xbe   : > { %p5820_p9 = scmp.ne.s32.totalorder %s519_s25, %s5819_s15  ;;  %p5828_p6 = scmp.lt.s32.totalorder %s5819_s15, %s5819_s15 }
  0xc0   : > { %p5822_p10 = pnand %p5820_p9, %p6227_p0  ;;  %p5829_p7 = por %p5828_p6, %p5827_p3 }
  0xc2   : > { %p5823_p2 = pneg %p5822_p10 }
  0xc4   : > { %p5830_p11 = pnand %p5829_p7, %p5823_p2 }
  0xc6   : > { %5833 = shalt.err (!%p5830_p11)
}
  0xc7   : > { %5558 = dma.hbm_to_vmem [thread:$0]  (!%p6211_p12), %s7405_s0, 32, %s519_s25, [#allocation7]  }
  0xc8   : > { %s7406_s17 = sld [smem:[#allocation40_spill]] }
  0xce   : > { %s5834_s26 = scalar_lea.hbm %s7406_s17, 32 }
  0xcf   : > { %p5835_p13 = scmp.ne.s32.totalorder %s7406_s17, %s5834_s26  ;;  %p5841_p4 = scmp.lt.u32.totalorder %s5834_s26, %s7406_s17 }
  0xd1   : > { %p5837_p1 = pnand %p5835_p13, %p6227_p0 }
  0xd3   : > { %p5838_p5 = pneg %p5837_p1 }
  0xd5   : > { %p5843_p8 = pnand %p5841_p4, %p5838_p5 }
  0xd7   : > { %5846 = shalt.err (!%p5843_p8)
}
  0xd8   : > { %s5847_s9 = scalar_lea.vmem %s541_s18, 32  ;;  %p5855_p3 = scmp.lt.s32.totalorder %s541_s18, %s541_s18 }
  0xd9   : > { %p5848_p9 = scmp.ne.s32.totalorder %s541_s18, %s5847_s9  ;;  %p5856_p6 = scmp.lt.s32.totalorder %s5847_s9, %s5847_s9 }
  0xdb   : > { %p5850_p10 = pnand %p5848_p9, %p6227_p0  ;;  %p5857_p7 = por %p5856_p6, %p5855_p3 }
  0xdd   : > { %p5851_p2 = pneg %p5850_p10 }
  0xdf   : > { %p5858_p11 = pnand %p5857_p7, %p5851_p2 }
  0xe1   : > { %5861 = shalt.err (!%p5858_p11)
}
  0xe2   : > { %5564 = dma.hbm_to_vmem [thread:$0]  (!%p6211_p12), %s7406_s17, 32, %s541_s18, [#allocation10]  }
  0xe3   : > { %s6037_s11 = smov [#allocation14]   ;;  %s6038_s5 = smov [#allocation17]  }
  0xe4   : > { %s562_s10 = sshll.u32 %s6037_s11, 4  ;;  %s595_s8 = sshll.u32 %s6038_s5, 4  ;;  %s563_s10 = int_to_ptr.vmem [resolvable:$true] %s562_s10  ;;  %s596_s8 = int_to_ptr.vmem [resolvable:$true] %s595_s8 }
  0xe5   : > { %s5862_s1 = scalar_lea.hbm %s7340_s6, 32 }
  0xe6   : > { %p5863_p13 = scmp.ne.s32.totalorder %s7340_s6, %s5862_s1  ;;  %p5869_p4 = scmp.lt.u32.totalorder %s5862_s1, %s7340_s6 }
  0xe8   : > { %p5865_p1 = pnand %p5863_p13, %p6227_p0 }
  0xea   : > { %p5866_p5 = pneg %p5865_p1 }
  0xec   : > { %p5871_p8 = pnand %p5869_p4, %p5866_p5 }
  0xee   : > { %5874 = shalt.err (!%p5871_p8)
}
  0xef   : > { %s5875_s18 = scalar_lea.vmem %s563_s10, 32  ;;  %p5883_p3 = scmp.lt.s32.totalorder %s563_s10, %s563_s10 }
  0xf0   : > { %p5876_p9 = scmp.ne.s32.totalorder %s563_s10, %s5875_s18  ;;  %p5884_p6 = scmp.lt.s32.totalorder %s5875_s18, %s5875_s18 }
  0xf2   : > { %p5878_p10 = pnand %p5876_p9, %p6227_p0  ;;  %p5885_p7 = por %p5884_p6, %p5883_p3 }
  0xf4   : > { %p5879_p2 = pneg %p5878_p10 }
  0xf6   : > { %p5886_p11 = pnand %p5885_p7, %p5879_p2 }
  0xf8   : > { %5889 = shalt.err (!%p5886_p11)
}
  0xf9   : > { %5570 = dma.hbm_to_vmem [thread:$0]  (!%p6211_p12), %s7340_s6, 32, %s563_s10, [#allocation13]  }
  0xfa   : > { %s5890_s19 = scalar_lea.hbm %s7346_s12, 256 }
  0xfb   : > { %p5891_p13 = scmp.ne.s32.totalorder %s7346_s12, %s5890_s19  ;;  %p5897_p4 = scmp.lt.u32.totalorder %s5890_s19, %s7346_s12 }
  0xfd   : > { %p5893_p1 = pnand %p5891_p13, %p6227_p0 }
  0xff   : > { %p5894_p5 = pneg %p5893_p1 }
 0x101   : > { %p5899_p8 = pnand %p5897_p4, %p5894_p5 }
 0x103   : > { %5902 = shalt.err (!%p5899_p8)
}
 0x104   : > { %s5903_s25 = scalar_lea.vmem %s596_s8, 256  ;;  %p5911_p3 = scmp.lt.s32.totalorder %s596_s8, %s596_s8 }
 0x105   : > { %p5904_p9 = scmp.ne.s32.totalorder %s596_s8, %s5903_s25  ;;  %p5912_p6 = scmp.lt.s32.totalorder %s5903_s25, %s5903_s25 }
 0x107   : > { %p5906_p10 = pnand %p5904_p9, %p6227_p0  ;;  %p5913_p7 = por %p5912_p6, %p5911_p3 }
 0x109   : > { %p5907_p2 = pneg %p5906_p10 }
 0x10b   : > { %p5914_p11 = pnand %p5913_p7, %p5907_p2 }
 0x10d   : > { %5917 = shalt.err (!%p5914_p11)
}
 0x10e   : > { %s6039_s10 = smov 64   ;;  %s6040_s18 = smov 4  }
 0x10f   : > { %5576 = dma.hbm_to_vmem [thread:$0]  (!%p6211_p12), %s7346_s12, 256, %s596_s8, [#allocation16], %s6039_s10, %s6039_s10, %s6040_s18  }
 0x110   : > { %s6041_s5 = smov [#allocation20]   ;;  %s5918_s27 = scalar_lea.hbm %s7350_s16, 256 }
 0x111   : > { %s625_s26 = sshll.u32 %s6041_s5, 4  ;;  %p5919_p13 = scmp.ne.s32.totalorder %s7350_s16, %s5918_s27  ;;  %s626_s26 = int_to_ptr.vmem [resolvable:$true] %s625_s26 }
 0x112   : > { %p5925_p4 = scmp.lt.u32.totalorder %s5918_s27, %s7350_s16 }
 0x113   : > { %p5921_p1 = pnand %p5919_p13, %p6227_p0 }
 0x115   : > { %p5922_p5 = pneg %p5921_p1 }
 0x117   : > { %p5927_p8 = pnand %p5925_p4, %p5922_p5 }
 0x119   : > { %5930 = shalt.err (!%p5927_p8)
}
 0x11a   : > { %s5931_s8 = scalar_lea.vmem %s626_s26, 256  ;;  %p5939_p3 = scmp.lt.s32.totalorder %s626_s26, %s626_s26 }
 0x11b   : > { %p5932_p9 = scmp.ne.s32.totalorder %s626_s26, %s5931_s8  ;;  %p5940_p6 = scmp.lt.s32.totalorder %s5931_s8, %s5931_s8 }
 0x11d   : > { %p5934_p10 = pnand %p5932_p9, %p6227_p0  ;;  %p5941_p7 = por %p5940_p6, %p5939_p3 }
 0x11f   : > { %p5935_p2 = pneg %p5934_p10 }
 0x121   : > { %p5942_p11 = pnand %p5941_p7, %p5935_p2 }
 0x123   : > { %5945 = shalt.err (!%p5942_p11)
}
 0x124   : > { %5582 = dma.hbm_to_vmem [thread:$0]  (!%p6211_p12), %s7350_s16, 256, %s626_s26, [#allocation19], %s6039_s10, %s6039_s10, %s6040_s18  }
 0x125   : > { %p4565_p13 = scmp.ge.s32.totalorder %s6028_s24, 2 }
 0x126   : > { %p7407_p1 = scmp.ne.s32.totalorder (!%p4565_p13), %s7395_s28, 0 }
 0x127   : > { %644 = sbr.rel (%p4565_p13) target bundleno = 342 (0x156), region = 92 }
 0x12e   : > { %647 = sbr.rel (!%p7407_p1) target bundleno = 342 (0x156), region = 96  ;;  %s648_s21 = sand.u32 (%p7407_p1), 1, %s6024_s23  }
 0x12f   : > { %s4567_s0 = sshll.u32 (%p7407_p1), %s6028_s24, 2  ;;  %s4566_s5 = sshll.u32 (%p7407_p1), %s648_s21, 3 }
 0x130   : > { %s654_s19 = ssub.s32 (%p7407_p1), 6, %s4567_s0  ;;  %s6423_s27 = scalar_lea.sflag (%p7407_p1), [#allocation5], %s648_s21 }
 0x131   : > { %p655_p0 = scmp.lt.s32.totalorder (%p7407_p1), %s654_s19, 4  ;;  %s652_s10 = scalar_lea.vmem (%p7407_p1), [#allocation4], %s4566_s5 }
 0x135   : > { %s7450_s19 = smov (!%p655_p0, %s654_s19), 4 }
 0x136   : > { %s6420_s1 = sshll.u32 %s7450_s19, 5 }
 0x137   : > { %s659_s3 = ssub.s32 128, %s6420_s1 }
 0x138   : > { %660 = vsyncadd %s6423_s27, %s659_s3  ;;  %p4569_p12 = scmp.ne.s32.totalorder %s6420_s1, 0  ;;  %s4706_s28 = sshll.u32 %s6028_s24, 7 }
 0x139   : > { %s7408_s14 = sld [smem:[#allocation36_spill]]  ;;  %s665_s25 = sshll.u32 %s652_s10, 4  ;;  %s6433_s25 = int_to_ptr.vmem [resolvable:$true] %s665_s25 }
 0x13f   : > { %s6431_s9 = scalar_lea.hbm %s7408_s14, %s4706_s28  ;;  %s5950_s24 = scalar_lea.hbm %s7408_s14, 192 }
 0x140   : > { %s5946_s8 = scalar_lea.hbm %s6431_s9, %s6420_s1  ;;  %p5951_p9 = scmp.lt.u32.totalorder %s6431_s9, %s7408_s14 }
 0x141   : > { %p5947_p5 = scmp.ne.s32.totalorder %s6431_s9, %s5946_s8  ;;  %p5952_p10 = scmp.lt.u32.totalorder %s5950_s24, %s5946_s8 }
 0x142   : > { %p5954_p3 = scmp.lt.u32.totalorder %s5946_s8, %s6431_s9 }
 0x143   : > { %p5948_p4 = pnand %p5947_p5, %p4569_p12  ;;  %p5953_p2 = por %p5952_p10, %p5951_p9 }
 0x145   : > { %p5949_p8 = pneg %p5948_p4  ;;  %p5955_p6 = por %p5954_p3, %p5953_p2 }
 0x147   : > { %p5956_p7 = pnand %p5955_p6, %p5949_p8 }
 0x149   : > { %5959 = shalt.err (!%p5956_p7)
}
 0x14a   : > { %s5960_s5 = scalar_lea.vmem %s6433_s25, %s6420_s1  ;;  %s6042_s19 = smov [#allocation4]  }
 0x14b   : > { %p5961_p11 = scmp.ne.s32.totalorder %s6433_s25, %s5960_s5  ;;  %s5964_s3 = sshll.u32 %s6042_s19, 4  ;;  %s5965_s3 = int_to_ptr.vmem [resolvable:$false] %s5964_s3 }
 0x14c   : > { %s5966_s10 = scalar_lea.vmem %s5965_s3, 256  ;;  %p5967_p0 = scmp.lt.s32.totalorder %s6433_s25, %s5965_s3 }
 0x14d   : > { %p5962_p13 = pnand %p5961_p11, %p4569_p12  ;;  %p5968_p5 = scmp.lt.s32.totalorder %s5966_s10, %s5960_s5 }
 0x14f   : > { %p5963_p1 = pneg %p5962_p13  ;;  %p5969_p4 = por %p5968_p5, %p5967_p0 }
 0x151   : > { %p5970_p9 = pnand %p5969_p4, %p5963_p1 }
 0x153   : > { %5973 = shalt.err (!%p5970_p9)
}
 0x154   : > { %s6043_s28 = smov 32   ;;  %s6044_s18 = smov 2  }
 0x155   : > { %671 = dma.hbm_to_vmem [thread:$0]  (%p4569_p12), %s6431_s9, %s6420_s1, %s6433_s25, %s6423_s27, %s6043_s28, %s6043_s28, %s6044_s18  }
 0x156 PF: > { %p7409_p8 = scmp.ne.s32.totalorder %s7397_s29, 0 }
 0x158   : > { %677 = sbr.rel (%p7409_p8) target bundleno = 9917 (0x26bd), region = 100 }
 0x15f   : > { %s679_s26 = sand.u32 1, %s6020_s22   ;;  %p7410_p10 = scmp.ne.s32.totalorder %s7396_s4, 0 }
 0x160   : > { %s4574_s8 = sshll.u32 %s679_s26, 3  ;;  %s680_s15 = scalar_lea.sflag [#allocation5], %s679_s26 }
 0x161   : > { %s6463_s11 = scalar_lea.vmem [#allocation4], %s4574_s8 }
 0x162   : > { %5991 = dma.done.wait (%p7410_p10), %s680_s15, 128  }
 0x163   : > { %5993 = vsyncadd (%p7410_p10), %s680_s15, 4294967168  ;;  %p7411_p2 = scmp.eq.s32.totalorder %s6174_s2, 0 }
 0x165   : > { %5995 = dma.done.wait (%p7411_p2), [#allocation7], 64   ;;  %p7412_p12 = pmov %p7411_p2 }
 0x166   : > { %p7413_p3 = pmov %p7411_p2 }
 0x167   : > { %5997 = vsyncadd (%p7412_p12), [#allocation7], 4294967232 }
 0x168   : > { %5999 = dma.done.wait (%p7413_p3), [#allocation10], 64   ;;  %p7414_p6 = pmov %p7411_p2 }
 0x169   : > { %p7415_p7 = pmov %p7411_p2 }
 0x16a   : > { %6001 = vsyncadd (%p7414_p6), [#allocation10], 4294967232 }
 0x16b   : > { %6003 = dma.done.wait (%p7415_p7), [#allocation13], 64   ;;  %p7416_p11 = pmov %p7411_p2 }
 0x16c   : > { %p7417_p13 = pmov %p7411_p2 }
 0x16d   : > { %6005 = vsyncadd (%p7416_p11), [#allocation13], 4294967232 }
 0x16e   : > { %6007 = dma.done.wait (%p7417_p13), [#allocation16], 272   ;;  %p7418_p1 = pmov %p7411_p2 }
 0x170   : > { %6009 = vsyncadd (%p7418_p1), [#allocation16], 4294967024  ;;  %p7419_p0 = pmov %p7418_p1 }
 0x172   : > { %6011 = dma.done.wait (%p7419_p0), [#allocation19], 272   ;;  %p7420_p5 = pmov %p7419_p0 }
 0x173   : > { %s4585_s4 = sshll.u32 %s6174_s2, 2  ;;  %p7421_p9 = scmp.ne.s32.totalorder %s6174_s2, 0 }
 0x174   : > { %6013 = vsyncadd (%p7420_p5), [#allocation19], 4294967024  ;;  %p786_p4 = scmp.lt.s32.totalorder %s4585_s4, 7  ;;  %vm796_vm0 = vcmask (!%p7421_p9), 254976   ;;  %v798_v0 = vld [vmem:[#allocation6] sm:$0x3] (!%p7421_p9) }
 0x175   : > { %795 = sbr.rel (%p7421_p9) target bundleno = 380 (0x17c), region = 148  ;;  %vm799_vm1 = vcmask (!%p7421_p9), 25600   ;;  %v6045_v1 = vmov (!%p7421_p9), 0.0  }
 0x176   : > { %s7452_s4 = smov (!%p786_p4, %s4585_s4), 7  ;;  %797 = vst.msk [vmem:[#allocation2] sm:$0x3] (!%p7421_p9), %vm796_vm0, %v6045_v1 }
 0x177   : > { %s4586_s29 = sshll.u32 %s7452_s4, 1  ;;  %800 = vst.msk [vmem:[#allocation3] sm:$0x3] (!%p7421_p9), %vm799_vm1, %v798_v0 }
 0x178   : > { %s6493_s9 = scalar_lea.vmem %s7354_s20, %s4586_s29 }
 0x17c PF: > { %v6497_v2 = vld [vmem:[#allocation8] sm:$0x3]  ;;  %v6499_v3 = vld [vmem:[#allocation9] sm:$0x3]  ;;  %v6501_v4 = vld [vmem:[#allocation11] sm:$0x3] }
 0x17d   : > { %v6503_v5 = vld [vmem:[#allocation12] sm:$0x3]  ;;  %v6505_v6 = vld [vmem:[#allocation14] sm:$0x3]  ;;  %v6510_v7 = vld [vmem:[%s7341_s7] sm:$0xf] }
 0x17e   : > { %v6515_v8 = vld [vmem:[%s7341_s7 + $0x4] sm:$0xf]  ;;  %v6520_v9 = vld [vmem:[%s7341_s7 + $0x8] sm:$0xf]  ;;  %v6525_v10 = vld [vmem:[%s7341_s7 + $0xc] sm:$0xf] }
 0x17f   : > { %s7422_s26 = sld [smem:[#allocation43_spill]]  ;;  %s7423_s21 = sld [smem:[#allocation45_spill]]  ;;  %v6567_v19 = vld [vmem:[#allocation17] sm:$0xf]  ;;  %v6569_v20 = vld [vmem:[#allocation17 + $0x4] sm:$0xf] }
 0x180   : > { %v6571_v21 = vld [vmem:[#allocation17 + $0x8] sm:$0xf]  ;;  %v6573_v22 = vld [vmem:[#allocation17 + $0xc] sm:$0xf]  ;;  %s7425_s15 = sld [smem:[#allocation46_spill]]  ;;  %s7428_s19 = sld [smem:[#allocation49_spill]] }
 0x181   : > { %v6595_v27 = vld [vmem:[#allocation20] sm:$0xf]  ;;  %v6597_v28 = vld [vmem:[#allocation20 + $0x4] sm:$0xf]  ;;  %v6599_v29 = vld [vmem:[#allocation20 + $0x8] sm:$0xf] }
 0x182   : > { %7427 = vst [vmem:[#allocation31_spill] sm:$0xff] %v6599_v29  ;;  %v6601_v30 = vld [vmem:[#allocation20 + $0xc] sm:$0xf]  ;;  %s7433_s27 = sld [smem:[#allocation44_spill]]  ;;  %v6630_v37 = vld [vmem:[#allocation18] ss:$0 sm:$0xff] }
 0x183   : > { %v6623_v35 = vld [vmem:[#allocation15] ss:$0 sm:$0xff]  ;;  %s7434_s0 = sld [smem:[#allocation47_spill]]  ;;  %s7435_s10 = sld [smem:[#allocation48_spill]] }
 0x184   : > { %s7436_s8 = sld [smem:[#allocation50_spill]]  ;;  %p4594_p8 = scmp.eq.s32.totalorder %s6174_s2, 1 }
 0x185   : > { %v6530_v11 = vld [vmem:[%s7422_s26] sm:$0xf]  ;;  %v6535_v12 = vld [vmem:[%s7422_s26 + $0x4] sm:$0xf]  ;;  %v6540_v13 = vld [vmem:[%s7422_s26 + $0x8] sm:$0xf]  ;;  %v6701_v57 = vcombine.low (!%p4594_p8), %v6510_v7, %v6515_v8  ;;  %v6707_v58 = vcombine.low (!%p4594_p8), %v6520_v9, %v6525_v10 }
 0x186   : > { %v6545_v14 = vld [vmem:[%s7422_s26 + $0xc] sm:$0xf]  ;;  %v6550_v15 = vld [vmem:[%s7423_s21] sm:$0xf]  ;;  %v6555_v16 = vld [vmem:[%s7423_s21 + $0x4] sm:$0xf] }
 0x187   : > { %v6560_v17 = vld [vmem:[%s7423_s21 + $0x8] sm:$0xf]  ;;  %v6565_v18 = vld [vmem:[%s7423_s21 + $0xc] sm:$0xf]  ;;  %v6578_v23 = vld [vmem:[%s7425_s15] sm:$0xf] }
 0x188   : > { %7424 = vst [vmem:[#allocation29_spill] sm:$0xff] %v6560_v17  ;;  %v6583_v24 = vld [vmem:[%s7425_s15 + $0x4] sm:$0xf]  ;;  %v6588_v25 = vld [vmem:[%s7425_s15 + $0x8] sm:$0xf]  ;;  %880 = sbr.rel (%p4594_p8) target bundleno = 6739 (0x1a53), region = 152 }
 0x189   : > { %7426 = vst [vmem:[#allocation30_spill] sm:$0xff] %v6588_v25  ;;  %v6593_v26 = vld [vmem:[%s7425_s15 + $0xc] sm:$0xf]  ;;  %v6606_v31 = vld [vmem:[%s7428_s19] sm:$0xf]  ;;  %vm893_vm2 = vcmask (!%p4594_p8), 1041408  }
 0x18a   : > { %7429 = vst [vmem:[#allocation32_spill] sm:$0xff] %v6606_v31  ;;  %v6611_v32 = vld [vmem:[%s7428_s19 + $0x4] sm:$0xf]  ;;  %v6616_v33 = vld [vmem:[%s7428_s19 + $0x8] sm:$0xf]  ;;  %v6046_v42 = vmov (!%p4594_p8), 0.0  }
 0x18b   : > { %7430 = vst [vmem:[#allocation33_spill] sm:$0xff] %v6611_v32  ;;  %7431 = vst [vmem:[#allocation34_spill] sm:$0xff] %v6616_v33  ;;  %v6621_v34 = vld [vmem:[%s7428_s19 + $0xc] sm:$0xf]  ;;  %v6628_v36 = vld [vmem:[%s7433_s27] ss:$0 sm:$0xff]  ;;  %4893 = vmatprep.subr.bf16.mxu0 (!%p4594_p8), %v6046_v42  ;;  %4923 = vmatprep.subr.bf16.mxu1 (!%p4594_p8), %v6046_v42 }
 0x18c   : > { %7432 = vst [vmem:[#allocation35_spill] sm:$0xff] %v6621_v34  ;;  %v6635_v38 = vld [vmem:[%s7434_s0] ss:$0 sm:$0xff]  ;;  %v882_v41 = vld [vmem:[#allocation3] sm:$0x3] (!%p4594_p8)  ;;  %v6651_v43 = vsel (!%p4594_p8), %vm893_vm2, %v6497_v2, 0  ;;  %4924 = vmatpush3.bf16.msra.mxu1 (!%p4594_p8), %v6701_v57 }
 0x18d   : > { %v6640_v39 = vld [vmem:[%s7435_s10] ss:$0 sm:$0xff]  ;;  %vm6047_vm3 = vmmov (!%p4594_p8), 0   ;;  %v888_v44 = vpack.c.bf16 (!%p4594_p8), %v882_v41, %v882_v41  ;;  %4894 = vmatpush3.bf16.msra.mxu0 (!%p4594_p8), %v6651_v43  ;;  %vm889_vm4 = vcmask (!%p4594_p8), 31744   ;;  %v6660_v45 = vsel (!%p4594_p8), %vm893_vm2, %v6499_v3, 0  ;;  %4925 = vmatprep.subr.bf16.mxu1 (!%p4594_p8), %v6046_v42 }
 0x18e   : > { %v6645_v40 = vld [vmem:[%s7436_s8] ss:$0 sm:$0xff]  ;;  %4895 = vmatprep.mubr.msk.bf16.mxu0 (!%p4594_p8), %vm6047_vm3, %v6046_v42  ;;  %4899 = vmatprep.subr.bf16.mxu0 (!%p4594_p8), %v6046_v42  ;;  %v883_v46 = vmul.f32 (!%p4594_p8), %v882_v41, %v882_v41  ;;  %v6671_v48 = vsel (!%p4594_p8), %vm893_vm2, %v6501_v4, 0  ;;  %v6680_v51 = vsel (!%p4594_p8), %vm893_vm2, %v6503_v5, 0  ;;  %v6689_v54 = vsel (!%p4594_p8), %vm893_vm2, %v6505_v6, 0 }
 0x18f   : > { %4927 = vmatprep.mubr.msk.bf16.mxu1 %vm6047_vm3, %v6046_v42  ;;  %v887_v59 = vld [vmem:[%s6463_s11] sm:$0x3]  ;;  %vm1144_vm5 = vcmask 261120   ;;  %vm1531_vm6 = vcmask 25600   ;;  %vm3180_vm7 = vcmask 254976  }
 0x190   : > { %4896 = vmatmul.mubr.msk.bf16.vlgmr.msra.gmra.mrb[0].mxu0 %vm889_vm4, %v888_v44  ;;  %v938_v47 = vpack.c.bf16 %v883_v46, %v883_v46  ;;  %v884_v49 = vmul.f32 %v883_v46, %v882_v41  ;;  %v885_v52 = vmul.f32 %v883_v46, %v883_v46  ;;  %4926 = vmatpush3.bf16.msra.mxu1 %v6707_v58 }
 0x191   : > { %4900 = vmatpush3.bf16.msra.mxu0 %v6660_v45  ;;  %4901 = vmatprep.mubr.msk.bf16.mxu0 %vm6047_vm3, %v6046_v42  ;;  %v6717_v44 = vcombine.low %v6530_v11, %v6535_v12  ;;  %v6723_v46 = vcombine.low %v6540_v13, %v6545_v14 }
 0x192   : > { %4905 = vmatprep.subr.bf16.mxu0 %v6046_v42  ;;  %v986_v50 = vpack.c.bf16 %v884_v49, %v884_v49  ;;  %v1034_v53 = vpack.c.bf16 %v885_v52, %v885_v52  ;;  %v886_v55 = vmul.f32 %v885_v52, %v882_v41  ;;  %4931 = vmatprep.subr.bf16.mxu1 %v6046_v42 }
 0x194   : > { %v1082_v56 = vpack.c.bf16 %v886_v55, %v886_v55 }
 0x19c   : > { %4902 = vmatmul.mubr.msk.bf16.vlgmr.msra.gmra.mrb[0].mxu0 %vm889_vm4, %v938_v47 }
 0x19d   : > { %4906 = vmatpush3.bf16.msra.mxu0 %v6671_v48  ;;  %4907 = vmatprep.mubr.msk.bf16.mxu0 %vm6047_vm3, %v6046_v42 }
 0x19e   : > { %4911 = vmatprep.subr.bf16.mxu0 %v6046_v42 }
 0x1a8   : > { %4908 = vmatmul.mubr.msk.bf16.vlgmr.msra.gmra.mrb[0].mxu0 %vm889_vm4, %v986_v50 }
 0x1a9   : > { %4912 = vmatpush3.bf16.msra.mxu0 %v6680_v51  ;;  %4913 = vmatprep.mubr.msk.bf16.mxu0 %vm6047_vm3, %v6046_v42 }
 0x1aa   : > { %4917 = vmatprep.subr.bf16.mxu0 %v6046_v42 }
 0x1b4   : > { %4914 = vmatmul.mubr.msk.bf16.vlgmr.msra.gmra.mrb[0].mxu0 %vm889_vm4, %v1034_v53 }
 0x1b5   : > { %4918 = vmatpush3.bf16.msra.mxu0 %v6689_v54  ;;  %4919 = vmatprep.mubr.msk.bf16.mxu0 %vm6047_vm3, %v6046_v42 }
 0x1b6   : > { %4963 = vmatprep.subr.bf16.mxu0 %v6046_v42 }
 0x1c0   : > { %4920 = vmatmul.mubr.msk.bf16.vlgmr.msra.gmra.mrb[0].mxu0 %vm889_vm4, %v1082_v56  ;;  %v6730_v56 = vcombine.low %v6567_v19, %v6569_v20 }
 0x1c1   : > { %4967 = vmatprep.mubr.msk.bf16.mxu0 %vm6047_vm3, %v6046_v42 }
 0x293   : > { %v1123_v60 = vpop.f32.mrb[0].mxu0 }
 0x294   : > { %v5409_v61 = vadd.f32 %v1123_v60, %v887_v59  ;;  %v4921_v62 = vpop.f32.mrb[1].mxu0  ;;  %v6736_v60 = vcombine.low %v6571_v21, %v6573_v22 }
 0x295   : > { %v1126_v63 = vpop.f32.mrb[2].mxu0 }
 0x296   : > { %v1130_v0 = vmax.f32 %v5409_v61, 0.0  ;;  %v4922_v1 = vpop.f32.mrb[3].mxu0  ;;  %v881_v61 = vld [vmem:[#allocation2] sm:$0x3]  ;;  %v6748_v63 = vcombine.low %v6550_v15, %v6555_v16 }
 0x297   : > { %v1247_v62 = vpack.c.bf16 %v881_v61, %v881_v61 }
 0x298   : > { %v1131_v41 = vpack.c.bf16 %v1130_v0, %v1130_v0  ;;  %v6754_v0 = vcombine.low %v6560_v17, %v6565_v18  ;;  %v6764_v17 = vcombine.low %v6578_v23, %v6583_v24 }
 0x29a   : > { %4928 = vmatmul.mubr.msk.bf16.vlgmr.msra.gmra.mrb[0].mxu1 %vm1144_vm5, %v1131_v41 }
 0x29b   : > { %4935 = vmatprep.mubr.msk.bf16.mxu1 %vm6047_vm3, %v6046_v42  ;;  %4932 = vmatpush3.bf16.msra.mxu1 %v6717_v44 }
 0x29c   : > { %4933 = vmatprep.subr.bf16.mxu1 %v6046_v42 }
 0x29f   : > { %4934 = vmatpush3.bf16.msra.mxu1 %v6723_v46 }
 0x2a0   : > { %4939 = vmatprep.subr.bf16.mxu1 %v6046_v42 }
 0x36d   : > { %v1182_v47 = vpop.f32.mrb[0].mxu1 }
 0x36e   : > { %v1183_v49 = vadd.f32 %v6623_v35, %v1182_v47  ;;  %v4929_v50 = vpop.f32.mrb[1].mxu1 }
 0x36f   : > { %v1185_v52 = vpop.f32.mrb[2].mxu1 }
 0x370   : > { %v1188_v53 = vmax.f32 %v1183_v49, 0.0  ;;  %v4930_v55 = vpop.f32.mrb[3].mxu1 }
 0x372   : > { %v1189_v59 = vpack.c.bf16 %v1188_v53, %v1188_v53 }
 0x374   : > { %4936 = vmatmul.mubr.msk.bf16.vlgmr.msra.gmra.mrb[4].mxu1 %vm1144_vm5, %v1189_v59 }
 0x375   : > { %4940 = vmatpush3.bf16.msra.mxu1 %v6730_v56  ;;  %4943 = vmatprep.mubr.msk.bf16.mxu1 %vm6047_vm3, %v6046_v42 }
 0x376   : > { %4941 = vmatprep.subr.bf16.mxu1 %v6046_v42 }
 0x379   : > { %4942 = vmatpush3.bf16.msra.mxu1 %v6736_v60 }
 0x37a   : > { %4947 = vmatprep.subr.bf16.mxu1 %v6046_v42 }
 0x37c   : > { %4944 = vmatmul.mubr.msk.bf16.vlgmr.msra.gmra.mrb[8].mxu1 %vm1144_vm5, %v1247_v62 }
 0x37d   : > { %4951 = vmatprep.mubr.msk.bf16.mxu1 %vm6047_vm3, %v6046_v42  ;;  %4948 = vmatpush3.bf16.msra.mxu1 %v6748_v63 }
 0x37e   : > { %4949 = vmatprep.subr.bf16.mxu1 %v6046_v42 }
 0x381   : > { %4950 = vmatpush3.bf16.msra.mxu1 %v6754_v0 }
 0x382   : > { %4955 = vmatprep.subr.bf16.mxu1 %v6046_v42 }
 0x447   : > { %v1239_v1 = vpop.f32.mrb[4].mxu1 }
 0x448   : > { %v1240_v41 = vadd.f32 %v6628_v36, %v1239_v1  ;;  %v4937_v47 = vpop.f32.mrb[5].mxu1  ;;  %v6769_v1 = vcombine.low %v6588_v25, %v6593_v26  ;;  %v6783_v25 = vcombine.low %v6595_v27, %v6597_v28 }
 0x449   : > { %v1242_v49 = vpop.f32.mrb[6].mxu1 }
 0x44a   : > { %v1245_v50 = vmax.f32 %v1240_v41, 0.0  ;;  %v4938_v52 = vpop.f32.mrb[7].mxu1  ;;  %4964 = vmatpush3.bf16.msra.mxu0 %v6783_v25 }
 0x44b   : > { %4965 = vmatprep.subr.bf16.mxu0 %v6046_v42 }
 0x44c   : > { %v1246_v53 = vpack.c.bf16 %v1245_v50, %v1245_v50 }
 0x44e   : > { %4952 = vmatmul.mubr.msk.bf16.vlgmr.msra.gmra.mrb[12].mxu1 %vm1144_vm5, %v1246_v53 }
 0x44f   : > { %v1297_v55 = vpop.f32.mrb[8].mxu1  ;;  %4959 = vmatprep.mubr.msk.bf16.mxu1 %vm6047_vm3, %v6046_v42  ;;  %4956 = vmatpush3.bf16.msra.mxu1 %v6764_v17 }
 0x450   : > { %v4945_v59 = vpop.f32.mrb[9].mxu1  ;;  %4957 = vmatprep.subr.bf16.mxu1 %v6046_v42 }
 0x451   : > { %v1300_v61 = vpop.f32.mrb[10].mxu1 }
 0x452   : > { %v4946_v62 = vpop.f32.mrb[11].mxu1 }
 0x453   : > { %4958 = vmatpush3.bf16.msra.mxu1 %v6769_v1 }
 0x454   : > { %4971 = vmatprep.subr.bf16.mxu1 %v6046_v42 }
 0x521   : > { %v1352_v41 = vpop.f32.mrb[12].mxu1 }
 0x522   : > { %v1353_v47 = vadd.f32 %v1352_v41, %v1297_v55  ;;  %v4953_v49 = vpop.f32.mrb[13].mxu1  ;;  %v6789_v55 = vcombine.low %v6599_v29, %v6601_v30 }
 0x523   : > { %v1355_v50 = vpop.f32.mrb[14].mxu1 }
 0x524   : > { %v1358_v52 = vadd.f32 %v6630_v37, %v1353_v47  ;;  %v4954_v53 = vpop.f32.mrb[15].mxu1  ;;  %4966 = vmatpush3.bf16.msra.mxu0 %v6789_v55 }
 0x525   : > { %4979 = vmatprep.subr.bf16.mxu0 %v6046_v42 }
 0x526   : > { %5654 = vtanh.f32 %v1358_v52 }
 0x530   : > { %v6775_v59 = vpop.eup %5654 }
 0x531   : > { %v1360_v61 = vmax.f32 %v6775_v59, 0.0 }
 0x533   : > { %v1361_v62 = vpack.c.bf16 %v1360_v61, %v1360_v61 }
 0x535   : > { %4960 = vmatmul.mubr.msk.bf16.vlgmr.msra.gmra.mrb[16].mxu1 %vm1144_vm5, %v1361_v62  ;;  %v6801_v62 = vcombine.low %v6606_v31, %v6611_v32 }
 0x536   : > { %4975 = vmatprep.mubr.msk.bf16.mxu1 %vm6047_vm3, %v6046_v42 }
 0x537   : > { %4972 = vmatpush3.bf16.msra.mxu1 %v6801_v62 }
 0x538   : > { %4973 = vmatprep.subr.bf16.mxu1 %v6046_v42 }
 0x608   : > { %v1411_v41 = vpop.f32.mrb[16].mxu1 }
 0x609   : > { %v1412_v47 = vadd.f32 %v6635_v38, %v1411_v41  ;;  %v4961_v49 = vpop.f32.mrb[17].mxu1  ;;  %v6807_v41 = vcombine.low %v6616_v33, %v6621_v34 }
 0x60a   : > { %v1414_v50 = vpop.f32.mrb[18].mxu1 }
 0x60b   : > { %v1417_v52 = vmax.f32 %v1412_v47, 0.0  ;;  %v4962_v53 = vpop.f32.mrb[19].mxu1  ;;  %4974 = vmatpush3.bf16.msra.mxu1 %v6807_v41 }
 0x60c   : > { %5009 = vmatprep.subr.bf16.mxu1 %v6046_v42 }
 0x60d   : > { %v1418_v61 = vpack.c.bf16 %v1417_v52, %v1417_v52 }
 0x60f   : > { %4968 = vmatmul.mubr.msk.bf16.vlgmr.msra.gmra.mrb[4].mxu0 %vm1144_vm5, %v1418_v61 }
 0x610   : > { %4980 = vmatpush3.bf16.msra.mxu0 %v6651_v43  ;;  %4981 = vmatprep.mubr.msk.bf16.mxu0 %vm6047_vm3, %v6046_v42 }
 0x611   : > { %4985 = vmatprep.subr.bf16.mxu0 %v6046_v42 }
 0x6e2   : > { %v1468_v47 = vpop.f32.mrb[4].mxu0 }
 0x6e3   : > { %v1469_v49 = vadd.f32 %v6640_v39, %v1468_v47  ;;  %v4969_v50 = vpop.f32.mrb[5].mxu0 }
 0x6e4   : > { %v1471_v52 = vpop.f32.mrb[6].mxu0 }
 0x6e5   : > { %v1474_v53 = vmax.f32 %v1469_v49, 0.0  ;;  %v4970_v61 = vpop.f32.mrb[7].mxu0 }
 0x6e7   : > { %v1475_v31 = vpack.c.bf16 %v1474_v53, %v1474_v53 }
 0x6e9   : > { %4976 = vmatmul.mubr.msk.bf16.vlgmr.msra.gmra.mrb[20].mxu1 %vm1144_vm5, %v1475_v31 }
 0x6ea   : > { %5010 = vmatpush3.bf16.msra.mxu1 %v6701_v57  ;;  %5013 = vmatprep.mubr.msk.bf16.mxu1 %vm6047_vm3, %v6046_v42 }
 0x6eb   : > { %5011 = vmatprep.subr.bf16.mxu1 %v6046_v42 }
 0x6ee   : > { %5012 = vmatpush3.bf16.msra.mxu1 %v6707_v58 }
 0x6ef   : > { %5017 = vmatprep.subr.bf16.mxu1 %v6046_v42 }
 0x7bc   : > { %v1525_v47 = vpop.f32.mrb[20].mxu1 }
 0x7bd   : > { %v1526_v49 = vadd.f32 %v6645_v40, %v1525_v47  ;;  %v4977_v50 = vpop.f32.mrb[21].mxu1 }
 0x7be   : > { %v1528_v52 = vpop.f32.mrb[22].mxu1 }
 0x7bf   : > { %v4978_v53 = vpop.f32.mrb[23].mxu1  ;;  %v1539_v61 = vpack.c.bf16 %v1526_v49, %v1526_v49  ;;  %1532 = vst.msk [vmem:[%s6493_s9] sm:$0x3] %vm1531_vm6, %v1526_v49  ;;  %v1533_v31 = vmul.f32 %v1526_v49, %v1526_v49 }
 0x7c1   : > { %4982 = vmatmul.mubr.msk.bf16.vlgmr.msra.gmra.mrb[8].mxu0 %vm889_vm4, %v1539_v61  ;;  %v1584_v33 = vpack.c.bf16 %v1533_v31, %v1533_v31  ;;  %v1534_v47 = vmul.f32 %v1533_v31, %v1526_v49 }
 0x7c2   : > { %4986 = vmatpush3.bf16.msra.mxu0 %v6660_v45  ;;  %4987 = vmatprep.mubr.msk.bf16.mxu0 %vm6047_vm3, %v6046_v42 }
 0x7c3   : > { %4991 = vmatprep.subr.bf16.mxu0 %v6046_v42  ;;  %v1629_v50 = vpack.c.bf16 %v1534_v47, %v1534_v47 }
 0x7cd   : > { %4988 = vmatmul.mubr.msk.bf16.vlgmr.msra.gmra.mrb[8].mxu0 %vm889_vm4, %v1584_v33  ;;  %v1535_v33 = vmul.f32 %v1533_v31, %v1533_v31  ;;  %v4621_v31 = vld [vmem:[%s6463_s11 + $0x2] sm:$0x3] }
 0x7ce   : > { %4992 = vmatpush3.bf16.msra.mxu0 %v6671_v48  ;;  %4993 = vmatprep.mubr.msk.bf16.mxu0 %vm6047_vm3, %v6046_v42 }
 0x7cf   : > { %4997 = vmatprep.subr.bf16.mxu0 %v6046_v42  ;;  %v1674_v52 = vpack.c.bf16 %v1535_v33, %v1535_v33  ;;  %v1536_v53 = vmul.f32 %v1535_v33, %v1526_v49 }
 0x7d1   : > { %v1719_v61 = vpack.c.bf16 %v1536_v53, %v1536_v53 }
 0x7d9   : > { %4994 = vmatmul.mubr.msk.bf16.vlgmr.msra.gmra.mrb[8].mxu0 %vm889_vm4, %v1629_v50 }
 0x7da   : > { %4998 = vmatpush3.bf16.msra.mxu0 %v6680_v51  ;;  %4999 = vmatprep.mubr.msk.bf16.mxu0 %vm6047_vm3, %v6046_v42 }
 0x7db   : > { %5003 = vmatprep.subr.bf16.mxu0 %v6046_v42 }
 0x7e5   : > { %5000 = vmatmul.mubr.msk.bf16.vlgmr.msra.gmra.mrb[8].mxu0 %vm889_vm4, %v1674_v52 }
 0x7e6   : > { %5004 = vmatpush3.bf16.msra.mxu0 %v6689_v54  ;;  %5005 = vmatprep.mubr.msk.bf16.mxu0 %vm6047_vm3, %v6046_v42 }
 0x7e7   : > { %5049 = vmatprep.subr.bf16.mxu0 %v6046_v42 }
 0x7f1   : > { %5006 = vmatmul.mubr.msk.bf16.vlgmr.msra.gmra.mrb[8].mxu0 %vm889_vm4, %v1719_v61 }
 0x7f2   : > { %5050 = vmatpush3.bf16.msra.mxu0 %v6783_v25  ;;  %5053 = vmatprep.mubr.msk.bf16.mxu0 %vm6047_vm3, %v6046_v42 }
 0x7f3   : > { %5051 = vmatprep.subr.bf16.mxu0 %v6046_v42 }
 0x7f6   : > { %5052 = vmatpush3.bf16.msra.mxu0 %v6789_v55 }
 0x7f7   : > { %5065 = vmatprep.subr.bf16.mxu0 %v6046_v42 }
 0x8c4   : > { %v1757_v47 = vpop.f32.mrb[8].mxu0 }
 0x8c5   : > { %v5410_v50 = vadd.f32 %v4621_v31, %v1757_v47  ;;  %v5007_v52 = vpop.f32.mrb[9].mxu0 }
 0x8c6   : > { %v1760_v34 = vpop.f32.mrb[10].mxu0 }
 0x8c7   : > { %v1764_v49 = vmax.f32 %v5410_v50, 0.0  ;;  %v5008_v33 = vpop.f32.mrb[11].mxu0 }
 0x8c8   : > { %v1856_v33 = vpack.c.bf16 %v6775_v59, %v6775_v59 }
 0x8c9   : > { %v1765_v53 = vpack.c.bf16 %v1764_v49, %v1764_v49 }
 0x8cb   : > { %5014 = vmatmul.mubr.msk.bf16.vlgmr.msra.gmra.mrb[24].mxu1 %vm1144_vm5, %v1765_v53 }
 0x8cc   : > { %5018 = vmatpush3.bf16.msra.mxu1 %v6717_v44  ;;  %5021 = vmatprep.mubr.msk.bf16.mxu1 %vm6047_vm3, %v6046_v42 }
 0x8cd   : > { %5019 = vmatprep.subr.bf16.mxu1 %v6046_v42 }
 0x8d0   : > { %5020 = vmatpush3.bf16.msra.mxu1 %v6723_v46 }
 0x8d1   : > { %5025 = vmatprep.subr.bf16.mxu1 %v6046_v42 }
 0x99e   : > { %v1803_v61 = vpop.f32.mrb[24].mxu1 }
 0x99f   : > { %v1804_v31 = vadd.f32 %v6623_v35, %v1803_v61  ;;  %v5015_v34 = vpop.f32.mrb[25].mxu1 }
 0x9a0   : > { %v1806_v47 = vpop.f32.mrb[26].mxu1 }
 0x9a1   : > { %v1809_v50 = vmax.f32 %v1804_v31, 0.0  ;;  %v5016_v52 = vpop.f32.mrb[27].mxu1 }
 0x9a3   : > { %v1810_v49 = vpack.c.bf16 %v1809_v50, %v1809_v50 }
 0x9a5   : > { %5022 = vmatmul.mubr.msk.bf16.vlgmr.msra.gmra.mrb[28].mxu1 %vm1144_vm5, %v1810_v49 }
 0x9a6   : > { %5026 = vmatpush3.bf16.msra.mxu1 %v6730_v56  ;;  %5029 = vmatprep.mubr.msk.bf16.mxu1 %vm6047_vm3, %v6046_v42 }
 0x9a7   : > { %5027 = vmatprep.subr.bf16.mxu1 %v6046_v42 }
 0x9aa   : > { %5028 = vmatpush3.bf16.msra.mxu1 %v6736_v60 }
 0x9ab   : > { %5033 = vmatprep.subr.bf16.mxu1 %v6046_v42 }
 0x9ad   : > { %5030 = vmatmul.mubr.msk.bf16.vlgmr.msra.gmra.mrb[32].mxu1 %vm1144_vm5, %v1856_v33 }
 0x9ae   : > { %5034 = vmatpush3.bf16.msra.mxu1 %v6748_v63  ;;  %5037 = vmatprep.mubr.msk.bf16.mxu1 %vm6047_vm3, %v6046_v42 }
 0x9af   : > { %5035 = vmatprep.subr.bf16.mxu1 %v6046_v42 }
 0x9b2   : > { %5036 = vmatpush3.bf16.msra.mxu1 %v6754_v0 }
 0x9b3   : > { %5041 = vmatprep.subr.bf16.mxu1 %v6046_v42 }
 0xa78   : > { %v1848_v53 = vpop.f32.mrb[28].mxu1 }
 0xa79   : > { %v1849_v61 = vadd.f32 %v6628_v36, %v1848_v53  ;;  %v5023_v31 = vpop.f32.mrb[29].mxu1 }
 0xa7a   : > { %v1851_v59 = vpop.f32.mrb[30].mxu1 }
 0xa7b   : > { %v1854_v34 = vmax.f32 %v1849_v61, 0.0  ;;  %v5024_v47 = vpop.f32.mrb[31].mxu1 }
 0xa7d   : > { %v1855_v50 = vpack.c.bf16 %v1854_v34, %v1854_v34 }
 0xa7f   : > { %5038 = vmatmul.mubr.msk.bf16.vlgmr.msra.gmra.mrb[36].mxu1 %vm1144_vm5, %v1855_v50 }
 0xa80   : > { %v1894_v52 = vpop.f32.mrb[32].mxu1  ;;  %5042 = vmatpush3.bf16.msra.mxu1 %v6764_v17  ;;  %5045 = vmatprep.mubr.msk.bf16.mxu1 %vm6047_vm3, %v6046_v42 }
 0xa81   : > { %v5031_v49 = vpop.f32.mrb[33].mxu1  ;;  %5043 = vmatprep.subr.bf16.mxu1 %v6046_v42 }
 0xa82   : > { %v1897_v33 = vpop.f32.mrb[34].mxu1 }
 0xa83   : > { %v5032_v32 = vpop.f32.mrb[35].mxu1 }
 0xa84   : > { %5044 = vmatpush3.bf16.msra.mxu1 %v6769_v1 }
 0xa85   : > { %5057 = vmatprep.subr.bf16.mxu1 %v6046_v42 }
 0xb52   : > { %v1937_v53 = vpop.f32.mrb[36].mxu1 }
 0xb53   : > { %v1938_v61 = vadd.f32 %v1937_v53, %v1894_v52  ;;  %v5039_v31 = vpop.f32.mrb[37].mxu1 }
 0xb54   : > { %v1940_v59 = vpop.f32.mrb[38].mxu1 }
 0xb55   : > { %v1943_v34 = vadd.f32 %v6630_v37, %v1938_v61  ;;  %v5040_v47 = vpop.f32.mrb[39].mxu1 }
 0xb57   : > { %5656 = vtanh.f32 %v1943_v34 }
 0xb61   : > { %v6883_v50 = vpop.eup %5656 }
 0xb62   : > { %v1945_v49 = vmax.f32 %v6883_v50, 0.0 }
 0xb64   : > { %v1946_v29 = vpack.c.bf16 %v1945_v49, %v1945_v49 }
 0xb66   : > { %5046 = vmatmul.mubr.msk.bf16.vlgmr.msra.gmra.mrb[40].mxu1 %vm1144_vm5, %v1946_v29 }
 0xb67   : > { %5058 = vmatpush3.bf16.msra.mxu1 %v6801_v62  ;;  %5061 = vmatprep.mubr.msk.bf16.mxu1 %vm6047_vm3, %v6046_v42 }
 0xb68   : > { %5059 = vmatprep.subr.bf16.mxu1 %v6046_v42 }
 0xb6b   : > { %5060 = vmatpush3.bf16.msra.mxu1 %v6807_v41 }
 0xb6c   : > { %5095 = vmatprep.subr.bf16.mxu1 %v6046_v42 }
 0xc39   : > { %v1984_v32 = vpop.f32.mrb[40].mxu1 }
 0xc3a   : > { %v1985_v52 = vadd.f32 %v6635_v38, %v1984_v32  ;;  %v5047_v33 = vpop.f32.mrb[41].mxu1 }
 0xc3b   : > { %v1987_v53 = vpop.f32.mrb[42].mxu1 }
 0xc3c   : > { %v1990_v61 = vmax.f32 %v1985_v52, 0.0  ;;  %v5048_v31 = vpop.f32.mrb[43].mxu1 }
 0xc3e   : > { %v1991_v59 = vpack.c.bf16 %v1990_v61, %v1990_v61 }
 0xc40   : > { %5054 = vmatmul.mubr.msk.bf16.vlgmr.msra.gmra.mrb[12].mxu0 %vm1144_vm5, %v1991_v59 }
 0xc41   : > { %5066 = vmatpush3.bf16.msra.mxu0 %v6651_v43  ;;  %5067 = vmatprep.mubr.msk.bf16.mxu0 %vm6047_vm3, %v6046_v42 }
 0xc42   : > { %5071 = vmatprep.subr.bf16.mxu0 %v6046_v42 }
 0xd13   : > { %v2029_v29 = vpop.f32.mrb[12].mxu0 }
 0xd14   : > { %v2030_v34 = vadd.f32 %v6640_v39, %v2029_v29  ;;  %v5055_v47 = vpop.f32.mrb[13].mxu0 }
 0xd15   : > { %v2032_v49 = vpop.f32.mrb[14].mxu0 }
 0xd16   : > { %v2035_v32 = vmax.f32 %v2030_v34, 0.0  ;;  %v5056_v33 = vpop.f32.mrb[15].mxu0 }
 0xd18   : > { %v2036_v52 = vpack.c.bf16 %v2035_v32, %v2035_v32 }
 0xd1a   : > { %5062 = vmatmul.mubr.msk.bf16.vlgmr.msra.gmra.mrb[44].mxu1 %vm1144_vm5, %v2036_v52 }
 0xd1b   : > { %5096 = vmatpush3.bf16.msra.mxu1 %v6701_v57  ;;  %5099 = vmatprep.mubr.msk.bf16.mxu1 %vm6047_vm3, %v6046_v42 }
 0xd1c   : > { %5097 = vmatprep.subr.bf16.mxu1 %v6046_v42 }
 0xd1f   : > { %5098 = vmatpush3.bf16.msra.mxu1 %v6707_v58 }
 0xd20   : > { %5103 = vmatprep.subr.bf16.mxu1 %v6046_v42 }
 0xded   : > { %v2074_v53 = vpop.f32.mrb[44].mxu1 }
 0xdee   : > { %v2075_v61 = vadd.f32 %v6645_v40, %v2074_v53  ;;  %v5063_v31 = vpop.f32.mrb[45].mxu1 }
 0xdef   : > { %v2077_v59 = vpop.f32.mrb[46].mxu1 }
 0xdf0   : > { %v5064_v29 = vpop.f32.mrb[47].mxu1  ;;  %v2088_v34 = vpack.c.bf16 %v2075_v61, %v2075_v61  ;;  %4634 = vst.msk [vmem:[%s6493_s9 + $0x2] sm:$0x3] %vm1531_vm6, %v2075_v61  ;;  %v2082_v47 = vmul.f32 %v2075_v61, %v2075_v61 }
 0xdf1   : > { %v4635_v29 = vld [vmem:[%s6463_s11 + $0x4] sm:$0x3] }
 0xdf2   : > { %5068 = vmatmul.mubr.msk.bf16.vlgmr.msra.gmra.mrb[16].mxu0 %vm889_vm4, %v2088_v34  ;;  %v2133_v49 = vpack.c.bf16 %v2082_v47, %v2082_v47  ;;  %v2083_v32 = vmul.f32 %v2082_v47, %v2075_v61  ;;  %v2084_v52 = vmul.f32 %v2082_v47, %v2082_v47 }
 0xdf3   : > { %5072 = vmatpush3.bf16.msra.mxu0 %v6660_v45  ;;  %5073 = vmatprep.mubr.msk.bf16.mxu0 %vm6047_vm3, %v6046_v42 }
 0xdf4   : > { %5077 = vmatprep.subr.bf16.mxu0 %v6046_v42  ;;  %v2178_v33 = vpack.c.bf16 %v2083_v32, %v2083_v32  ;;  %v2223_v53 = vpack.c.bf16 %v2084_v52, %v2084_v52  ;;  %v2085_v31 = vmul.f32 %v2084_v52, %v2075_v61 }
 0xdf6   : > { %v2268_v59 = vpack.c.bf16 %v2085_v31, %v2085_v31 }
 0xdfe   : > { %5074 = vmatmul.mubr.msk.bf16.vlgmr.msra.gmra.mrb[16].mxu0 %vm889_vm4, %v2133_v49 }
 0xdff   : > { %5078 = vmatpush3.bf16.msra.mxu0 %v6671_v48  ;;  %5079 = vmatprep.mubr.msk.bf16.mxu0 %vm6047_vm3, %v6046_v42 }
 0xe00   : > { %5083 = vmatprep.subr.bf16.mxu0 %v6046_v42 }
 0xe0a   : > { %5080 = vmatmul.mubr.msk.bf16.vlgmr.msra.gmra.mrb[16].mxu0 %vm889_vm4, %v2178_v33 }
 0xe0b   : > { %5084 = vmatpush3.bf16.msra.mxu0 %v6680_v51  ;;  %5085 = vmatprep.mubr.msk.bf16.mxu0 %vm6047_vm3, %v6046_v42 }
 0xe0c   : > { %5089 = vmatprep.subr.bf16.mxu0 %v6046_v42 }
 0xe16   : > { %5086 = vmatmul.mubr.msk.bf16.vlgmr.msra.gmra.mrb[16].mxu0 %vm889_vm4, %v2223_v53 }
 0xe17   : > { %5090 = vmatpush3.bf16.msra.mxu0 %v6689_v54  ;;  %5091 = vmatprep.mubr.msk.bf16.mxu0 %vm6047_vm3, %v6046_v42 }
 0xe18   : > { %5135 = vmatprep.subr.bf16.mxu0 %v6046_v42 }
 0xe22   : > { %5092 = vmatmul.mubr.msk.bf16.vlgmr.msra.gmra.mrb[16].mxu0 %vm889_vm4, %v2268_v59 }
 0xe23   : > { %5136 = vmatpush3.bf16.msra.mxu0 %v6783_v25  ;;  %5139 = vmatprep.mubr.msk.bf16.mxu0 %vm6047_vm3, %v6046_v42 }
 0xe24   : > { %5137 = vmatprep.subr.bf16.mxu0 %v6046_v42 }
 0xe27   : > { %5138 = vmatpush3.bf16.msra.mxu0 %v6789_v55 }
 0xe28   : > { %5151 = vmatprep.subr.bf16.mxu0 %v6046_v42 }
 0xef5   : > { %v2306_v34 = vpop.f32.mrb[16].mxu0 }
 0xef6   : > { %v5411_v47 = vadd.f32 %v4635_v29, %v2306_v34  ;;  %v5093_v49 = vpop.f32.mrb[17].mxu0 }
 0xef7   : > { %v2309_v32 = vpop.f32.mrb[18].mxu0 }
 0xef8   : > { %v2313_v61 = vmax.f32 %v5411_v47, 0.0  ;;  %v5094_v33 = vpop.f32.mrb[19].mxu0  ;;  %v2405_v32 = vpack.c.bf16 %v6883_v50, %v6883_v50 }
 0xefa   : > { %v2314_v52 = vpack.c.bf16 %v2313_v61, %v2313_v61 }
 0xefc   : > { %5100 = vmatmul.mubr.msk.bf16.vlgmr.msra.gmra.mrb[48].mxu1 %vm1144_vm5, %v2314_v52 }
 0xefd   : > { %5104 = vmatpush3.bf16.msra.mxu1 %v6717_v44  ;;  %5107 = vmatprep.mubr.msk.bf16.mxu1 %vm6047_vm3, %v6046_v42 }
 0xefe   : > { %5105 = vmatprep.subr.bf16.mxu1 %v6046_v42 }
 0xf01   : > { %5106 = vmatpush3.bf16.msra.mxu1 %v6723_v46 }
 0xf02   : > { %5111 = vmatprep.subr.bf16.mxu1 %v6046_v42 }
 0xfcf   : > { %v2352_v53 = vpop.f32.mrb[48].mxu1 }
 0xfd0   : > { %v2353_v31 = vadd.f32 %v6623_v35, %v2352_v53  ;;  %v5101_v59 = vpop.f32.mrb[49].mxu1 }
 0xfd1   : > { %v2355_v29 = vpop.f32.mrb[50].mxu1 }
 0xfd2   : > { %v2358_v34 = vmax.f32 %v2353_v31, 0.0  ;;  %v5102_v47 = vpop.f32.mrb[51].mxu1 }
 0xfd4   : > { %v2359_v49 = vpack.c.bf16 %v2358_v34, %v2358_v34 }
 0xfd6   : > { %5108 = vmatmul.mubr.msk.bf16.vlgmr.msra.gmra.mrb[52].mxu1 %vm1144_vm5, %v2359_v49 }
 0xfd7   : > { %5112 = vmatpush3.bf16.msra.mxu1 %v6730_v56  ;;  %5115 = vmatprep.mubr.msk.bf16.mxu1 %vm6047_vm3, %v6046_v42 }
 0xfd8   : > { %5113 = vmatprep.subr.bf16.mxu1 %v6046_v42 }
 0xfdb   : > { %5114 = vmatpush3.bf16.msra.mxu1 %v6736_v60 }
 0xfdc   : > { %5119 = vmatprep.subr.bf16.mxu1 %v6046_v42 }
 0xfde   : > { %5116 = vmatmul.mubr.msk.bf16.vlgmr.msra.gmra.mrb[56].mxu1 %vm1144_vm5, %v2405_v32 }
 0xfdf   : > { %5120 = vmatpush3.bf16.msra.mxu1 %v6748_v63  ;;  %5123 = vmatprep.mubr.msk.bf16.mxu1 %vm6047_vm3, %v6046_v42 }
 0xfe0   : > { %5121 = vmatprep.subr.bf16.mxu1 %v6046_v42 }
 0xfe3   : > { %5122 = vmatpush3.bf16.msra.mxu1 %v6754_v0 }
 0xfe4   : > { %5127 = vmatprep.subr.bf16.mxu1 %v6046_v42 }
0x10a9   : > { %v2397_v61 = vpop.f32.mrb[52].mxu1 }
0x10aa   : > { %v2398_v33 = vadd.f32 %v6628_v36, %v2397_v61  ;;  %v5109_v52 = vpop.f32.mrb[53].mxu1 }
0x10ab   : > { %v2400_v50 = vpop.f32.mrb[54].mxu1 }
0x10ac   : > { %v2403_v53 = vmax.f32 %v2398_v33, 0.0  ;;  %v5110_v31 = vpop.f32.mrb[55].mxu1 }
0x10ae   : > { %v2404_v59 = vpack.c.bf16 %v2403_v53, %v2403_v53 }
0x10b0   : > { %5124 = vmatmul.mubr.msk.bf16.vlgmr.msra.gmra.mrb[60].mxu1 %vm1144_vm5, %v2404_v59 }
0x10b1   : > { %v2443_v29 = vpop.f32.mrb[56].mxu1  ;;  %5128 = vmatpush3.bf16.msra.mxu1 %v6764_v17  ;;  %5131 = vmatprep.mubr.msk.bf16.mxu1 %vm6047_vm3, %v6046_v42 }
0x10b2   : > { %v5117_v34 = vpop.f32.mrb[57].mxu1  ;;  %5129 = vmatprep.subr.bf16.mxu1 %v6046_v42 }
0x10b3   : > { %v2446_v47 = vpop.f32.mrb[58].mxu1 }
0x10b4   : > { %v5118_v49 = vpop.f32.mrb[59].mxu1 }
0x10b5   : > { %5130 = vmatpush3.bf16.msra.mxu1 %v6769_v1 }
0x10b6   : > { %5143 = vmatprep.subr.bf16.mxu1 %v6046_v42 }
0x1183   : > { %v2486_v32 = vpop.f32.mrb[60].mxu1 }
0x1184   : > { %v2487_v61 = vadd.f32 %v2486_v32, %v2443_v29  ;;  %v5125_v33 = vpop.f32.mrb[61].mxu1 }
0x1185   : > { %v2489_v52 = vpop.f32.mrb[62].mxu1 }
0x1186   : > { %v2492_v50 = vadd.f32 %v6630_v37, %v2487_v61  ;;  %v5126_v53 = vpop.f32.mrb[63].mxu1 }
0x1188   : > { %5658 = vtanh.f32 %v2492_v50 }
0x1192   : > { %v6971_v31 = vpop.eup %5658 }
0x1193   : > { %v2494_v59 = vmax.f32 %v6971_v31, 0.0 }
0x1195   : > { %v2495_v34 = vpack.c.bf16 %v2494_v59, %v2494_v59 }
0x1197   : > { %5132 = vmatmul.mubr.msk.bf16.vlgmr.msra.gmra.mrb[64].mxu1 %vm1144_vm5, %v2495_v34 }
0x1198   : > { %5144 = vmatpush3.bf16.msra.mxu1 %v6801_v62  ;;  %5147 = vmatprep.mubr.msk.bf16.mxu1 %vm6047_vm3, %v6046_v42 }
0x1199   : > { %5145 = vmatprep.subr.bf16.mxu1 %v6046_v42 }
0x119c   : > { %5146 = vmatpush3.bf16.msra.mxu1 %v6807_v41 }
0x119d   : > { %5181 = vmatprep.subr.bf16.mxu1 %v6046_v42 }
0x126a   : > { %v2533_v29 = vpop.f32.mrb[64].mxu1 }
0x126b   : > { %v2534_v47 = vadd.f32 %v6635_v38, %v2533_v29  ;;  %v5133_v49 = vpop.f32.mrb[65].mxu1 }
0x126c   : > { %v2536_v32 = vpop.f32.mrb[66].mxu1 }
0x126d   : > { %v2539_v61 = vmax.f32 %v2534_v47, 0.0  ;;  %v5134_v33 = vpop.f32.mrb[67].mxu1 }
0x126f   : > { %v2540_v52 = vpack.c.bf16 %v2539_v61, %v2539_v61 }
0x1271   : > { %5140 = vmatmul.mubr.msk.bf16.vlgmr.msra.gmra.mrb[20].mxu0 %vm1144_vm5, %v2540_v52 }
0x1272   : > { %5152 = vmatpush3.bf16.msra.mxu0 %v6651_v43  ;;  %5153 = vmatprep.mubr.msk.bf16.mxu0 %vm6047_vm3, %v6046_v42 }
0x1273   : > { %5157 = vmatprep.subr.bf16.mxu0 %v6046_v42 }
0x1344   : > { %v2578_v50 = vpop.f32.mrb[20].mxu0 }
0x1345   : > { %v2579_v53 = vadd.f32 %v6640_v39, %v2578_v50  ;;  %v5141_v59 = vpop.f32.mrb[21].mxu0 }
0x1346   : > { %v2581_v34 = vpop.f32.mrb[22].mxu0 }
0x1347   : > { %v2584_v29 = vmax.f32 %v2579_v53, 0.0  ;;  %v5142_v49 = vpop.f32.mrb[23].mxu0 }
0x1349   : > { %v2585_v47 = vpack.c.bf16 %v2584_v29, %v2584_v29 }
0x134b   : > { %5148 = vmatmul.mubr.msk.bf16.vlgmr.msra.gmra.mrb[68].mxu1 %vm1144_vm5, %v2585_v47 }
0x134c   : > { %5182 = vmatpush3.bf16.msra.mxu1 %v6701_v57  ;;  %5185 = vmatprep.mubr.msk.bf16.mxu1 %vm6047_vm3, %v6046_v42 }
0x134d   : > { %5183 = vmatprep.subr.bf16.mxu1 %v6046_v42 }
0x1350   : > { %5184 = vmatpush3.bf16.msra.mxu1 %v6707_v58 }
0x1351   : > { %5189 = vmatprep.subr.bf16.mxu1 %v6046_v42 }
0x141e   : > { %v2623_v43 = vpop.f32.mrb[68].mxu1 }
0x141f   : > { %v2624_v32 = vadd.f32 %v6645_v40, %v2623_v43  ;;  %v5149_v61 = vpop.f32.mrb[69].mxu1 }
0x1420   : > { %v2626_v33 = vpop.f32.mrb[70].mxu1 }
0x1421   : > { %v5150_v52 = vpop.f32.mrb[71].mxu1  ;;  %v2637_v50 = vpack.c.bf16 %v2624_v32, %v2624_v32  ;;  %4648 = vst.msk [vmem:[%s6493_s9 + $0x4] sm:$0x3] %vm1531_vm6, %v2624_v32  ;;  %v2631_v57 = vmul.f32 %v2624_v32, %v2624_v32 }
0x1423   : > { %5154 = vmatmul.mubr.msk.bf16.vlgmr.msra.gmra.mrb[24].mxu0 %vm889_vm4, %v2637_v50  ;;  %v2682_v58 = vpack.c.bf16 %v2631_v57, %v2631_v57  ;;  %v2632_v53 = vmul.f32 %v2631_v57, %v2624_v32 }
0x1424   : > { %5158 = vmatpush3.bf16.msra.mxu0 %v6660_v45  ;;  %5159 = vmatprep.mubr.msk.bf16.mxu0 %vm6047_vm3, %v6046_v42  ;;  %v2633_v45 = vmul.f32 %v2631_v57, %v2631_v57 }
0x1425   : > { %5163 = vmatprep.subr.bf16.mxu0 %v6046_v42  ;;  %v2727_v59 = vpack.c.bf16 %v2632_v53, %v2632_v53 }
0x1426   : > { %v2772_v34 = vpack.c.bf16 %v2633_v45, %v2633_v45 }
0x142f   : > { %5160 = vmatmul.mubr.msk.bf16.vlgmr.msra.gmra.mrb[24].mxu0 %vm889_vm4, %v2682_v58 }
0x1430   : > { %5164 = vmatpush3.bf16.msra.mxu0 %v6671_v48  ;;  %5165 = vmatprep.mubr.msk.bf16.mxu0 %vm6047_vm3, %v6046_v42  ;;  %v2634_v48 = vmul.f32 %v2633_v45, %v2624_v32 }
0x1431   : > { %5169 = vmatprep.subr.bf16.mxu0 %v6046_v42 }
0x1432   : > { %v2817_v29 = vpack.c.bf16 %v2634_v48, %v2634_v48 }
0x143b   : > { %5166 = vmatmul.mubr.msk.bf16.vlgmr.msra.gmra.mrb[24].mxu0 %vm889_vm4, %v2727_v59 }
0x143c   : > { %5170 = vmatpush3.bf16.msra.mxu0 %v6680_v51  ;;  %5171 = vmatprep.mubr.msk.bf16.mxu0 %vm6047_vm3, %v6046_v42  ;;  %v4649_v51 = vld [vmem:[%s6463_s11 + $0x6] sm:$0x3] }
0x143d   : > { %5175 = vmatprep.subr.bf16.mxu0 %v6046_v42 }
0x1447   : > { %5172 = vmatmul.mubr.msk.bf16.vlgmr.msra.gmra.mrb[24].mxu0 %vm889_vm4, %v2772_v34 }
0x1448   : > { %5176 = vmatpush3.bf16.msra.mxu0 %v6689_v54  ;;  %5177 = vmatprep.mubr.msk.bf16.mxu0 %vm6047_vm3, %v6046_v42 }
0x1449   : > { %5221 = vmatprep.subr.bf16.mxu0 %v6046_v42 }
0x1453   : > { %5178 = vmatmul.mubr.msk.bf16.vlgmr.msra.gmra.mrb[24].mxu0 %vm889_vm4, %v2817_v29 }
0x1454   : > { %5222 = vmatpush3.bf16.msra.mxu0 %v6783_v25  ;;  %5225 = vmatprep.mubr.msk.bf16.mxu0 %vm6047_vm3, %v6046_v42 }
0x1455   : > { %5223 = vmatprep.subr.bf16.mxu0 %v6046_v42 }
0x1458   : > { %5224 = vmatpush3.bf16.msra.mxu0 %v6789_v55 }
0x1526   : > { %v2855_v54 = vpop.f32.mrb[24].mxu0 }
0x1527   : > { %v5412_v49 = vadd.f32 %v4649_v51, %v2855_v54  ;;  %v5179_v47 = vpop.f32.mrb[25].mxu0 }
0x1528   : > { %v2858_v43 = vpop.f32.mrb[26].mxu0 }
0x1529   : > { %v2862_v61 = vmax.f32 %v5412_v49, 0.0  ;;  %v5180_v33 = vpop.f32.mrb[27].mxu0 }
0x152b   : > { %v2863_v32 = vpack.c.bf16 %v2862_v61, %v2862_v61 }
0x152d   : > { %5186 = vmatmul.mubr.msk.bf16.vlgmr.msra.gmra.mrb[72].mxu1 %vm1144_vm5, %v2863_v32 }
0x152e   : > { %5190 = vmatpush3.bf16.msra.mxu1 %v6717_v44  ;;  %5193 = vmatprep.mubr.msk.bf16.mxu1 %vm6047_vm3, %v6046_v42  ;;  %v2954_v44 = vpack.c.bf16 %v6971_v31, %v6971_v31 }
0x152f   : > { %5191 = vmatprep.subr.bf16.mxu1 %v6046_v42 }
0x1532   : > { %5192 = vmatpush3.bf16.msra.mxu1 %v6723_v46 }
0x1533   : > { %5197 = vmatprep.subr.bf16.mxu1 %v6046_v42 }
0x1600   : > { %v2901_v25 = vpop.f32.mrb[72].mxu1 }
0x1601   : > { %v2902_v55 = vadd.f32 %v6623_v35, %v2901_v25  ;;  %v5187_v52 = vpop.f32.mrb[73].mxu1 }
0x1602   : > { %v2904_v50 = vpop.f32.mrb[74].mxu1 }
0x1603   : > { %v2907_v57 = vmax.f32 %v2902_v55, 0.0  ;;  %v5188_v58 = vpop.f32.mrb[75].mxu1 }
0x1605   : > { %v2908_v53 = vpack.c.bf16 %v2907_v57, %v2907_v57 }
0x1607   : > { %5194 = vmatmul.mubr.msk.bf16.vlgmr.msra.gmra.mrb[76].mxu1 %vm1144_vm5, %v2908_v53 }
0x1608   : > { %5198 = vmatpush3.bf16.msra.mxu1 %v6730_v56  ;;  %5201 = vmatprep.mubr.msk.bf16.mxu1 %vm6047_vm3, %v6046_v42 }
0x1609   : > { %5199 = vmatprep.subr.bf16.mxu1 %v6046_v42 }
0x160c   : > { %5200 = vmatpush3.bf16.msra.mxu1 %v6736_v60 }
0x160d   : > { %5205 = vmatprep.subr.bf16.mxu1 %v6046_v42 }
0x160f   : > { %5202 = vmatmul.mubr.msk.bf16.vlgmr.msra.gmra.mrb[80].mxu1 %vm1144_vm5, %v2954_v44 }
0x1610   : > { %5206 = vmatpush3.bf16.msra.mxu1 %v6748_v63  ;;  %5209 = vmatprep.mubr.msk.bf16.mxu1 %vm6047_vm3, %v6046_v42 }
0x1611   : > { %5207 = vmatprep.subr.bf16.mxu1 %v6046_v42 }
0x1614   : > { %5208 = vmatpush3.bf16.msra.mxu1 %v6754_v0 }
0x1615   : > { %5213 = vmatprep.subr.bf16.mxu1 %v6046_v42 }
0x16da   : > { %v2946_v46 = vpop.f32.mrb[76].mxu1 }
0x16db   : > { %v2947_v56 = vadd.f32 %v6628_v36, %v2946_v46  ;;  %v5195_v60 = vpop.f32.mrb[77].mxu1 }
0x16dc   : > { %v2949_v31 = vpop.f32.mrb[78].mxu1 }
0x16dd   : > { %v2952_v59 = vmax.f32 %v2947_v56, 0.0  ;;  %v5196_v45 = vpop.f32.mrb[79].mxu1 }
0x16df   : > { %v2953_v34 = vpack.c.bf16 %v2952_v59, %v2952_v59 }
0x16e1   : > { %5210 = vmatmul.mubr.msk.bf16.vlgmr.msra.gmra.mrb[84].mxu1 %vm1144_vm5, %v2953_v34 }
0x16e2   : > { %v2992_v63 = vpop.f32.mrb[80].mxu1  ;;  %5214 = vmatpush3.bf16.msra.mxu1 %v6764_v17  ;;  %5217 = vmatprep.mubr.msk.bf16.mxu1 %vm6047_vm3, %v6046_v42 }
0x16e3   : > { %v5203_v48 = vpop.f32.mrb[81].mxu1  ;;  %5215 = vmatprep.subr.bf16.mxu1 %v6046_v42 }
0x16e4   : > { %v2995_v0 = vpop.f32.mrb[82].mxu1 }
0x16e5   : > { %v5204_v29 = vpop.f32.mrb[83].mxu1 }
0x16e6   : > { %5216 = vmatpush3.bf16.msra.mxu1 %v6769_v1 }
0x16e7   : > { %5229 = vmatprep.subr.bf16.mxu1 %v6046_v42 }
0x17b4   : > { %v3035_v51 = vpop.f32.mrb[84].mxu1 }
0x17b5   : > { %v3036_v54 = vadd.f32 %v3035_v51, %v2992_v63  ;;  %v5211_v49 = vpop.f32.mrb[85].mxu1 }
0x17b6   : > { %v3038_v47 = vpop.f32.mrb[86].mxu1 }
0x17b7   : > { %v3041_v43 = vadd.f32 %v6630_v37, %v3036_v54  ;;  %v5212_v61 = vpop.f32.mrb[87].mxu1 }
0x17b9   : > { %5660 = vtanh.f32 %v3041_v43 }
0x17c3   : > { %v5661_v17 = vpop.eup %5660 }
0x17c4   : > { %3181 = vst.msk [vmem:[#allocation2] sm:$0x3] %vm3180_vm7, %v5661_v17  ;;  %v3043_v33 = vmax.f32 %v5661_v17, 0.0 }
0x17c6   : > { %v3044_v32 = vpack.c.bf16 %v3043_v33, %v3043_v33 }
0x17c8   : > { %5218 = vmatmul.mubr.msk.bf16.vlgmr.msra.gmra.mrb[88].mxu1 %vm1144_vm5, %v3044_v32 }
0x17c9   : > { %5230 = vmatpush3.bf16.msra.mxu1 %v6801_v62  ;;  %5233 = vmatprep.mubr.msk.bf16.mxu1 %vm6047_vm3, %v6046_v42 }
0x17ca   : > { %5231 = vmatprep.subr.bf16.mxu1 %v6046_v42 }
0x17cd   : > { %5232 = vmatpush3.bf16.msra.mxu1 %v6807_v41 }
0x189b   : > { %v3082_v1 = vpop.f32.mrb[88].mxu1 }
0x189c   : > { %v3083_v25 = vadd.f32 %v6635_v38, %v3082_v1  ;;  %v5219_v55 = vpop.f32.mrb[89].mxu1 }
0x189d   : > { %v3085_v52 = vpop.f32.mrb[90].mxu1 }
0x189e   : > { %v3088_v50 = vmax.f32 %v3083_v25, 0.0  ;;  %v5220_v57 = vpop.f32.mrb[91].mxu1 }
0x18a0   : > { %v3089_v58 = vpack.c.bf16 %v3088_v50, %v3088_v50 }
0x18a2   : > { %5226 = vmatmul.mubr.msk.bf16.vlgmr.msra.gmra.mrb[28].mxu0 %vm1144_vm5, %v3089_v58 }
0x1975   : > { %v3127_v53 = vpop.f32.mrb[28].mxu0 }
0x1976   : > { %v3128_v62 = vadd.f32 %v6640_v39, %v3127_v53  ;;  %v5227_v44 = vpop.f32.mrb[29].mxu0 }
0x1977   : > { %v3130_v46 = vpop.f32.mrb[30].mxu0 }
0x1978   : > { %v3133_v56 = vmax.f32 %v3128_v62, 0.0  ;;  %v5228_v42 = vpop.f32.mrb[31].mxu0 }
0x197a   : > { %v3134_v60 = vpack.c.bf16 %v3133_v56, %v3133_v56 }
0x197c   : > { %5234 = vmatmul.mubr.msk.bf16.vlgmr.msra.gmra.mrb[92].mxu1 %vm1144_vm5, %v3134_v60 }
0x1a4f   : > { %v3172_v41 = vpop.f32.mrb[92].mxu1 }
0x1a50   : > { %v3173_v31 = vadd.f32 %v6645_v40, %v3172_v41  ;;  %v5235_v59 = vpop.f32.mrb[93].mxu1 }
0x1a51   : > { %v3175_v45 = vpop.f32.mrb[94].mxu1 }
0x1a52   : > { %4662 = vst.msk [vmem:[%s6493_s9 + $0x6] sm:$0x3] %vm1531_vm6, %v3173_v31  ;;  %3182 = vst.msk [vmem:[#allocation3] sm:$0x3] %vm1531_vm6, %v3173_v31  ;;  %v5236_v34 = vpop.f32.mrb[95].mxu1 }
0x1a53 PF: > { %p4663_p10 = scmp.ne.s32.totalorder %s6174_s2, 1 }
0x1a54   : > { %vm3198_vm8 = vcmask (!%p4663_p10), 1041408   ;;  %v6048_v48 = vmov (!%p4663_p10), 0.0   ;;  %vm6049_vm9 = vmmov (!%p4663_p10), 0   ;;  %vm3194_vm10 = vcmask (!%p4663_p10), 31744   ;;  %v3192_v1 = vld [vmem:[%s6463_s11] sm:$0x3] (!%p4663_p10) }
0x1a55   : > { %3185 = sbr.rel (%p4663_p10) target bundleno = 9917 (0x26bd), region = 156  ;;  %5237 = vmatprep.subr.bf16.mxu0 (!%p4663_p10), %v6048_v48  ;;  %v7076_v0 = vsel (!%p4663_p10), %vm3198_vm8, %v6497_v2, 0  ;;  %5239 = vmatprep.mubr.msk.bf16.mxu0 (!%p4663_p10), %vm6049_vm9, %v6048_v48  ;;  %v7085_v51 = vsel (!%p4663_p10), %vm3198_vm8, %v6499_v3, 0  ;;  %v7096_v49 = vsel (!%p4663_p10), %vm3198_vm8, %v6501_v4, 0  ;;  %v7105_v43 = vsel (!%p4663_p10), %vm3198_vm8, %v6503_v5, 0 }
0x1a56   : > { %5238 = vmatpush3.bf16.msra.mxu0 (!%p4663_p10), %v7076_v0  ;;  %5267 = vmatprep.subr.bf16.mxu1 (!%p4663_p10), %v6048_v48  ;;  %v7114_v17 = vsel (!%p4663_p10), %vm3198_vm8, %v6505_v6, 0  ;;  %v7126_v6 = vcombine.low (!%p4663_p10), %v6510_v7, %v6515_v8  ;;  %v7132_v32 = vcombine.low (!%p4663_p10), %v6520_v9, %v6525_v10  ;;  %vm3449_vm11 = vcmask (!%p4663_p10), 261120  }
0x1a57   : > { %5243 = vmatprep.subr.bf16.mxu0 (!%p4663_p10), %v6048_v48  ;;  %5271 = vmatprep.mubr.msk.bf16.mxu1 (!%p4663_p10), %vm6049_vm9, %v6048_v48  ;;  %v7142_v9 = vcombine.low (!%p4663_p10), %v6530_v11, %v6535_v12  ;;  %v7148_v10 = vcombine.low (!%p4663_p10), %v6540_v13, %v6545_v14  ;;  %v7155_v12 = vcombine.low (!%p4663_p10), %v6567_v19, %v6569_v20  ;;  %v3186_v14 = vld [vmem:[#allocation2] sm:$0x3] (!%p4663_p10)  ;;  %v7437_v20 = vld [vmem:[#allocation29_spill] sm:$0xff] (!%p4663_p10)  ;;  %vm3836_vm12 = vcmask (!%p4663_p10), 25600  }
0x1a58   : > { %5268 = vmatpush3.bf16.msra.mxu1 (!%p4663_p10), %v7126_v6  ;;  %v7161_v13 = vcombine.low (!%p4663_p10), %v6571_v21, %v6573_v22  ;;  %v3552_v42 = vpack.c.bf16 (!%p4663_p10), %v3186_v14, %v3186_v14  ;;  %v7173_v19 = vcombine.low (!%p4663_p10), %v6550_v15, %v6555_v16  ;;  %v7179_v21 = vcombine.low (!%p4663_p10), %v7437_v20, %v6565_v18 }
0x1a59   : > { %v3187_v63 = vld [vmem:[#allocation3] sm:$0x3] (!%p4663_p10)  ;;  %5269 = vmatprep.subr.bf16.mxu1 (!%p4663_p10), %v6048_v48  ;;  %vm4387_vm13 = vcmask (!%p4663_p10), 254976  }
0x1a5a   : > { %v3193_v29 = vpack.c.bf16 (!%p4663_p10), %v3187_v63, %v3187_v63  ;;  %v3188_v2 = vmul.f32 (!%p4663_p10), %v3187_v63, %v3187_v63 }
0x1a5c   : > { %5240 = vmatmul.mubr.msk.bf16.vlgmr.msra.gmra.mrb[0].mxu0 %vm3194_vm10, %v3193_v29  ;;  %v3243_v54 = vpack.c.bf16 %v3188_v2, %v3188_v2  ;;  %v3189_v3 = vmul.f32 %v3188_v2, %v3187_v63  ;;  %v3190_v4 = vmul.f32 %v3188_v2, %v3188_v2  ;;  %5270 = vmatpush3.bf16.msra.mxu1 %v7132_v32  ;;  %v7438_v2 = vld [vmem:[#allocation30_spill] sm:$0xff] }
0x1a5d   : > { %5244 = vmatpush3.bf16.msra.mxu0 %v7085_v51  ;;  %5245 = vmatprep.mubr.msk.bf16.mxu0 %vm6049_vm9, %v6048_v48  ;;  %v7189_v29 = vcombine.low %v6578_v23, %v6583_v24 }
0x1a5e   : > { %5249 = vmatprep.subr.bf16.mxu0 %v6048_v48  ;;  %v3291_v47 = vpack.c.bf16 %v3189_v3, %v3189_v3  ;;  %v3339_v61 = vpack.c.bf16 %v3190_v4, %v3190_v4  ;;  %v3191_v5 = vmul.f32 %v3190_v4, %v3187_v63  ;;  %5275 = vmatprep.subr.bf16.mxu1 %v6048_v48 }
0x1a60   : > { %v3387_v33 = vpack.c.bf16 %v3191_v5, %v3191_v5 }
0x1a68   : > { %5246 = vmatmul.mubr.msk.bf16.vlgmr.msra.gmra.mrb[0].mxu0 %vm3194_vm10, %v3243_v54  ;;  %v7194_v54 = vcombine.low %v7438_v2, %v6593_v26 }
0x1a69   : > { %5250 = vmatpush3.bf16.msra.mxu0 %v7096_v49  ;;  %5251 = vmatprep.mubr.msk.bf16.mxu0 %vm6049_vm9, %v6048_v48 }
0x1a6a   : > { %5255 = vmatprep.subr.bf16.mxu0 %v6048_v48 }
0x1a74   : > { %5252 = vmatmul.mubr.msk.bf16.vlgmr.msra.gmra.mrb[0].mxu0 %vm3194_vm10, %v3291_v47 }
0x1a75   : > { %5256 = vmatpush3.bf16.msra.mxu0 %v7105_v43  ;;  %5257 = vmatprep.mubr.msk.bf16.mxu0 %vm6049_vm9, %v6048_v48 }
0x1a76   : > { %5261 = vmatprep.subr.bf16.mxu0 %v6048_v48 }
0x1a80   : > { %5258 = vmatmul.mubr.msk.bf16.vlgmr.msra.gmra.mrb[0].mxu0 %vm3194_vm10, %v3339_v61 }
0x1a81   : > { %5262 = vmatpush3.bf16.msra.mxu0 %v7114_v17  ;;  %5263 = vmatprep.mubr.msk.bf16.mxu0 %vm6049_vm9, %v6048_v48 }
0x1a82   : > { %5307 = vmatprep.subr.bf16.mxu0 %v6048_v48 }
0x1a8c   : > { %5264 = vmatmul.mubr.msk.bf16.vlgmr.msra.gmra.mrb[0].mxu0 %vm3194_vm10, %v3387_v33 }
0x1a8d   : > { %5311 = vmatprep.mubr.msk.bf16.mxu0 %vm6049_vm9, %v6048_v48 }
0x1b5f   : > { %v3428_v25 = vpop.f32.mrb[0].mxu0 }
0x1b60   : > { %v5477_v55 = vadd.f32 %v3428_v25, %v3192_v1  ;;  %v5265_v52 = vpop.f32.mrb[1].mxu0  ;;  %v7208_v1 = vcombine.low %v6595_v27, %v6597_v28  ;;  %v7439_v25 = vld [vmem:[#allocation31_spill] sm:$0xff] }
0x1b61   : > { %v3431_v50 = vpop.f32.mrb[2].mxu0 }
0x1b62   : > { %v3435_v57 = vmax.f32 %v5477_v55, 0.0  ;;  %v5266_v7 = vpop.f32.mrb[3].mxu0  ;;  %5308 = vmatpush3.bf16.msra.mxu0 %v7208_v1  ;;  %v7214_v55 = vcombine.low %v7439_v25, %v6601_v30  ;;  %v7440_v30 = vld [vmem:[#allocation33_spill] sm:$0xff] }
0x1b63   : > { %5309 = vmatprep.subr.bf16.mxu0 %v6048_v48 }
0x1b64   : > { %v3436_v8 = vpack.c.bf16 %v3435_v57, %v3435_v57 }
0x1b66   : > { %5272 = vmatmul.mubr.msk.bf16.vlgmr.msra.gmra.mrb[0].mxu1 %vm3449_vm11, %v3436_v8  ;;  %5310 = vmatpush3.bf16.msra.mxu0 %v7214_v55 }
0x1b67   : > { %5279 = vmatprep.mubr.msk.bf16.mxu1 %vm6049_vm9, %v6048_v48  ;;  %5276 = vmatpush3.bf16.msra.mxu1 %v7142_v9 }
0x1b68   : > { %5277 = vmatprep.subr.bf16.mxu1 %v6048_v48  ;;  %5323 = vmatprep.subr.bf16.mxu0 %v6048_v48 }
0x1b6b   : > { %5278 = vmatpush3.bf16.msra.mxu1 %v7148_v10 }
0x1b6c   : > { %5283 = vmatprep.subr.bf16.mxu1 %v6048_v48 }
0x1c39   : > { %v3487_v58 = vpop.f32.mrb[0].mxu1 }
0x1c3a   : > { %v3488_v53 = vadd.f32 %v6623_v35, %v3487_v58  ;;  %v5273_v62 = vpop.f32.mrb[1].mxu1  ;;  %v7441_v58 = vld [vmem:[#allocation32_spill] sm:$0xff] }
0x1c3b   : > { %v3490_v44 = vpop.f32.mrb[2].mxu1  ;;  %v7442_v62 = vld [vmem:[#allocation35_spill] sm:$0xff] }
0x1c3c   : > { %v3493_v46 = vmax.f32 %v3488_v53, 0.0  ;;  %v5274_v11 = vpop.f32.mrb[3].mxu1  ;;  %v7226_v53 = vcombine.low %v7441_v58, %v7440_v30  ;;  %v7443_v44 = vld [vmem:[#allocation34_spill] sm:$0xff] }
0x1c3e   : > { %v3494_v56 = vpack.c.bf16 %v3493_v46, %v3493_v46  ;;  %v7232_v46 = vcombine.low %v7443_v44, %v7442_v62 }
0x1c40   : > { %5280 = vmatmul.mubr.msk.bf16.vlgmr.msra.gmra.mrb[4].mxu1 %vm3449_vm11, %v3494_v56 }
0x1c41   : > { %5284 = vmatpush3.bf16.msra.mxu1 %v7155_v12  ;;  %5287 = vmatprep.mubr.msk.bf16.mxu1 %vm6049_vm9, %v6048_v48 }
0x1c42   : > { %5285 = vmatprep.subr.bf16.mxu1 %v6048_v48 }
0x1c45   : > { %5286 = vmatpush3.bf16.msra.mxu1 %v7161_v13 }
0x1c46   : > { %5291 = vmatprep.subr.bf16.mxu1 %v6048_v48 }
0x1c48   : > { %5288 = vmatmul.mubr.msk.bf16.vlgmr.msra.gmra.mrb[8].mxu1 %vm3449_vm11, %v3552_v42 }
0x1c49   : > { %5295 = vmatprep.mubr.msk.bf16.mxu1 %vm6049_vm9, %v6048_v48  ;;  %5292 = vmatpush3.bf16.msra.mxu1 %v7173_v19 }
0x1c4a   : > { %5293 = vmatprep.subr.bf16.mxu1 %v6048_v48 }
0x1c4d   : > { %5294 = vmatpush3.bf16.msra.mxu1 %v7179_v21 }
0x1c4e   : > { %5299 = vmatprep.subr.bf16.mxu1 %v6048_v48 }
0x1d13   : > { %v3544_v22 = vpop.f32.mrb[4].mxu1 }
0x1d14   : > { %v3545_v60 = vadd.f32 %v6628_v36, %v3544_v22  ;;  %v5281_v41 = vpop.f32.mrb[5].mxu1 }
0x1d15   : > { %v3547_v31 = vpop.f32.mrb[6].mxu1 }
0x1d16   : > { %v3550_v59 = vmax.f32 %v3545_v60, 0.0  ;;  %v5282_v15 = vpop.f32.mrb[7].mxu1 }
0x1d18   : > { %v3551_v16 = vpack.c.bf16 %v3550_v59, %v3550_v59 }
0x1d1a   : > { %5296 = vmatmul.mubr.msk.bf16.vlgmr.msra.gmra.mrb[12].mxu1 %vm3449_vm11, %v3551_v16 }
0x1d1b   : > { %v3602_v45 = vpop.f32.mrb[8].mxu1  ;;  %5303 = vmatprep.mubr.msk.bf16.mxu1 %vm6049_vm9, %v6048_v48  ;;  %5300 = vmatpush3.bf16.msra.mxu1 %v7189_v29 }
0x1d1c   : > { %v5289_v18 = vpop.f32.mrb[9].mxu1  ;;  %5301 = vmatprep.subr.bf16.mxu1 %v6048_v48 }
0x1d1d   : > { %v3605_v34 = vpop.f32.mrb[10].mxu1 }
0x1d1e   : > { %v5290_v63 = vpop.f32.mrb[11].mxu1 }
0x1d1f   : > { %5302 = vmatpush3.bf16.msra.mxu1 %v7194_v54 }
0x1d20   : > { %5315 = vmatprep.subr.bf16.mxu1 %v6048_v48 }
0x1ded   : > { %v3657_v3 = vpop.f32.mrb[12].mxu1 }
0x1dee   : > { %v3658_v47 = vadd.f32 %v3657_v3, %v3602_v45  ;;  %v5297_v4 = vpop.f32.mrb[13].mxu1 }
0x1def   : > { %v3660_v61 = vpop.f32.mrb[14].mxu1 }
0x1df0   : > { %v3663_v5 = vadd.f32 %v6630_v37, %v3658_v47  ;;  %v5298_v23 = vpop.f32.mrb[15].mxu1 }
0x1df2   : > { %5662 = vtanh.f32 %v3663_v5 }
0x1dfc   : > { %v7200_v24 = vpop.eup %5662 }
0x1dfd   : > { %v3665_v33 = vmax.f32 %v7200_v24, 0.0 }
0x1dff   : > { %v3666_v26 = vpack.c.bf16 %v3665_v33, %v3665_v33 }
0x1e01   : > { %5304 = vmatmul.mubr.msk.bf16.vlgmr.msra.gmra.mrb[16].mxu1 %vm3449_vm11, %v3666_v26 }
0x1e02   : > { %5319 = vmatprep.mubr.msk.bf16.mxu1 %vm6049_vm9, %v6048_v48  ;;  %5316 = vmatpush3.bf16.msra.mxu1 %v7226_v53 }
0x1e03   : > { %5317 = vmatprep.subr.bf16.mxu1 %v6048_v48 }
0x1e06   : > { %5318 = vmatpush3.bf16.msra.mxu1 %v7232_v46 }
0x1e07   : > { %5353 = vmatprep.subr.bf16.mxu1 %v6048_v48 }
0x1ed4   : > { %v3716_v52 = vpop.f32.mrb[16].mxu1 }
0x1ed5   : > { %v3717_v50 = vadd.f32 %v6635_v38, %v3716_v52  ;;  %v5305_v57 = vpop.f32.mrb[17].mxu1 }
0x1ed6   : > { %v3719_v7 = vpop.f32.mrb[18].mxu1 }
0x1ed7   : > { %v3722_v8 = vmax.f32 %v3717_v50, 0.0  ;;  %v5306_v27 = vpop.f32.mrb[19].mxu1 }
0x1ed9   : > { %v3723_v28 = vpack.c.bf16 %v3722_v8, %v3722_v8 }
0x1edb   : > { %5312 = vmatmul.mubr.msk.bf16.vlgmr.msra.gmra.mrb[4].mxu0 %vm3449_vm11, %v3723_v28 }
0x1edc   : > { %5324 = vmatpush3.bf16.msra.mxu0 %v7076_v0  ;;  %5325 = vmatprep.mubr.msk.bf16.mxu0 %vm6049_vm9, %v6048_v48 }
0x1edd   : > { %5329 = vmatprep.subr.bf16.mxu0 %v6048_v48 }
0x1fae   : > { %v3773_v0 = vpop.f32.mrb[4].mxu0 }
0x1faf   : > { %v3774_v11 = vadd.f32 %v6640_v39, %v3773_v0  ;;  %v5313_v56 = vpop.f32.mrb[5].mxu0 }
0x1fb0   : > { %v3776_v14 = vpop.f32.mrb[6].mxu0 }
0x1fb1   : > { %v3779_v42 = vmax.f32 %v3774_v11, 0.0  ;;  %v5314_v20 = vpop.f32.mrb[7].mxu0 }
0x1fb3   : > { %v3780_v22 = vpack.c.bf16 %v3779_v42, %v3779_v42 }
0x1fb5   : > { %5320 = vmatmul.mubr.msk.bf16.vlgmr.msra.gmra.mrb[20].mxu1 %vm3449_vm11, %v3780_v22 }
0x1fb6   : > { %5354 = vmatpush3.bf16.msra.mxu1 %v7126_v6  ;;  %5357 = vmatprep.mubr.msk.bf16.mxu1 %vm6049_vm9, %v6048_v48 }
0x1fb7   : > { %5355 = vmatprep.subr.bf16.mxu1 %v6048_v48 }
0x1fba   : > { %5356 = vmatpush3.bf16.msra.mxu1 %v7132_v32 }
0x1fbb   : > { %5361 = vmatprep.subr.bf16.mxu1 %v6048_v48 }
0x2088   : > { %v3830_v60 = vpop.f32.mrb[20].mxu1 }
0x2089   : > { %v3831_v41 = vadd.f32 %v6645_v40, %v3830_v60  ;;  %v5321_v31 = vpop.f32.mrb[21].mxu1 }
0x208a   : > { %v3833_v59 = vpop.f32.mrb[22].mxu1 }
0x208b   : > { %v5322_v15 = vpop.f32.mrb[23].mxu1  ;;  %v3844_v16 = vpack.c.bf16 %v3831_v41, %v3831_v41  ;;  %3837 = vst.msk [vmem:[%s6493_s9] sm:$0x3] %vm3836_vm12, %v3831_v41  ;;  %v3838_v6 = vmul.f32 %v3831_v41, %v3831_v41 }
0x208d   : > { %5326 = vmatmul.mubr.msk.bf16.vlgmr.msra.gmra.mrb[8].mxu0 %vm3194_vm10, %v3844_v16  ;;  %v3889_v32 = vpack.c.bf16 %v3838_v6, %v3838_v6  ;;  %v3839_v45 = vmul.f32 %v3838_v6, %v3831_v41 }
0x208e   : > { %5330 = vmatpush3.bf16.msra.mxu0 %v7085_v51  ;;  %5331 = vmatprep.mubr.msk.bf16.mxu0 %vm6049_vm9, %v6048_v48  ;;  %v3840_v51 = vmul.f32 %v3838_v6, %v3838_v6 }
0x208f   : > { %5335 = vmatprep.subr.bf16.mxu0 %v6048_v48  ;;  %v3934_v18 = vpack.c.bf16 %v3839_v45, %v3839_v45 }
0x2090   : > { %v3979_v34 = vpack.c.bf16 %v3840_v51, %v3840_v51 }
0x2099   : > { %5332 = vmatmul.mubr.msk.bf16.vlgmr.msra.gmra.mrb[8].mxu0 %vm3194_vm10, %v3889_v32 }
0x209a   : > { %5336 = vmatpush3.bf16.msra.mxu0 %v7096_v49  ;;  %5337 = vmatprep.mubr.msk.bf16.mxu0 %vm6049_vm9, %v6048_v48  ;;  %v3841_v49 = vmul.f32 %v3840_v51, %v3831_v41 }
0x209b   : > { %5341 = vmatprep.subr.bf16.mxu0 %v6048_v48 }
0x209c   : > { %v4024_v63 = vpack.c.bf16 %v3841_v49, %v3841_v49 }
0x20a5   : > { %5338 = vmatmul.mubr.msk.bf16.vlgmr.msra.gmra.mrb[8].mxu0 %vm3194_vm10, %v3934_v18 }
0x20a6   : > { %5342 = vmatpush3.bf16.msra.mxu0 %v7105_v43  ;;  %5343 = vmatprep.mubr.msk.bf16.mxu0 %vm6049_vm9, %v6048_v48  ;;  %v4690_v43 = vld [vmem:[%s6463_s11 + $0x2] sm:$0x3] }
0x20a7   : > { %5347 = vmatprep.subr.bf16.mxu0 %v6048_v48 }
0x20b1   : > { %5344 = vmatmul.mubr.msk.bf16.vlgmr.msra.gmra.mrb[8].mxu0 %vm3194_vm10, %v3979_v34 }
0x20b2   : > { %5348 = vmatpush3.bf16.msra.mxu0 %v7114_v17  ;;  %5349 = vmatprep.mubr.msk.bf16.mxu0 %vm6049_vm9, %v6048_v48 }
0x20b3   : > { %5393 = vmatprep.subr.bf16.mxu0 %v6048_v48 }
0x20bd   : > { %5350 = vmatmul.mubr.msk.bf16.vlgmr.msra.gmra.mrb[8].mxu0 %vm3194_vm10, %v4024_v63 }
0x20be   : > { %5394 = vmatpush3.bf16.msra.mxu0 %v7208_v1  ;;  %5397 = vmatprep.mubr.msk.bf16.mxu0 %vm6049_vm9, %v6048_v48 }
0x20bf   : > { %5395 = vmatprep.subr.bf16.mxu0 %v6048_v48 }
0x20c2   : > { %5396 = vmatpush3.bf16.msra.mxu0 %v7214_v55 }
0x2190   : > { %v4062_v17 = vpop.f32.mrb[8].mxu0 }
0x2191   : > { %v5478_v2 = vadd.f32 %v4690_v43, %v4062_v17  ;;  %v5351_v3 = vpop.f32.mrb[9].mxu0 }
0x2192   : > { %v4065_v47 = vpop.f32.mrb[10].mxu0 }
0x2193   : > { %v4069_v4 = vmax.f32 %v5478_v2, 0.0  ;;  %v5352_v61 = vpop.f32.mrb[11].mxu0 }
0x2195   : > { %v4070_v5 = vpack.c.bf16 %v4069_v4, %v4069_v4 }
0x2197   : > { %5358 = vmatmul.mubr.msk.bf16.vlgmr.msra.gmra.mrb[24].mxu1 %vm3449_vm11, %v4070_v5 }
0x2198   : > { %5362 = vmatpush3.bf16.msra.mxu1 %v7142_v9  ;;  %5365 = vmatprep.mubr.msk.bf16.mxu1 %vm6049_vm9, %v6048_v48  ;;  %v4161_v9 = vpack.c.bf16 %v7200_v24, %v7200_v24 }
0x2199   : > { %5363 = vmatprep.subr.bf16.mxu1 %v6048_v48 }
0x219c   : > { %5364 = vmatpush3.bf16.msra.mxu1 %v7148_v10 }
0x219d   : > { %5369 = vmatprep.subr.bf16.mxu1 %v6048_v48 }
0x226a   : > { %v4108_v23 = vpop.f32.mrb[24].mxu1 }
0x226b   : > { %v4109_v33 = vadd.f32 %v6623_v35, %v4108_v23  ;;  %v5359_v26 = vpop.f32.mrb[25].mxu1 }
0x226c   : > { %v4111_v1 = vpop.f32.mrb[26].mxu1 }
0x226d   : > { %v4114_v25 = vmax.f32 %v4109_v33, 0.0  ;;  %v5360_v55 = vpop.f32.mrb[27].mxu1 }
0x226f   : > { %v4115_v52 = vpack.c.bf16 %v4114_v25, %v4114_v25 }
0x2271   : > { %5366 = vmatmul.mubr.msk.bf16.vlgmr.msra.gmra.mrb[28].mxu1 %vm3449_vm11, %v4115_v52 }
0x2272   : > { %5370 = vmatpush3.bf16.msra.mxu1 %v7155_v12  ;;  %5373 = vmatprep.mubr.msk.bf16.mxu1 %vm6049_vm9, %v6048_v48 }
0x2273   : > { %5371 = vmatprep.subr.bf16.mxu1 %v6048_v48 }
0x2276   : > { %5372 = vmatpush3.bf16.msra.mxu1 %v7161_v13 }
0x2277   : > { %5377 = vmatprep.subr.bf16.mxu1 %v6048_v48 }
0x2279   : > { %5374 = vmatmul.mubr.msk.bf16.vlgmr.msra.gmra.mrb[32].mxu1 %vm3449_vm11, %v4161_v9 }
0x227a   : > { %5378 = vmatpush3.bf16.msra.mxu1 %v7173_v19  ;;  %5381 = vmatprep.mubr.msk.bf16.mxu1 %vm6049_vm9, %v6048_v48 }
0x227b   : > { %5379 = vmatprep.subr.bf16.mxu1 %v6048_v48 }
0x227e   : > { %5380 = vmatpush3.bf16.msra.mxu1 %v7179_v21 }
0x227f   : > { %5385 = vmatprep.subr.bf16.mxu1 %v6048_v48 }
0x2344   : > { %v4153_v35 = vpop.f32.mrb[28].mxu1 }
0x2345   : > { %v4154_v10 = vadd.f32 %v6628_v36, %v4153_v35  ;;  %v5367_v12 = vpop.f32.mrb[29].mxu1 }
0x2346   : > { %v4156_v13 = vpop.f32.mrb[30].mxu1 }
0x2347   : > { %v4159_v24 = vmax.f32 %v4154_v10, 0.0  ;;  %v5368_v50 = vpop.f32.mrb[31].mxu1 }
0x2349   : > { %v4160_v57 = vpack.c.bf16 %v4159_v24, %v4159_v24 }
0x234b   : > { %5382 = vmatmul.mubr.msk.bf16.vlgmr.msra.gmra.mrb[36].mxu1 %vm3449_vm11, %v4160_v57 }
0x234c   : > { %v4199_v19 = vpop.f32.mrb[32].mxu1  ;;  %5386 = vmatpush3.bf16.msra.mxu1 %v7189_v29  ;;  %5389 = vmatprep.mubr.msk.bf16.mxu1 %vm6049_vm9, %v6048_v48 }
0x234d   : > { %v5375_v7 = vpop.f32.mrb[33].mxu1  ;;  %5387 = vmatprep.subr.bf16.mxu1 %v6048_v48 }
0x234e   : > { %v4202_v21 = vpop.f32.mrb[34].mxu1 }
0x234f   : > { %v5376_v8 = vpop.f32.mrb[35].mxu1 }
0x2350   : > { %5388 = vmatpush3.bf16.msra.mxu1 %v7194_v54 }
0x2351   : > { %5401 = vmatprep.subr.bf16.mxu1 %v6048_v48 }
0x241e   : > { %v4242_v36 = vpop.f32.mrb[36].mxu1 }
0x241f   : > { %v4243_v27 = vadd.f32 %v4242_v36, %v4199_v19  ;;  %v5383_v28 = vpop.f32.mrb[37].mxu1 }
0x2420   : > { %v4245_v30 = vpop.f32.mrb[38].mxu1 }
0x2421   : > { %v4248_v58 = vadd.f32 %v6630_v37, %v4243_v27  ;;  %v5384_v62 = vpop.f32.mrb[39].mxu1 }
0x2423   : > { %5664 = vtanh.f32 %v4248_v58 }
0x242d   : > { %v5665_v29 = vpop.eup %5664 }
0x242e   : > { %4388 = vst.msk [vmem:[#allocation2] sm:$0x3] %vm4387_vm13, %v5665_v29  ;;  %v4250_v44 = vmax.f32 %v5665_v29, 0.0 }
0x2430   : > { %v4251_v0 = vpack.c.bf16 %v4250_v44, %v4250_v44 }
0x2432   : > { %5390 = vmatmul.mubr.msk.bf16.vlgmr.msra.gmra.mrb[40].mxu1 %vm3449_vm11, %v4251_v0 }
0x2433   : > { %5402 = vmatpush3.bf16.msra.mxu1 %v7226_v53  ;;  %5405 = vmatprep.mubr.msk.bf16.mxu1 %vm6049_vm9, %v6048_v48 }
0x2434   : > { %5403 = vmatprep.subr.bf16.mxu1 %v6048_v48 }
0x2437   : > { %5404 = vmatpush3.bf16.msra.mxu1 %v7232_v46 }
0x2505   : > { %v4289_v54 = vpop.f32.mrb[40].mxu1 }
0x2506   : > { %v4290_v37 = vadd.f32 %v6635_v38, %v4289_v54  ;;  %v5391_v11 = vpop.f32.mrb[41].mxu1 }
0x2507   : > { %v4292_v56 = vpop.f32.mrb[42].mxu1 }
0x2508   : > { %v4295_v14 = vmax.f32 %v4290_v37, 0.0  ;;  %v5392_v42 = vpop.f32.mrb[43].mxu1 }
0x250a   : > { %v4296_v20 = vpack.c.bf16 %v4295_v14, %v4295_v14 }
0x250c   : > { %5398 = vmatmul.mubr.msk.bf16.vlgmr.msra.gmra.mrb[12].mxu0 %vm3449_vm11, %v4296_v20 }
0x25df   : > { %v4334_v22 = vpop.f32.mrb[12].mxu0 }
0x25e0   : > { %v4335_v53 = vadd.f32 %v6640_v39, %v4334_v22  ;;  %v5399_v60 = vpop.f32.mrb[13].mxu0 }
0x25e1   : > { %v4337_v41 = vpop.f32.mrb[14].mxu0 }
0x25e2   : > { %v4340_v31 = vmax.f32 %v4335_v53, 0.0  ;;  %v5400_v48 = vpop.f32.mrb[15].mxu0 }
0x25e4   : > { %v4341_v59 = vpack.c.bf16 %v4340_v31, %v4340_v31 }
0x25e6   : > { %5406 = vmatmul.mubr.msk.bf16.vlgmr.msra.gmra.mrb[44].mxu1 %vm3449_vm11, %v4341_v59 }
0x26b9   : > { %v4379_v46 = vpop.f32.mrb[44].mxu1 }
0x26ba   : > { %v4380_v38 = vadd.f32 %v6645_v40, %v4379_v46  ;;  %v5407_v15 = vpop.f32.mrb[45].mxu1 }
0x26bb   : > { %v4382_v16 = vpop.f32.mrb[46].mxu1 }
0x26bc   : > { %4703 = vst.msk [vmem:[%s6493_s9 + $0x2] sm:$0x3] %vm3836_vm12, %v4380_v38  ;;  %4389 = vst.msk [vmem:[#allocation3] sm:$0x3] %vm3836_vm12, %v4380_v38  ;;  %v5408_v6 = vpop.f32.mrb[47].mxu1 }
0x26bd PF: > { %s7444_s24 = sld [smem:[#allocation27_spill]]  ;;  %s7445_s2 = sld [smem:[#allocation28_spill]] }
0x26be   : > { %s7446_s1 = smov %s6020_s22  ;;  %s7447_s22 = smov %s6024_s23 }
0x26c3   : > { %p35_p2 = scmp.ge.s32.totalorder %s7444_s24, 4   ;;  %s7448_s23 = smov %s7445_s2 }
0x26c5   :  { %37 = sbr.rel (!%p35_p2) target bundleno = 24 (0x18), region = 200 }
0x26cc   :  { %4412 = vsyncpa [#allocation5], 1 }
0x26cd   :  { %4414 = vsyncpa [#allocation5 + $0x1], 1 }
0x26ce   :  { %4415 = vsyncpa [#allocation7], 1 }
0x26cf   :  { %4416 = vsyncpa [#allocation10], 1 }
0x26d0   :  { %4417 = vsyncpa [#allocation13], 1 }
0x26d1   :  { %4418 = vsyncpa [#allocation16], 1 }
0x26d2   :  { %4419 = vsyncpa [#allocation19], 1 }

</bundles_post_ra>
